<compile_context>
chip_gen: v5e
topology: v5e:2x2
jax: 0.10.0
libtpu: 0.0.40
codegen_flags: <defaults>
</compile_context>

<pallas_src>
import functools

import jax
import jax.numpy as jnp
from jax import lax
from jax.experimental import pallas as pl
from jax.experimental.pallas import tpu as pltpu

LANE = 128  # lane width / channel padding granularity


def _round_up(v, m):
    return ((v + m - 1) // m) * m


def _fold_bn(gamma, beta, mean, var, eps):
    scale = gamma / jnp.sqrt(var + eps)
    bias = beta - mean * scale
    return scale, bias


# ---------------------------------------------------------------------------
# Fused Pallas kernel (one batch element per grid step)
# ---------------------------------------------------------------------------
def _bottleneck_kernel(x_ref, w1_ref, b1_ref, w2_ref, b2_ref, w3_ref, b3_ref,
                       pmask_ref, out_ref, y1pad_ref, *, wp, pad_lo,
                       apply_final_relu):
    """Everything resident in VMEM; intermediates never touch HBM.

    x_ref      : (1, Mp, Cin_p) bf16, Mp = (H+2)*(W+2) spatially padded rows
    w1_ref     : (Cin_p, Wd_p)  bf16  (BN1 folded)
    w2_ref     : (9, Wd_p, Wd_p) bf16 (BN2 folded, tap-major)
    w3_ref     : (Wd_p, Cout_p) bf16  (BN3 folded)
    b*_ref     : (1, C) f32 folded-BN biases
    pmask_ref  : (Mp, 1) f32 — 1.0 interior rows, 0.0 on the padding ring
    out_ref    : (1, Mp, Cout_p) bf16 — act, or pre-activation when last=True
    y1pad_ref  : (srows, Wd_p) bf16 staging buffer for the 3x3 taps
    """
    mp = x_ref.shape[1]
    srows, wdp = y1pad_ref.shape

    x = x_ref[0]                                           # (Mp, Cin_p) bf16

    # ---- conv1 (1x1) + folded-BN bias + ReLU, staged as bf16 --------------
    y1 = jnp.dot(x, w1_ref[...], preferred_element_type=jnp.float32)
    # re-zero the spatial padding ring so conv2 sees proper zero padding
    y1 = jnp.maximum(y1 + b1_ref[...], 0.0) * pmask_ref[...]

    # Zero ONLY the dead bands of the staging buffer (per step: correct under
    # core-parallel sharding, and far cheaper than zeroing the whole scratch).
    tail = srows - pad_lo - mp
    y1pad_ref[pl.ds(0, pad_lo), :] = jnp.zeros((pad_lo, wdp), jnp.bfloat16)
    y1pad_ref[pl.ds(pad_lo + mp, tail), :] = jnp.zeros((tail, wdp),
                                                       jnp.bfloat16)
    y1pad_ref[pl.ds(pad_lo, mp), :] = y1.astype(jnp.bfloat16)

    # ---- conv2 (3x3, pad=1): nine accumulating matmuls, no im2col ---------
    acc = jnp.zeros((mp, wdp), jnp.float32)
    for t in range(9):
        kh, kw = t // 3, t % 3
        shift = (kh - 1) * wp + (kw - 1)                   # static row shift
        win = y1pad_ref[pl.ds(pad_lo + shift, mp), :]      # bf16 window view
        acc = acc + jnp.dot(win, w2_ref[t],
                            preferred_element_type=jnp.float32)
    y2 = jnp.maximum(acc + b2_ref[...], 0.0).astype(jnp.bfloat16)

    # ---- conv3 (1x1) + folded-BN bias + residual (+ ReLU) -----------------
    y3 = jnp.dot(y2, w3_ref[...], preferred_element_type=jnp.float32)
    y3 = y3 + b3_ref[...] + x.astype(jnp.float32)          # Cin_p == Cout_p
    if apply_final_relu:
        y3 = jnp.maximum(y3, 0.0)
    out_ref[0] = y3.astype(out_ref.dtype)


# ---------------------------------------------------------------------------
# One-time weight preparation (BN folding, channel padding, bf16 cast)
# ---------------------------------------------------------------------------
def prepare_weights(params, eps=1e-5):
    w1, w2, w3 = params["w1"], params["w2"], params["w3"]
    cin, width = w1.shape
    cout = w3.shape[1]
    assert w2.shape == (3, 3, width, width)

    s1, b1 = _fold_bn(*params["bn1"], eps=eps)
    s2, b2 = _fold_bn(*params["bn2"], eps=eps)
    s3, b3 = _fold_bn(*params["bn3"], eps=eps)
    w1f = w1 * s1[None, :]
    w2f = w2 * s2[None, None, None, :]
    w3f = w3 * s3[None, :]

    cin_p = _round_up(cin, LANE)
    wd_p = _round_up(width, LANE)
    cout_p = _round_up(cout, LANE)

    w1b = (jnp.zeros((cin_p, wd_p), jnp.float32)
           .at[:cin, :width].set(w1f).astype(jnp.bfloat16))
    w2b = (jnp.zeros((3, 3, wd_p, wd_p), jnp.float32)
           .at[:, :, :width, :width].set(w2f)
           .reshape(9, wd_p, wd_p).astype(jnp.bfloat16))
    w3b = (jnp.zeros((wd_p, cout_p), jnp.float32)
           .at[:width, :cout].set(w3f).astype(jnp.bfloat16))
    b1p = jnp.zeros((1, wd_p), jnp.float32).at[0, :width].set(b1)
    b2p = jnp.zeros((1, wd_p), jnp.float32).at[0, :width].set(b2)
    b3p = jnp.zeros((1, cout_p), jnp.float32).at[0, :cout].set(b3)

    return dict(w1b=w1b, w2b=w2b, w3b=w3b, b1p=b1p, b2p=b2p, b3p=b3p,
                cin=cin, width=width, cout=cout)


# ---------------------------------------------------------------------------
# Bottleneck forward
# ---------------------------------------------------------------------------
def bottleneck_forward(x_nchw, prepared, last=False):
    w1b, w2b, w3b = prepared["w1b"], prepared["w2b"], prepared["w3b"]
    b1p, b2p, b3p = prepared["b1p"], prepared["b2p"], prepared["b3p"]
    cin, cout = prepared["cin"], prepared["cout"]
    cin_p, wd_p = w1b.shape
    cout_p = w3b.shape[1]

    N, xc, H, W = x_nchw.shape
    assert xc == cin and cin == cout, \
        "identity path requires inplanes == planes*4 (no downsample)"

    # NCHW -> NHWC, bf16, channel pad to lane multiple, 1-pixel spatial halo
    x_nhwc = jnp.transpose(x_nchw, (0, 2, 3, 1)).astype(jnp.bfloat16)
    xcp = jnp.zeros((N, H, W, cin_p), jnp.bfloat16).at[..., :cin].set(x_nhwc)
    xsp = jnp.pad(xcp, ((0, 0), (1, 1), (1, 1), (0, 0)))
    mp = (H + 2) * (W + 2)
    wp = W + 2
    x_rows = xsp.reshape(N, mp, cin_p)

    # mask that re-zeroes the padding ring after conv1
    hh = jnp.arange(H + 2)
    ww = jnp.arange(W + 2)
    interior = ((hh[:, None] >= 1) & (hh[:, None] <= H) &
                (ww[None, :] >= 1) & (ww[None, :] <= W))
    pmask = interior.reshape(mp, 1).astype(jnp.float32)

    pad_lo = _round_up(wp + 1, 8)                 # 8-aligned dead zone (top)
    srows = _round_up(pad_lo + mp + wp + 1, 8)    # staging-buffer rows

    kernel = functools.partial(_bottleneck_kernel, wp=wp, pad_lo=pad_lo,
                               apply_final_relu=not last)

    flops = 2 * N * mp * (cin_p * wd_p + 9 * wd_p * wd_p + wd_p * cout_p)
    bytes_accessed = (x_rows.size * 2 + w1b.size * 2 + w2b.size * 2 +
                      w3b.size * 2 +
                      (b1p.size + b2p.size + b3p.size + pmask.size) * 4 +
                      N * mp * cout_p * 2)
    cost = pl.CostEstimate(flops=int(flops), transcendentals=0,
                           bytes_accessed=int(bytes_accessed))

    out = pl.pallas_call(
        kernel,
        out_shape=jax.ShapeDtypeStruct((N, mp, cout_p), jnp.bfloat16),
        grid=(N,),
        in_specs=[
            pl.BlockSpec((1, mp, cin_p), lambda n: (n, 0, 0)),   # x (identity)
            pl.BlockSpec((cin_p, wd_p), lambda n: (0, 0)),       # w1 (folded)
            pl.BlockSpec((1, wd_p), lambda n: (0, 0)),           # b1
            pl.BlockSpec((9, wd_p, wd_p), lambda n: (0, 0, 0)),  # w2 (folded)
            pl.BlockSpec((1, wd_p), lambda n: (0, 0)),           # b2
            pl.BlockSpec((wd_p, cout_p), lambda n: (0, 0)),      # w3 (folded)
            pl.BlockSpec((1, cout_p), lambda n: (0, 0)),         # b3
            pl.BlockSpec((mp, 1), lambda n: (0, 0)),             # pad mask
        ],
        out_specs=pl.BlockSpec((1, mp, cout_p), lambda n: (n, 0, 0)),
        scratch_shapes=[pltpu.VMEM((srows, wd_p), jnp.bfloat16)],
        compiler_params=pltpu.CompilerParams(
            dimension_semantics=("parallel",),
            vmem_limit_bytes=48 * 1024 * 1024),
        cost_estimate=cost,
    )(x_rows, w1b, b1p, w2b, b2p, w3b, b3p, pmask)

    # crop the halo + channel padding, back to NCHW / f32
    y = out.reshape(N, H + 2, W + 2, cout_p)[:, 1:H + 1, 1:W + 1, :cout]
    y = jnp.transpose(y, (0, 3, 1, 2)).astype(jnp.float32)
    if last:
        # kernel wrote only the pre-activation; derive act in the wrapper
        return jnp.maximum(y, 0.0), y
    return y


# ---------------------------------------------------------------------------
# Pure-JAX reference (same folded/padded bf16 operands, f32 conv math)
# ---------------------------------------------------------------------------
def reference_forward(x_nchw, prepared):
    cin, cout = prepared["cin"], prepared["cout"]
    cin_p, wd_p = prepared["w1b"].shape
    N, _, H, W = x_nchw.shape

    x_nhwc = jnp.transpose(x_nchw, (0, 2, 3, 1)).astype(jnp.bfloat16)
    xcp = jnp.zeros((N, H, W, cin_p), jnp.bfloat16).at[..., :cin].set(x_nhwc)
    x = xcp.astype(jnp.float32)

    dn = ("NHWC", "HWIO", "NHWC")
    hp = lax.Precision.HIGHEST
    w1 = prepared["w1b"].astype(jnp.float32)[None, None]
    w2 = prepared["w2b"].astype(jnp.float32).reshape(3, 3, wd_p, wd_p)
    w3 = prepared["w3b"].astype(jnp.float32)[None, None]

    y = lax.conv_general_dilated(x, w1, (1, 1), [(0, 0), (0, 0)],
                                 dimension_numbers=dn, precision=hp)
    y = jnp.maximum(y + prepared["b1p"].reshape(1, 1, 1, -1), 0.0)
    y = lax.conv_general_dilated(y, w2, (1, 1), [(1, 1), (1, 1)],
                                 dimension_numbers=dn, precision=hp)
    y = jnp.maximum(y + prepared["b2p"].reshape(1, 1, 1, -1), 0.0)
    y = lax.conv_general_dilated(y, w3, (1, 1), [(0, 0), (0, 0)],
                                 dimension_numbers=dn, precision=hp)
    out = y + prepared["b3p"].reshape(1, 1, 1, -1) + x
    act = jnp.maximum(out, 0.0)

    def crop(z):
        return jnp.transpose(z[..., :cout], (0, 3, 1, 2))
    return crop(act), crop(out)


# ---------------------------------------------------------------------------
# Deterministic parameter init (channel-last conv weights, BN running stats)
# ---------------------------------------------------------------------------
def init_params(key, inplanes, planes, base_width=64, groups=1):
    width = int(planes * (base_width / 64.0)) * groups
    outp = planes * 4  # Bottleneck.expansion = 4
    ks = jax.random.split(key, 6)

    def bn_params(k, c):
        kg, kb, km, kv = jax.random.split(k, 4)
        gamma = 1.0 + 0.1 * jax.random.normal(kg, (c,), jnp.float32)
        beta = 0.1 * jax.random.normal(kb, (c,), jnp.float32)
        mean = 0.1 * jax.random.normal(km, (c,), jnp.float32)
        var = 1.0 + 0.1 * jnp.abs(jax.random.normal(kv, (c,), jnp.float32))
        return gamma, beta, mean, var

    return {
        "w1": 0.1 * jax.random.normal(ks[0], (inplanes, width), jnp.float32),
        "w2": 0.1 * jax.random.normal(ks[1], (3, 3, width, width), jnp.float32),
        "w3": 0.1 * jax.random.normal(ks[2], (width, outp), jnp.float32),
        "bn1": bn_params(ks[3], width),
        "bn2": bn_params(ks[4], width),
        "bn3": bn_params(ks[5], outp),
    }


if __name__ == "__main__":
    key = jax.random.PRNGKey(0)
    kx, kp = jax.random.split(key)

    inplanes, planes = 16, 4          # width = 4, out channels = 16 == inplanes
    N, H, W = 2, 16, 16
    x = jax.random.normal(kx, (N, inplanes, H, W), jnp.float32)   # NCHW input
    params = init_params(kp, inplanes, planes)

    # BN folding / padding hoisted out of the per-call path (once per model)
    prepared = prepare_weights(params)

    fwd = jax.jit(functools.partial(bottleneck_forward,
                                    prepared=prepared, last=False))
    fwd_last = jax.jit(functools.partial(bottleneck_forward,
                                         prepared=prepared, last=True))

    act = jax.block_until_ready(fwd(x))                 # module returns act
    act_l, out_l = jax.block_until_ready(fwd_last(x))   # module returns (act, out)

    ref_act, ref_out = reference_forward(x, prepared)
    assert act.shape == ref_act.shape == (N, planes * 4, H, W)

    # bf16 kernel outputs + bf16 staged intermediates -> relaxed tolerance
    err_a = float(jnp.max(jnp.abs(act - ref_act)))
    err_b = float(jnp.max(jnp.abs(act_l - ref_act)))
    err_c = float(jnp.max(jnp.abs(out_l - ref_out)))
    assert jnp.allclose(act, ref_act, atol=2e-2, rtol=2e-2), err_a
    assert jnp.allclose(act_l, ref_act, atol=2e-2, rtol=2e-2), err_b
    assert jnp.allclose(out_l, ref_out, atol=2e-2, rtol=2e-2), err_c

    print("KERNEL_OK")
</pallas_src>

<mosaic_0001>
module attributes {stable_mosaic.version = 11 : i64} {
  func.func @_bottleneck_kernel(%arg0: i32, %arg1: memref<1x324x128xbf16, #tpu.memory_space<vmem>>, %arg2: memref<128x128xbf16, #tpu.memory_space<vmem>>, %arg3: memref<1x128xf32, #tpu.memory_space<vmem>>, %arg4: memref<9x128x128xbf16, #tpu.memory_space<vmem>>, %arg5: memref<1x128xf32, #tpu.memory_space<vmem>>, %arg6: memref<128x128xbf16, #tpu.memory_space<vmem>>, %arg7: memref<1x128xf32, #tpu.memory_space<vmem>>, %arg8: memref<324x1xf32, #tpu.memory_space<vmem>>, %arg9: memref<1x324x128xbf16, #tpu.memory_space<vmem>>, %arg10: memref<368x128xbf16, #tpu.memory_space<vmem>>) attributes {dimension_semantics = [#tpu.dimension_semantics<parallel>], iteration_bounds = array<i64: 2>, scalar_prefetch = 0 : i64, scratch_operands = 1 : i64, tpu.core_type = #tpu.core_type<tc>, window_params = [{transform_indices = @transform_0, window_bounds = array<i64: 1, 324, 128>}, {pipeline_mode = #tpu.pipeline_mode<synchronous>, transform_indices = @transform_1, window_bounds = array<i64: 128, 128>}, {pipeline_mode = #tpu.pipeline_mode<synchronous>, transform_indices = @transform_2, window_bounds = array<i64: 1, 128>}, {pipeline_mode = #tpu.pipeline_mode<synchronous>, transform_indices = @transform_3, window_bounds = array<i64: 9, 128, 128>}, {pipeline_mode = #tpu.pipeline_mode<synchronous>, transform_indices = @transform_4, window_bounds = array<i64: 1, 128>}, {pipeline_mode = #tpu.pipeline_mode<synchronous>, transform_indices = @transform_5, window_bounds = array<i64: 128, 128>}, {pipeline_mode = #tpu.pipeline_mode<synchronous>, transform_indices = @transform_6, window_bounds = array<i64: 1, 128>}, {pipeline_mode = #tpu.pipeline_mode<synchronous>, transform_indices = @transform_7, window_bounds = array<i64: 324, 1>}, {transform_indices = @transform_8, window_bounds = array<i64: 1, 324, 128>}]} {
    %c0 = arith.constant 0 : index
    %c0_0 = arith.constant 0 : index
    %c0_1 = arith.constant 0 : index
    %0 = vector.load %arg1[%c0, %c0_0, %c0_1] : memref<1x324x128xbf16, #tpu.memory_space<vmem>>, vector<1x324x128xbf16>
    %1 = vector.shape_cast %0 : vector<1x324x128xbf16> to vector<324x128xbf16>
    %c0_2 = arith.constant 0 : index
    %c0_3 = arith.constant 0 : index
    %2 = vector.load %arg2[%c0_2, %c0_3] : memref<128x128xbf16, #tpu.memory_space<vmem>>, vector<128x128xbf16>
    %cst = arith.constant dense<0.000000e+00> : vector<324x128xf32>
    %3 = tpu.matmul %1, %2, %cst {dimension_numbers = #tpu.dot_dimension_numbers<[1], [0], [0], [1], [0, 0, 1, 1], [], []>} : vector<324x128xbf16>, vector<128x128xbf16>, vector<324x128xf32> -> vector<324x128xf32>
    %c0_4 = arith.constant 0 : index
    %c0_5 = arith.constant 0 : index
    %4 = vector.load %arg3[%c0_4, %c0_5] : memref<1x128xf32, #tpu.memory_space<vmem>>, vector<1x128xf32>
    %5 = vector.broadcast %4 : vector<1x128xf32> to vector<324x128xf32>
    %6 = arith.addf %3, %5 : vector<324x128xf32>
    %cst_6 = arith.constant 0.000000e+00 : f32
    %7 = vector.broadcast %cst_6 : f32 to vector<324x128xf32>
    %8 = arith.maximumf %6, %7 : vector<324x128xf32>
    %c0_7 = arith.constant 0 : index
    %c0_8 = arith.constant 0 : index
    %9 = vector.load %arg8[%c0_7, %c0_8] : memref<324x1xf32, #tpu.memory_space<vmem>>, vector<324x1xf32>
    %10 = vector.broadcast %9 : vector<324x1xf32> to vector<324x128xf32>
    %11 = arith.mulf %8, %10 : vector<324x128xf32>
    %cst_9 = arith.constant 0.000000e+00 : bf16
    %12 = vector.broadcast %cst_9 : bf16 to vector<24x128xbf16>
    %c0_10 = arith.constant 0 : index
    %c0_11 = arith.constant 0 : index
    %13 = vector.load %arg10[%c0_10, %c0_11] : memref<368x128xbf16, #tpu.memory_space<vmem>>, vector<24x128xbf16>
    tpu.vector_store %arg10[%c0_10, %c0_11], %12 {strides = array<i32>} : memref<368x128xbf16, #tpu.memory_space<vmem>>, vector<24x128xbf16>,
    %cst_12 = arith.constant 0.000000e+00 : bf16
    %14 = vector.broadcast %cst_12 : bf16 to vector<20x128xbf16>
    %c348 = arith.constant 348 : index
    %c0_13 = arith.constant 0 : index
    %15 = vector.load %arg10[%c348, %c0_13] : memref<368x128xbf16, #tpu.memory_space<vmem>>, vector<20x128xbf16>
    tpu.vector_store %arg10[%c348, %c0_13], %14 {strides = array<i32>} : memref<368x128xbf16, #tpu.memory_space<vmem>>, vector<20x128xbf16>,
    %16 = arith.truncf %11 : vector<324x128xf32> to vector<324x128xbf16>
    %c24 = arith.constant 24 : index
    %c0_14 = arith.constant 0 : index
    %17 = vector.load %arg10[%c24, %c0_14] : memref<368x128xbf16, #tpu.memory_space<vmem>>, vector<324x128xbf16>
    tpu.vector_store %arg10[%c24, %c0_14], %16 {strides = array<i32>} : memref<368x128xbf16, #tpu.memory_space<vmem>>, vector<324x128xbf16>,
    %cst_15 = arith.constant 0.000000e+00 : f32
    %18 = vector.broadcast %cst_15 : f32 to vector<324x128xf32>
    %c5 = arith.constant 5 : index
    %c0_16 = arith.constant 0 : index
    %19 = vector.load %arg10[%c5, %c0_16] : memref<368x128xbf16, #tpu.memory_space<vmem>>, vector<324x128xbf16>
    %c0_17 = arith.constant 0 : index
    %c0_18 = arith.constant 0 : index
    %c0_19 = arith.constant 0 : index
    %20 = vector.load %arg4[%c0_17, %c0_18, %c0_19] : memref<9x128x128xbf16, #tpu.memory_space<vmem>>, vector<1x128x128xbf16>
    %21 = vector.shape_cast %20 : vector<1x128x128xbf16> to vector<128x128xbf16>
    %cst_20 = arith.constant dense<0.000000e+00> : vector<324x128xf32>
    %22 = tpu.matmul %19, %21, %cst_20 {dimension_numbers = #tpu.dot_dimension_numbers<[1], [0], [0], [1], [0, 0, 1, 1], [], []>} : vector<324x128xbf16>, vector<128x128xbf16>, vector<324x128xf32> -> vector<324x128xf32>
    %23 = arith.addf %18, %22 : vector<324x128xf32>
    %c6 = arith.constant 6 : index
    %c0_21 = arith.constant 0 : index
    %24 = vector.load %arg10[%c6, %c0_21] : memref<368x128xbf16, #tpu.memory_space<vmem>>, vector<324x128xbf16>
    %c1 = arith.constant 1 : index
    %c0_22 = arith.constant 0 : index
    %c0_23 = arith.constant 0 : index
    %25 = vector.load %arg4[%c1, %c0_22, %c0_23] : memref<9x128x128xbf16, #tpu.memory_space<vmem>>, vector<1x128x128xbf16>
    %26 = vector.shape_cast %25 : vector<1x128x128xbf16> to vector<128x128xbf16>
    %cst_24 = arith.constant dense<0.000000e+00> : vector<324x128xf32>
    %27 = tpu.matmul %24, %26, %cst_24 {dimension_numbers = #tpu.dot_dimension_numbers<[1], [0], [0], [1], [0, 0, 1, 1], [], []>} : vector<324x128xbf16>, vector<128x128xbf16>, vector<324x128xf32> -> vector<324x128xf32>
    %28 = arith.addf %23, %27 : vector<324x128xf32>
    %c7 = arith.constant 7 : index
    %c0_25 = arith.constant 0 : index
    %29 = vector.load %arg10[%c7, %c0_25] : memref<368x128xbf16, #tpu.memory_space<vmem>>, vector<324x128xbf16>
    %c2 = arith.constant 2 : index
    %c0_26 = arith.constant 0 : index
    %c0_27 = arith.constant 0 : index
    %30 = vector.load %arg4[%c2, %c0_26, %c0_27] : memref<9x128x128xbf16, #tpu.memory_space<vmem>>, vector<1x128x128xbf16>
    %31 = vector.shape_cast %30 : vector<1x128x128xbf16> to vector<128x128xbf16>
    %cst_28 = arith.constant dense<0.000000e+00> : vector<324x128xf32>
    %32 = tpu.matmul %29, %31, %cst_28 {dimension_numbers = #tpu.dot_dimension_numbers<[1], [0], [0], [1], [0, 0, 1, 1], [], []>} : vector<324x128xbf16>, vector<128x128xbf16>, vector<324x128xf32> -> vector<324x128xf32>
    %33 = arith.addf %28, %32 : vector<324x128xf32>
    %c23 = arith.constant 23 : index
    %c0_29 = arith.constant 0 : index
    %34 = vector.load %arg10[%c23, %c0_29] : memref<368x128xbf16, #tpu.memory_space<vmem>>, vector<324x128xbf16>
    %c3 = arith.constant 3 : index
    %c0_30 = arith.constant 0 : index
    %c0_31 = arith.constant 0 : index
    %35 = vector.load %arg4[%c3, %c0_30, %c0_31] : memref<9x128x128xbf16, #tpu.memory_space<vmem>>, vector<1x128x128xbf16>
    %36 = vector.shape_cast %35 : vector<1x128x128xbf16> to vector<128x128xbf16>
    %cst_32 = arith.constant dense<0.000000e+00> : vector<324x128xf32>
    %37 = tpu.matmul %34, %36, %cst_32 {dimension_numbers = #tpu.dot_dimension_numbers<[1], [0], [0], [1], [0, 0, 1, 1], [], []>} : vector<324x128xbf16>, vector<128x128xbf16>, vector<324x128xf32> -> vector<324x128xf32>
    %38 = arith.addf %33, %37 : vector<324x128xf32>
    %c24_33 = arith.constant 24 : index
    %c0_34 = arith.constant 0 : index
    %39 = vector.load %arg10[%c24_33, %c0_34] : memref<368x128xbf16, #tpu.memory_space<vmem>>, vector<324x128xbf16>
    %c4 = arith.constant 4 : index
    %c0_35 = arith.constant 0 : index
    %c0_36 = arith.constant 0 : index
    %40 = vector.load %arg4[%c4, %c0_35, %c0_36] : memref<9x128x128xbf16, #tpu.memory_space<vmem>>, vector<1x128x128xbf16>
    %41 = vector.shape_cast %40 : vector<1x128x128xbf16> to vector<128x128xbf16>
    %cst_37 = arith.constant dense<0.000000e+00> : vector<324x128xf32>
    %42 = tpu.matmul %39, %41, %cst_37 {dimension_numbers = #tpu.dot_dimension_numbers<[1], [0], [0], [1], [0, 0, 1, 1], [], []>} : vector<324x128xbf16>, vector<128x128xbf16>, vector<324x128xf32> -> vector<324x128xf32>
    %43 = arith.addf %38, %42 : vector<324x128xf32>
    %c25 = arith.constant 25 : index
    %c0_38 = arith.constant 0 : index
    %44 = vector.load %arg10[%c25, %c0_38] : memref<368x128xbf16, #tpu.memory_space<vmem>>, vector<324x128xbf16>
    %c5_39 = arith.constant 5 : index
    %c0_40 = arith.constant 0 : index
    %c0_41 = arith.constant 0 : index
    %45 = vector.load %arg4[%c5_39, %c0_40, %c0_41] : memref<9x128x128xbf16, #tpu.memory_space<vmem>>, vector<1x128x128xbf16>
    %46 = vector.shape_cast %45 : vector<1x128x128xbf16> to vector<128x128xbf16>
    %cst_42 = arith.constant dense<0.000000e+00> : vector<324x128xf32>
    %47 = tpu.matmul %44, %46, %cst_42 {dimension_numbers = #tpu.dot_dimension_numbers<[1], [0], [0], [1], [0, 0, 1, 1], [], []>} : vector<324x128xbf16>, vector<128x128xbf16>, vector<324x128xf32> -> vector<324x128xf32>
    %48 = arith.addf %43, %47 : vector<324x128xf32>
    %c41 = arith.constant 41 : index
    %c0_43 = arith.constant 0 : index
    %49 = vector.load %arg10[%c41, %c0_43] : memref<368x128xbf16, #tpu.memory_space<vmem>>, vector<324x128xbf16>
    %c6_44 = arith.constant 6 : index
    %c0_45 = arith.constant 0 : index
    %c0_46 = arith.constant 0 : index
    %50 = vector.load %arg4[%c6_44, %c0_45, %c0_46] : memref<9x128x128xbf16, #tpu.memory_space<vmem>>, vector<1x128x128xbf16>
    %51 = vector.shape_cast %50 : vector<1x128x128xbf16> to vector<128x128xbf16>
    %cst_47 = arith.constant dense<0.000000e+00> : vector<324x128xf32>
    %52 = tpu.matmul %49, %51, %cst_47 {dimension_numbers = #tpu.dot_dimension_numbers<[1], [0], [0], [1], [0, 0, 1, 1], [], []>} : vector<324x128xbf16>, vector<128x128xbf16>, vector<324x128xf32> -> vector<324x128xf32>
    %53 = arith.addf %48, %52 : vector<324x128xf32>
    %c42 = arith.constant 42 : index
    %c0_48 = arith.constant 0 : index
    %54 = vector.load %arg10[%c42, %c0_48] : memref<368x128xbf16, #tpu.memory_space<vmem>>, vector<324x128xbf16>
    %c7_49 = arith.constant 7 : index
    %c0_50 = arith.constant 0 : index
    %c0_51 = arith.constant 0 : index
    %55 = vector.load %arg4[%c7_49, %c0_50, %c0_51] : memref<9x128x128xbf16, #tpu.memory_space<vmem>>, vector<1x128x128xbf16>
    %56 = vector.shape_cast %55 : vector<1x128x128xbf16> to vector<128x128xbf16>
    %cst_52 = arith.constant dense<0.000000e+00> : vector<324x128xf32>
    %57 = tpu.matmul %54, %56, %cst_52 {dimension_numbers = #tpu.dot_dimension_numbers<[1], [0], [0], [1], [0, 0, 1, 1], [], []>} : vector<324x128xbf16>, vector<128x128xbf16>, vector<324x128xf32> -> vector<324x128xf32>
    %58 = arith.addf %53, %57 : vector<324x128xf32>
    %c43 = arith.constant 43 : index
    %c0_53 = arith.constant 0 : index
    %59 = vector.load %arg10[%c43, %c0_53] : memref<368x128xbf16, #tpu.memory_space<vmem>>, vector<324x128xbf16>
    %c8 = arith.constant 8 : index
    %c0_54 = arith.constant 0 : index
    %c0_55 = arith.constant 0 : index
    %60 = vector.load %arg4[%c8, %c0_54, %c0_55] : memref<9x128x128xbf16, #tpu.memory_space<vmem>>, vector<1x128x128xbf16>
    %61 = vector.shape_cast %60 : vector<1x128x128xbf16> to vector<128x128xbf16>
    %cst_56 = arith.constant dense<0.000000e+00> : vector<324x128xf32>
    %62 = tpu.matmul %59, %61, %cst_56 {dimension_numbers = #tpu.dot_dimension_numbers<[1], [0], [0], [1], [0, 0, 1, 1], [], []>} : vector<324x128xbf16>, vector<128x128xbf16>, vector<324x128xf32> -> vector<324x128xf32>
    %63 = arith.addf %58, %62 : vector<324x128xf32>
    %c0_57 = arith.constant 0 : index
    %c0_58 = arith.constant 0 : index
    %64 = vector.load %arg5[%c0_57, %c0_58] : memref<1x128xf32, #tpu.memory_space<vmem>>, vector<1x128xf32>
    %65 = vector.broadcast %64 : vector<1x128xf32> to vector<324x128xf32>
    %66 = arith.addf %63, %65 : vector<324x128xf32>
    %cst_59 = arith.constant 0.000000e+00 : f32
    %67 = vector.broadcast %cst_59 : f32 to vector<324x128xf32>
    %68 = arith.maximumf %66, %67 : vector<324x128xf32>
    %69 = arith.truncf %68 : vector<324x128xf32> to vector<324x128xbf16>
    %c0_60 = arith.constant 0 : index
    %c0_61 = arith.constant 0 : index
    %70 = vector.load %arg6[%c0_60, %c0_61] : memref<128x128xbf16, #tpu.memory_space<vmem>>, vector<128x128xbf16>
    %cst_62 = arith.constant dense<0.000000e+00> : vector<324x128xf32>
    %71 = tpu.matmul %69, %70, %cst_62 {dimension_numbers = #tpu.dot_dimension_numbers<[1], [0], [0], [1], [0, 0, 1, 1], [], []>} : vector<324x128xbf16>, vector<128x128xbf16>, vector<324x128xf32> -> vector<324x128xf32>
    %c0_63 = arith.constant 0 : index
    %c0_64 = arith.constant 0 : index
    %72 = vector.load %arg7[%c0_63, %c0_64] : memref<1x128xf32, #tpu.memory_space<vmem>>, vector<1x128xf32>
    %73 = vector.broadcast %72 : vector<1x128xf32> to vector<324x128xf32>
    %74 = arith.addf %71, %73 : vector<324x128xf32>
    %75 = arith.extf %1 : vector<324x128xbf16> to vector<324x128xf32>
    %76 = arith.addf %74, %75 : vector<324x128xf32>
    %cst_65 = arith.constant 0.000000e+00 : f32
    %77 = vector.broadcast %cst_65 : f32 to vector<324x128xf32>
    %78 = arith.maximumf %76, %77 : vector<324x128xf32>
    %79 = arith.truncf %78 : vector<324x128xf32> to vector<324x128xbf16>
    %c0_66 = arith.constant 0 : index
    %c0_67 = arith.constant 0 : index
    %c0_68 = arith.constant 0 : index
    %80 = vector.load %arg9[%c0_66, %c0_67, %c0_68] : memref<1x324x128xbf16, #tpu.memory_space<vmem>>, vector<1x324x128xbf16>
    %81 = vector.shape_cast %80 : vector<1x324x128xbf16> to vector<324x128xbf16>
    %82 = vector.shape_cast %79 : vector<324x128xbf16> to vector<1x324x128xbf16>
    tpu.vector_store %arg9[%c0_66, %c0_67, %c0_68], %82 {strides = array<i32>} : memref<1x324x128xbf16, #tpu.memory_space<vmem>>, vector<1x324x128xbf16>,
    return
  }
  func.func @transform_0(%arg0: i32) -> (i32, i32, i32) {
    %c0_i32 = arith.constant 0 : i32
    %c0_i32_0 = arith.constant 0 : i32
    %c0_i32_1 = arith.constant 0 : i32
    return %arg0, %c0_i32, %c0_i32_0 : i32, i32, i32
  }
  func.func @transform_1(%arg0: i32) -> (i32, i32) {
    %c0_i32 = arith.constant 0 : i32
    %c0_i32_0 = arith.constant 0 : i32
    %c0_i32_1 = arith.constant 0 : i32
    return %c0_i32, %c0_i32_0 : i32, i32
  }
  func.func @transform_2(%arg0: i32) -> (i32, i32) {
    %c0_i32 = arith.constant 0 : i32
    %c0_i32_0 = arith.constant 0 : i32
    %c0_i32_1 = arith.constant 0 : i32
    return %c0_i32, %c0_i32_0 : i32, i32
  }
  func.func @transform_3(%arg0: i32) -> (i32, i32, i32) {
    %c0_i32 = arith.constant 0 : i32
    %c0_i32_0 = arith.constant 0 : i32
    %c0_i32_1 = arith.constant 0 : i32
    %c0_i32_2 = arith.constant 0 : i32
    return %c0_i32, %c0_i32_0, %c0_i32_1 : i32, i32, i32
  }
  func.func @transform_4(%arg0: i32) -> (i32, i32) {
    %c0_i32 = arith.constant 0 : i32
    %c0_i32_0 = arith.constant 0 : i32
    %c0_i32_1 = arith.constant 0 : i32
    return %c0_i32, %c0_i32_0 : i32, i32
  }
  func.func @transform_5(%arg0: i32) -> (i32, i32) {
    %c0_i32 = arith.constant 0 : i32
    %c0_i32_0 = arith.constant 0 : i32
    %c0_i32_1 = arith.constant 0 : i32
    return %c0_i32, %c0_i32_0 : i32, i32
  }
  func.func @transform_6(%arg0: i32) -> (i32, i32) {
    %c0_i32 = arith.constant 0 : i32
    %c0_i32_0 = arith.constant 0 : i32
    %c0_i32_1 = arith.constant 0 : i32
    return %c0_i32, %c0_i32_0 : i32, i32
  }
  func.func @transform_7(%arg0: i32) -> (i32, i32) {
    %c0_i32 = arith.constant 0 : i32
    %c0_i32_0 = arith.constant 0 : i32
    %c0_i32_1 = arith.constant 0 : i32
    return %c0_i32, %c0_i32_0 : i32, i32
  }
  func.func @transform_8(%arg0: i32) -> (i32, i32, i32) {
    %c0_i32 = arith.constant 0 : i32
    %c0_i32_0 = arith.constant 0 : i32
    %c0_i32_1 = arith.constant 0 : i32
    return %arg0, %c0_i32, %c0_i32_0 : i32, i32, i32
  }
}

</mosaic_0001>

<bundles_post_ra>
// kernel: bottleneck_forward.1
= control target key start
LH: loop header
LB: loop body
LE: loop exit
PB: predicated region body
PF: predicated region fallthrough
CT: control target
= control target key end

     0   :  { %s6598_s27 = smov 0   ;;  %s9185_s0 = inlined_call_operand.vmem [shape: bf16[2,324,128], index: 0, kind: input, shape index: {}]   ;;  %s9186_s1 = inlined_call_operand.vmem [shape: bf16[128,128], index: 1, kind: input, shape index: {}]   ;;  %s9187_s2 = inlined_call_operand.vmem [shape: f32[1,128], index: 2, kind: input, shape index: {}]   ;;  %s9188_s3 = inlined_call_operand.vmem [shape: bf16[9,128,128], index: 3, kind: input, shape index: {}]   ;;  %s9189_s4 = inlined_call_operand.vmem [shape: f32[1,128], index: 4, kind: input, shape index: {}]   ;;  %s9190_s5 = inlined_call_operand.vmem [shape: bf16[128,128], index: 5, kind: input, shape index: {}]   ;;  %s9191_s6 = inlined_call_operand.vmem [shape: f32[1,128], index: 6, kind: input, shape index: {}]   ;;  %s9192_s7 = inlined_call_operand.vmem [shape: f32[324,1], index: 7, kind: input, shape index: {}]   ;;  %s9193_s8 = inlined_call_operand.vmem [shape: bf16[2,324,128], index: 8, kind: output, shape index: {}]  }
   0x1 LB: > { %s5157_s28 = sadd.s32 4294967295, %s6550_s27   ;;  %p5161_p0 = scmp.ge.s32.totalorder %s6550_s27, 1  ;;  %s6550_s27 = sphi %s6598_s27, %s18_s27  }
   0x2   : > { %p262_p1 = scmp.lt.s32.totalorder %s6550_s27, 3 }
   0x4   : > { %p263_p2 = pnand %p5161_p0, %p262_p1 }
   0x6   : > { %266 = sbr.rel (%p263_p2) target bundleno = 1546 (0x60a), region = 52 }
   0xb   : > { %v5905_v0 = vld [vmem:[%s9186_s1 + $0x38] sm:$0xff]  ;;  %v5904_v1 = vld [vmem:[%s9186_s1 + $0x30] sm:$0xff]  ;;  %v6552_v2 = vmov 0   ;;  %v694_v3 = vld [vmem:[%s9192_s7] sm:$0xff]  ;;  %p296_p3 = scmp.lt.s32.totalorder %s5157_s28, 1  ;;  %vm1250_vm0 = vcmask 1044480  }
   0xc   : > { %540 = vmatpush.bf16.msra.mxu0 %v5905_v0  ;;  %6512 = vset.pattern.permute.xlu0 %v6552_v2  ;;  %981 = vst [vmem:[#allocation2] sm:$0xf] %v6552_v2  ;;  %v5903_v4 = vld [vmem:[%s9186_s1 + $0x28] sm:$0xff]  ;;  %v5902_v5 = vld [vmem:[%s9186_s1 + $0x20] sm:$0xff]  ;;  %v5901_v6 = vld [vmem:[%s9186_s1 + $0x18] sm:$0xff]  ;;  %vm4006_vm5 = vcmask 1046528  }
   0xd   : > { %982 = vst [vmem:[#allocation2 + $0x4] sm:$0xf] %v6552_v2  ;;  %737 = vperm.xlu0 %6512, %v694_v3   ;;  %6513 = vset.pattern.permute.xlu1 %v6552_v2  ;;  %v695_v7 = vld [vmem:[%s9192_s7 + $0x8] sm:$0xff]  ;;  %v696_v8 = vld [vmem:[%s9192_s7 + $0x10] sm:$0xff]  ;;  %s9714_s28 = smov (!%p296_p3, %s5157_s28), 1  ;;  %v5898_v11 = vld [vmem:[%s9186_s1] sm:$0xff] }
   0xe   : > { %983 = vst [vmem:[#allocation2 + $0x8] sm:$0xf] %v6552_v2  ;;  %6478 = vmatpush.bf16.msra.mxu3 %v5905_v0  ;;  %6514 = vset.pattern.permute.xlu2 %v6552_v2  ;;  %v5900_v9 = vld [vmem:[%s9186_s1 + $0x10] sm:$0xff]  ;;  %v5899_v10 = vld [vmem:[%s9186_s1 + $0x8] sm:$0xff]  ;;  %s6502_s29 = smul.u32 164, %s9714_s28  ;;  %v697_v13 = vld [vmem:[%s9192_s7 + $0x18] sm:$0xff] }
   0xf   : > { %984 = vst [vmem:[#allocation2 + $0xac] sm:$0xc] %v6552_v2  ;;  %747 = vperm.xlu1 %6513, %v696_v8   ;;  %v700_v15 = vld [vmem:[%s9192_s7 + $0x30] sm:$0xff]  ;;  %v698_v17 = vld [vmem:[%s9192_s7 + $0x20] sm:$0xff]  ;;  %v701_v18 = vld [vmem:[%s9192_s7 + $0x38] sm:$0xff] }
  0x10   : > { %541 = vmatpush.bf16.msra.mxu0 %v5904_v1  ;;  %985 = vst [vmem:[#allocation2 + $0xb0] sm:$0xf] %v6552_v2  ;;  %s6651_s12 = scalar_lea.vmem %s9185_s0, %s6502_s29  ;;  %757 = vperm.xlu2 %6514, %v698_v17   ;;  %v699_v19 = vld [vmem:[%s9192_s7 + $0x28] sm:$0xff]  ;;  %v704_v23 = vld [vmem:[%s9192_s7 + $0x50] sm:$0xff]  ;;  %v702_v26 = vld [vmem:[%s9192_s7 + $0x40] sm:$0xff]  ;;  %s8908_s25 = scalar_lea.vmem %s9193_s8, %s6502_s29 }
  0x11   : > { %986 = vst [vmem:[#allocation2 + $0xb4] sm:$0xf] %v6552_v2  ;;  %v5878_v12 = vld [vmem:[%s6651_s12] sm:$0xff]  ;;  %v5879_v14 = vld [vmem:[%s6651_s12 + $0x8] sm:$0xff]  ;;  %v5880_v16 = vld [vmem:[%s6651_s12 + $0x10] sm:$0xff] }
  0x12   : > { %6479 = vmatpush.bf16.msra.mxu3 %v5904_v1  ;;  %v5881_v20 = vld [vmem:[%s6651_s12 + $0x18] sm:$0xff]  ;;  %v703_v21 = vld [vmem:[%s9192_s7 + $0x48] sm:$0xff]  ;;  %v5894_v22 = vld [vmem:[%s6651_s12 + $0x80] sm:$0xff]  ;;  %vm1477_vm1 = vsmask.f32 5376 }
  0x13   : > { %v724_v24 = vld [vmem:[%s9192_s7 + $0xf0] sm:$0xff]  ;;  %v5882_v25 = vld [vmem:[%s6651_s12 + $0x20] sm:$0xff]  ;;  %v725_v27 = vld [vmem:[%s9192_s7 + $0xf8] sm:$0xff]  ;;  %vm1869_vm2 = vsmask.f32 4352 }
  0x14   : > { %542 = vmatpush.bf16.msra.mxu0 %v5903_v4  ;;  %v705_v28 = vld [vmem:[%s9192_s7 + $0x58] sm:$0xff]  ;;  %v5895_v29 = vld [vmem:[%s6651_s12 + $0x88] sm:$0xff]  ;;  %v706_v30 = vld [vmem:[%s9192_s7 + $0x60] sm:$0xff]  ;;  %vm4292_vm3 = vsmask.f32 6400 }
  0x15   : > { %742 = vperm.xlu0 %6512, %v695_v7   ;;  %v5883_v31 = vld [vmem:[%s6651_s12 + $0x28] sm:$0xff]  ;;  %v5940_v32 = vld [vmem:[%s9188_s3 + $0x78] sm:$0xff]  ;;  %v728_v34 = vld [vmem:[%s9192_s7 + $0x110] sm:$0xff]  ;;  %vm3043_vm4 = vsmask.f32 7424 }
  0x16   : > { %6480 = vmatpush.bf16.msra.mxu3 %v5903_v4  ;;  %v707_v33 = vld [vmem:[%s9192_s7 + $0x68] sm:$0xff]  ;;  %v6709_v35 = vld [vmem:[%s9188_s3 + $0x38] sm:$0xff]  ;;  %v5896_v36 = vld [vmem:[%s6651_s12 + $0x90] sm:$0xff]  ;;  %1361 = vmatpush.bf16.msra.mxu1 %v5940_v32 }
  0x17   : > { %752 = vperm.xlu1 %6513, %v697_v13   ;;  %v5939_v37 = vld [vmem:[%s9188_s3 + $0x70] sm:$0xff]  ;;  %1735 = vmatpush.bf16.msra.mxu2 %v6709_v35  ;;  %v5938_v39 = vld [vmem:[%s9188_s3 + $0x68] sm:$0xff]  ;;  %v729_v41 = vld [vmem:[%s9192_s7 + $0x118] sm:$0xff] }
  0x18   : > { %543 = vmatpush.bf16.msra.mxu0 %v5902_v5  ;;  %762 = vperm.xlu2 %6514, %v699_v19   ;;  %v5931_v38 = vld [vmem:[%s9188_s3 + $0x30] sm:$0xff]  ;;  %v5937_v42 = vld [vmem:[%s9188_s3 + $0x60] sm:$0xff]  ;;  %v5930_v43 = vld [vmem:[%s9188_s3 + $0x28] sm:$0xff] }
  0x19   : > { %v5884_v40 = vld [vmem:[%s6651_s12 + $0x30] sm:$0xff]  ;;  %v723_v44 = vld [vmem:[%s9192_s7 + $0xe8] sm:$0xff]  ;;  %v730_v45 = vld [vmem:[%s9192_s7 + $0x120] sm:$0xff] }
  0x1a   : > { %6481 = vmatpush.bf16.msra.mxu3 %v5902_v5  ;;  %1362 = vmatpush.bf16.msra.mxu1 %v5939_v37  ;;  %v5936_v46 = vld [vmem:[%s9188_s3 + $0x58] sm:$0xff]  ;;  %v5929_v47 = vld [vmem:[%s9188_s3 + $0x20] sm:$0xff]  ;;  %v5935_v49 = vld [vmem:[%s9188_s3 + $0x50] sm:$0xff] }
  0x1b   : > { %1736 = vmatpush.bf16.msra.mxu2 %v5931_v38  ;;  %v710_v48 = vld [vmem:[%s9192_s7 + $0x80] sm:$0xff]  ;;  %v6753_v50 = vld [vmem:[%s9188_s3 + $0x18] sm:$0xff]  ;;  %v731_v52 = vld [vmem:[%s9192_s7 + $0x128] sm:$0xff] }
  0x1c   : > { %544 = vmatpush.bf16.msra.mxu0 %v5901_v6  ;;  %v726_v51 = vld [vmem:[%s9192_s7 + $0x100] sm:$0xff]  ;;  %v5934_v53 = vld [vmem:[%s9188_s3 + $0x48] sm:$0xff]  ;;  %v5927_v54 = vld [vmem:[%s9188_s3 + $0x10] sm:$0xff] }
  0x1d   : > { %767 = vperm.xlu0 %6512, %v700_v15   ;;  %v5897_v55 = vld [vmem:[%s6651_s12 + $0x98] sm:$0xff]  ;;  %v711_v57 = vld [vmem:[%s9192_s7 + $0x88] sm:$0xff]  ;;  %v5933_v58 = vld [vmem:[%s9188_s3 + $0x40] sm:$0xff] }
  0x1e   : > { %6482 = vmatpush.bf16.msra.mxu3 %v5901_v6  ;;  %1363 = vmatpush.bf16.msra.mxu1 %v5938_v39  ;;  %v5885_v56 = vld [vmem:[%s6651_s12 + $0x38] sm:$0xff]  ;;  %v5926_v59 = vld [vmem:[%s9188_s3 + $0x8] sm:$0xff]  ;;  %v712_v61 = vld [vmem:[%s9192_s7 + $0x90] sm:$0xff] }
  0x1f   : > { %772 = vperm.xlu1 %6513, %v701_v18   ;;  %1737 = vmatpush.bf16.msra.mxu2 %v5930_v43  ;;  %v727_v60 = vld [vmem:[%s9192_s7 + $0x108] sm:$0xff]  ;;  %v6788_v62 = vld [vmem:[%s9188_s3] sm:$0xff]  ;;  %v708_v0 = vld [vmem:[%s9192_s7 + $0x70] sm:$0xff] }
  0x20   : > { %545 = vmatpush.bf16.msra.mxu0 %v5900_v9  ;;  %777 = vperm.xlu2 %6514, %v702_v26   ;;  %v714_v63 = vld [vmem:[%s9192_s7 + $0xa0] sm:$0xff]  ;;  %v715_v1 = vld [vmem:[%s9192_s7 + $0xa8] sm:$0xff] }
  0x21   : > { %v347_v2 = vld [vmem:[%s6651_s12 + $0xa0] sm:$0x3]  ;;  %v1070_v8 = vld [vmem:[#allocation2 + $0x4] sm:$0xf]  ;;  %v1127_v13 = vld [vmem:[#allocation2] sm:$0x8] }
  0x22   : > { %6483 = vmatpush.bf16.msra.mxu3 %v5900_v9  ;;  %1364 = vmatpush.bf16.msra.mxu1 %v5937_v42  ;;  %v449_v3 = vunpack.c.l.b16 %v347_v2  ;;  %v6805_v4 = vld [vmem:[%s9187_s2] ss:$0 sm:$0xff]  ;;  %v1069_v9 = vld [vmem:[#allocation2] sm:$0xc] }
  0x23   : > { %1738 = vmatpush.bf16.msra.mxu2 %v5929_v47  ;;  %v5886_v6 = vld [vmem:[%s6651_s12 + $0x40] sm:$0xff]  ;;  %v1475_v17 = vunpack.c.l.b16 %v1069_v9 }
  0x24   : > { %546 = vmatpush.bf16.msra.mxu0 %v5899_v10  ;;  %v470_v5 = vpack.c.b16 %v449_v3, %v449_v3  ;;  %v718_v18 = vld [vmem:[%s9192_s7 + $0xc0] sm:$0xff] }
  0x25   : > { %782 = vperm.xlu0 %6512, %v703_v21  }
  0x26   : > { %6484 = vmatpush.bf16.msra.mxu3 %v5899_v10  ;;  %1365 = vmatpush.bf16.msra.mxu1 %v5936_v46 }
  0x27   : > { %787 = vperm.xlu1 %6513, %v704_v23   ;;  %1739 = vmatpush.bf16.msra.mxu2 %v6753_v50 }
  0x28   : > { %547 = vmatpush.bf16.msra.mxu0 %v5898_v11  ;;  %882 = vperm.xlu2 %6514, %v723_v44  }
  0x2a   : > { %6485 = vmatpush.bf16.msra.mxu3 %v5898_v11  ;;  %1366 = vmatpush.bf16.msra.mxu1 %v5935_v49  ;;  %v717_v11 = vld [vmem:[%s9192_s7 + $0xb8] sm:$0xff] }
  0x2b   : > { %548 = vmatmul.bf16.vlgmr.msra.gmra.mxu0 %v5878_v12  ;;  %1740 = vmatpush.bf16.msra.mxu2 %v5927_v54 }
  0x2d   : > { %628 = vmatmul.bf16.vlgmr.msra.gmra.mxu3 %v5894_v22  ;;  %887 = vperm.xlu0 %6512, %v724_v24  }
  0x2e   : > { %6486 = vmatpush.bf16.msrb.mxu3 %v5940_v32  ;;  %1367 = vmatpush.bf16.msra.mxu1 %v5934_v53  ;;  %v5887_v32 = vld [vmem:[%s6651_s12 + $0x48] sm:$0xff] }
  0x2f   : > { %892 = vperm.xlu1 %6513, %v725_v27   ;;  %1741 = vmatpush.bf16.msra.mxu2 %v5926_v59 }
  0x30   : > { %897 = vperm.xlu2 %6514, %v726_v51  }
  0x32   : > { %6487 = vmatpush.bf16.msrb.mxu3 %v5939_v37  ;;  %1368 = vmatpush.bf16.msra.mxu1 %v5933_v58 }
  0x33   : > { %1742 = vmatpush.bf16.msra.mxu2 %v6788_v62 }
  0x35   : > { %792 = vperm.xlu0 %6512, %v705_v28   ;;  %v721_v28 = vld [vmem:[%s9192_s7 + $0xd8] sm:$0xff] }
  0x36   : > { %6488 = vmatpush.bf16.msrb.mxu3 %v5938_v39 }
  0x37   : > { %797 = vperm.xlu1 %6513, %v706_v30  }
  0x38   : > { %902 = vperm.xlu2 %6514, %v727_v60  }
  0x3a   : > { %6489 = vmatpush.bf16.msrb.mxu3 %v5937_v42 }
  0x3b   : > { %553 = vmatmul.bf16.gmra.mxu0 %v5879_v14  ;;  %v709_v14 = vld [vmem:[%s9192_s7 + $0x78] sm:$0xff] }
  0x3d   : > { %633 = vmatmul.bf16.gmra.mxu3 %v5895_v29  ;;  %907 = vperm.xlu0 %6512, %v728_v34  }
  0x3e   : > { %6490 = vmatpush.bf16.msrb.mxu3 %v5936_v46 }
  0x3f   : > { %802 = vperm.xlu1 %6513, %v707_v33  }
  0x40   : > { %807 = vperm.xlu2 %6514, %v708_v0  }
  0x42   : > { %6491 = vmatpush.bf16.msrb.mxu3 %v5935_v49 }
  0x45   : > { %912 = vperm.xlu0 %6512, %v729_v41  }
  0x46   : > { %6492 = vmatpush.bf16.msrb.mxu3 %v5934_v53 }
  0x47   : > { %917 = vperm.xlu1 %6513, %v730_v45  }
  0x48   : > { %812 = vperm.xlu2 %6514, %v709_v14  }
  0x4a   : > { %6493 = vmatpush.bf16.msrb.mxu3 %v5933_v58 }
  0x4b   : > { %558 = vmatmul.bf16.gmra.mxu0 %v5880_v16  ;;  %v1188_v16 = vunpack.c.l.b16 %v1070_v8  ;;  %v5888_v8 = vld [vmem:[%s6651_s12 + $0x50] sm:$0xff] }
  0x4d   : > { %638 = vmatmul.bf16.gmra.mxu3 %v5896_v36  ;;  %817 = vperm.xlu0 %6512, %v710_v48   ;;  %v1476_v22 = vpack.c.b16 %v1188_v16, %v1475_v17 }
  0x4e   : > { %6494 = vmatpush.bf16.msra.mxu3 %v6709_v35 }
  0x4f   : > { %922 = vperm.xlu1 %6513, %v731_v52   ;;  %v1479_v26 = vshrl.u32 %v1476_v22, 16  ;;  %v1482_v27 = vshll.u32 %v1476_v22, 16 }
  0x51   : > { %v1481_v33 = vrot.slane %v1479_v26, 2  ;;  %v1484_v34 = vrot.slane %v1482_v27, 3 }
  0x52   : > { %6495 = vmatpush.bf16.msra.mxu3 %v5931_v38 }
  0x53   : > { %v1485_v49 = vor.u32 %v1484_v34, %v1481_v33 }
  0x55   : > { %822 = vperm.xlu0 %6512, %v711_v57  }
  0x56   : > { %6496 = vmatpush.bf16.msra.mxu3 %v5930_v43 }
  0x57   : > { %827 = vperm.xlu1 %6513, %v712_v61  }
  0x5a   : > { %6497 = vmatpush.bf16.msra.mxu3 %v5929_v47 }
  0x5b   : > { %563 = vmatmul.bf16.gmra.mxu0 %v5881_v20  ;;  %v1187_v20 = vunpack.c.l.b16 %v1127_v13 }
  0x5d   : > { %643 = vmatmul.bf16.gmra.mxu3 %v5897_v55  ;;  %837 = vperm.xlu0 %6512, %v714_v63   ;;  %v1229_v24 = vpack.c.b16 %v1188_v16, %v1187_v20 }
  0x5e   : > { %6498 = vmatpush.bf16.msra.mxu3 %v6753_v50  ;;  %v734_v50 = vld [vmem:[%s9192_s7 + $0x140] sm:$0xf] }
  0x5f   : > { %842 = vperm.xlu1 %6513, %v715_v1   ;;  %v1871_v30 = vshrl.u32 %v1229_v24, 16  ;;  %v1251_v37 = vrot.slane %v1229_v24, 3  ;;  %v732_v1 = vld [vmem:[%s9192_s7 + $0x130] sm:$0xff] }
  0x60   : > { %927 = vperm.xlu2 %6514, %v732_v1  }
  0x61   : > { %v1873_v41 = vrot.slane %v1871_v30, 3 }
  0x62   : > { %6499 = vmatpush.bf16.msra.mxu3 %v5927_v54 }
  0x65   : > { %852 = vperm.xlu0 %6512, %v717_v11  }
  0x66   : > { %6500 = vmatpush.bf16.msra.mxu3 %v5926_v59 }
  0x67   : > { %857 = vperm.xlu1 %6513, %v718_v18   ;;  %v713_v18 = vld [vmem:[%s9192_s7 + $0x98] sm:$0xff] }
  0x68   : > { %832 = vperm.xlu2 %6514, %v713_v18  }
  0x6a   : > { %6501 = vmatpush.bf16.msra.mxu3 %v6788_v62  ;;  %v758_v14 = vpop.permute.xlu2 %757 }
  0x6b   : > { %568 = vmatmul.bf16.gmra.mxu0 %v5882_v25  ;;  %v720_v25 = vld [vmem:[%s9192_s7 + $0xd0] sm:$0xff] }
  0x6d   : > { %648 = vmatmul.bf16.gmra.mxu3 %v470_v5  ;;  %867 = vperm.xlu0 %6512, %v720_v25  }
  0x6f   : > { %872 = vperm.xlu1 %6513, %v721_v28  }
  0x77   : > { %937 = vperm.xlu1 %6513, %v734_v50  }
  0x7b   : > { %573 = vmatmul.bf16.gmra.mxu0 %v5883_v31  ;;  %v1874_v31 = vshll.u32 %v1229_v24, 16 }
  0x7d   : > { %v1876_v47 = vrot.slane %v1874_v31, 4 }
  0x7f   : > { %v738_v12 = vpop.permute.xlu0 %737  ;;  %v1877_v59 = vor.u32 %v1876_v47, %v1873_v41  ;;  %v5889_v47 = vld [vmem:[%s6651_s12 + $0x58] sm:$0xff] }
  0x81   : > { %v748_v43 = vpop.permute.xlu1 %747 }
  0x87   : > { %v743_v42 = vpop.permute.xlu0 %742 }
  0x89   : > { %v753_v13 = vpop.permute.xlu1 %752 }
  0x8b   : > { %578 = vmatmul.bf16.gmra.mxu0 %v5884_v40  ;;  %v733_v40 = vld [vmem:[%s9192_s7 + $0x138] sm:$0xff] }
  0x8c   : > { %932 = vperm.xlu0 %6512, %v733_v40  }
  0x8f   : > { %v768_v34 = vpop.permute.xlu0 %767 }
  0x91   : > { %v6866_v40 = vpop.permute.xlu1 %772 }
  0x9b   : > { %583 = vmatmul.bf16.gmra.mxu0 %v5885_v56 }
  0xa8   : > { %v549_v7 = vpop.f32.mrf.mxu0 }
  0xa9   : > { %v550_v10 = vadd.f32 %v6805_v4, %v549_v7 }
  0xab   : > { %v653_v15 = vmax.f32 %v550_v10, 0.0  ;;  %588 = vmatmul.bf16.gmra.mxu0 %v5886_v6 }
  0xad   : > { %v940_v19 = vmul.f32 %v738_v12, %v653_v15 }
  0xaf   : > { %v987_v21 = vpack.c.bf16 %v940_v19, %v940_v19 }
  0xb0   : > { %v551_v23 = vpop.f32.mrf.mxu0 }
  0xb1   : > { %1028 = vst [vmem:[#allocation2 + $0xc] sm:$0xf] %v987_v21  ;;  %v552_v29 = vadd.f32 %v6805_v4, %v551_v23 }
  0xb3   : > { %v654_v38 = vmax.f32 %v552_v29, 0.0 }
  0xb5   : > { %v941_v55 = vmul.f32 %v743_v42, %v654_v38 }
  0xb8   : > { %v554_v35 = vpop.f32.mrf.mxu0  ;;  %v6827_v36 = vld [vmem:[#allocation2 + $0x8] sm:$0xff] }
  0xb9   : > { %v555_v39 = vadd.f32 %v6805_v4, %v554_v35  ;;  %v1252_v44 = vrot.slane %v6827_v36, 3  ;;  %v1487_v45 = vshrl.u32 %v6827_v36, 16  ;;  %v1490_v46 = vshll.u32 %v6827_v36, 16  ;;  %v6841_v61 = vld [vmem:[#allocation2 + $0xc] sm:$0xf] }
  0xba   : > { %v2288_v2 = vunpack.c.l.b16 %v6841_v61 }
  0xbb   : > { %v655_v48 = vmax.f32 %v555_v39, 0.0  ;;  %593 = vmatmul.bf16.gmra.mxu0 %v5887_v32  ;;  %v1253_v51 = vsel %vm1250_vm0, %v1251_v37, %v1252_v44  ;;  %v1489_v52 = vrot.slane %v1487_v45, 2  ;;  %v1492_v53 = vrot.slane %v1490_v46, 3 }
  0xbc   : > { %v1878_v54 = vrot.slane %v1487_v45, 3  ;;  %1369 = vmatmul.bf16.vlgmr.msra.gmra.mxu1 %v1253_v51  ;;  %v1879_v57 = vrot.slane %v1490_v46, 4  ;;  %v6878_v51 = vpop.permute.xlu0 %782 }
  0xbd   : > { %v942_v56 = vmul.f32 %v748_v43, %v655_v48  ;;  %v1493_v58 = vor.u32 %v1492_v53, %v1489_v52 }
  0xbe   : > { %v1880_v62 = vor.u32 %v1879_v57, %v1878_v54 }
  0xbf   : > { %v6027_v60 = vpack.c.bf16 %v942_v56, %v941_v55  ;;  %v1494_v0 = vsel %vm1477_vm1, %v1485_v49, %v1493_v58 }
  0xc0   : > { %v556_v63 = vpop.f32.mrf.mxu0  ;;  %1743 = vmatmul.bf16.vlgmr.msra.gmra.mxu2 %v1494_v0  ;;  %v6849_v5 = vsel %vm1869_vm2, %v1877_v59, %v1880_v62 }
  0xc1   : > { %6295 = vst [vmem:[#allocation2 + $0x10] sm:$0xff] %v6027_v60   ;;  %v6121_v3 = vunpack.c.l.b16 %v6027_v60  ;;  %v557_v7 = vadd.f32 %v6805_v4, %v556_v63  ;;  %v2359_v20 = vshrl.u32 %v6027_v60, 16  ;;  %v2362_v27 = vshll.u32 %v6027_v60, 16 }
  0xc3   : > { %v6853_v6 = vpack.c.b16 %v6121_v3, %v2288_v2  ;;  %v656_v11 = vmax.f32 %v557_v7, 0.0  ;;  %v2361_v35 = vrot.slane %v2359_v20, 3  ;;  %v2364_v36 = vrot.slane %v2362_v27, 4 }
  0xc4   : > { %v6899_v20 = vpop.permute.xlu0 %887 }
  0xc5   : > { %v943_v25 = vmul.f32 %v753_v13, %v656_v11  ;;  %v6869_v45 = vor.u32 %v2364_v36, %v2361_v35 }
  0xc8   : > { %v559_v9 = vpop.f32.mrf.mxu0  ;;  %v5907_v10 = vld [vmem:[#allocation2 + $0x10] sm:$0xff] }
  0xc9   : > { %v560_v12 = vadd.f32 %v6805_v4, %v559_v9  ;;  %v1254_v15 = vrot.slane %v5907_v10, 3  ;;  %v1496_v16 = vshrl.u32 %v5907_v10, 16  ;;  %v1499_v17 = vshll.u32 %v5907_v10, 16  ;;  %v3985_v10 = vld [vmem:[#allocation2 + $0x14] sm:$0xe] }
  0xcb   : > { %v657_v19 = vmax.f32 %v560_v12, 0.0  ;;  %598 = vmatmul.bf16.gmra.mxu0 %v5888_v8  ;;  %v1255_v21 = vsel %vm1250_vm0, %v1252_v44, %v1254_v15  ;;  %v1498_v22 = vrot.slane %v1496_v16, 2  ;;  %v1501_v23 = vrot.slane %v1499_v17, 3  ;;  %v763_v44 = vpop.permute.xlu2 %762 }
  0xcc   : > { %v1882_v24 = vrot.slane %v1496_v16, 3  ;;  %1374 = vmatmul.bf16.gmra.mxu1 %v1255_v21  ;;  %v1883_v28 = vrot.slane %v1499_v17, 4  ;;  %v716_v21 = vld [vmem:[%s9192_s7 + $0xb0] sm:$0xff] }
  0xcd   : > { %v944_v26 = vmul.f32 %v758_v14, %v657_v19  ;;  %v1502_v29 = vor.u32 %v1501_v23, %v1498_v22  ;;  %v4004_v19 = vunpack.c.l.b16 %v3985_v10  ;;  %v3434_v22 = vld [vmem:[#allocation2 + $0x14] sm:$0xf]  ;;  %847 = vperm.xlu2 %6514, %v716_v21  }
  0xce   : > { %v1884_v31 = vor.u32 %v1883_v28, %v1882_v24 }
  0xcf   : > { %v6032_v30 = vpack.c.bf16 %v944_v26, %v943_v25  ;;  %v1503_v33 = vsel %vm1477_vm1, %v1493_v58, %v1502_v29  ;;  %v6884_v58 = vpop.permute.xlu1 %787 }
  0xd0   : > { %v561_v32 = vpop.f32.mrf.mxu0  ;;  %1748 = vmatmul.bf16.gmra.mxu2 %v1503_v33  ;;  %v6864_v39 = vsel %vm1869_vm2, %v1880_v62, %v1884_v31 }
  0xd1   : > { %6296 = vst [vmem:[#allocation2 + $0x18] sm:$0xff] %v6032_v30   ;;  %v2368_v37 = vshrl.u32 %v6032_v30, 16  ;;  %v2371_v38 = vshll.u32 %v6032_v30, 16  ;;  %v562_v43 = vadd.f32 %v6805_v4, %v561_v32  ;;  %v3533_v30 = vunpack.c.l.b16 %v3434_v22 }
  0xd3   : > { %v2370_v41 = vrot.slane %v2368_v37, 3  ;;  %v2373_v42 = vrot.slane %v2371_v38, 4  ;;  %v658_v52 = vmax.f32 %v562_v43, 0.0  ;;  %v778_v3 = vpop.permute.xlu2 %777 }
  0xd5   : > { %v2374_v46 = vor.u32 %v2373_v42, %v2370_v41  ;;  %v945_v0 = vmul.f32 %v763_v44, %v658_v52  ;;  %v719_v52 = vld [vmem:[%s9192_s7 + $0xc8] sm:$0xff] }
  0xd6   : > { %862 = vperm.xlu2 %6514, %v719_v52  }
  0xd7   : > { %v6874_v48 = vsel %vm1869_vm2, %v6869_v45, %v2374_v46  ;;  %v6904_v23 = vpop.permute.xlu1 %892 }
  0xd8   : > { %v564_v49 = vpop.f32.mrf.mxu0  ;;  %v6876_v50 = vld [vmem:[#allocation2 + $0x18] sm:$0xff] }
  0xd9   : > { %v565_v53 = vadd.f32 %v6805_v4, %v564_v49  ;;  %v1256_v54 = vrot.slane %v6876_v50, 3  ;;  %v1505_v55 = vshrl.u32 %v6876_v50, 16  ;;  %v1508_v56 = vshll.u32 %v6876_v50, 16  ;;  %v3435_v63 = vld [vmem:[#allocation2 + $0x18] sm:$0xf]  ;;  %v629_v49 = vpop.f32.mrf.mxu3 }
  0xda   : > { %v3534_v13 = vunpack.c.l.b16 %v3435_v63  ;;  %v6943_v63 = vpop.permute.xlu0 %792 }
  0xdb   : > { %v659_v57 = vmax.f32 %v565_v53, 0.0  ;;  %603 = vmatmul.bf16.gmra.mxu0 %v5889_v47  ;;  %v1257_v59 = vsel %vm1250_vm0, %v1254_v15, %v1256_v54  ;;  %v1507_v60 = vrot.slane %v1505_v55, 2  ;;  %v1510_v62 = vrot.slane %v1508_v56, 3  ;;  %v6909_v28 = vpop.permute.xlu2 %882  ;;  %v5956_v53 = vld [vmem:[%s9188_s3 + $0xf8] sm:$0xff] }
  0xdc   : > { %1379 = vmatmul.bf16.gmra.mxu1 %v1257_v59  ;;  %v1886_v7 = vrot.slane %v1505_v55, 3  ;;  %v1887_v8 = vrot.slane %v1508_v56, 4  ;;  %v6906_v26 = vpack.c.b16 %v3534_v13, %v4004_v19  ;;  %2607 = vmatpush.bf16.msrb.mxu0 %v5956_v53 }
  0xdd   : > { %v946_v1 = vmul.f32 %v768_v34, %v659_v57  ;;  %v6889_v9 = vor.u32 %v1510_v62, %v1507_v60  ;;  %v6919_v34 = vpack.c.b16 %v3534_v13, %v3533_v30 }
  0xde   : > { %v6891_v12 = vor.u32 %v1887_v8, %v1886_v7  ;;  %v4294_v33 = vshrl.u32 %v6906_v26, 16  ;;  %v4297_v42 = vshll.u32 %v6906_v26, 16 }
  0xdf   : > { %v6037_v11 = vpack.c.bf16 %v946_v1, %v945_v0  ;;  %v1512_v15 = vsel %vm1477_vm1, %v1502_v29, %v6889_v9  ;;  %v3598_v57 = vshll.u32 %v6919_v34, 16  ;;  %v630_v0 = vadd.f32 %v6805_v4, %v629_v49  ;;  %v6947_v8 = vpop.permute.xlu1 %797 }
  0xe0   : > { %v566_v14 = vpop.f32.mrf.mxu0  ;;  %1753 = vmatmul.bf16.gmra.mxu2 %v1512_v15  ;;  %v6897_v18 = vsel %vm1869_vm2, %v1884_v31, %v6891_v12  ;;  %v5890_v31 = vld [vmem:[%s6651_s12 + $0x60] sm:$0xff]  ;;  %v4296_v56 = vrot.slane %v4294_v33, 1 }
  0xe1   : > { %6297 = vst [vmem:[#allocation2 + $0x20] sm:$0xff] %v6037_v11   ;;  %v2377_v16 = vshrl.u32 %v6037_v11, 16  ;;  %v2380_v17 = vshll.u32 %v6037_v11, 16  ;;  %v567_v27 = vadd.f32 %v6805_v4, %v566_v14  ;;  %v4299_v11 = vrot.slane %v4297_v42, 2 }
  0xe2   : > { %v685_v50 = vmax.f32 %v630_v0, 0.0 }
  0xe3   : > { %v2379_v24 = vrot.slane %v2377_v16, 3  ;;  %v2382_v25 = vrot.slane %v2380_v17, 4  ;;  %v660_v38 = vmax.f32 %v567_v27, 0.0  ;;  %v898_v16 = vpop.permute.xlu2 %897  ;;  %v5955_v17 = vld [vmem:[%s9188_s3 + $0xf0] sm:$0xff]  ;;  %v4300_v33 = vor.u32 %v4299_v11, %v4296_v56 }
  0xe4   : > { %v6958_v22 = vmul.f32 %v898_v16, %v685_v50  ;;  %2608 = vmatpush.bf16.msrb.mxu0 %v5955_v17 }
  0xe5   : > { %v6911_v29 = vor.u32 %v2382_v25, %v2379_v24  ;;  %v947_v1 = vmul.f32 %v6866_v40, %v660_v38  ;;  %v722_v38 = vld [vmem:[%s9192_s7 + $0xe0] sm:$0xff] }
  0xe6   : > { %877 = vperm.xlu2 %6514, %v722_v38  }
  0xe7   : > { %v6916_v32 = vsel %vm1869_vm2, %v2374_v46, %v6911_v29 }
  0xe8   : > { %v569_v35 = vpop.f32.mrf.mxu0  ;;  %v6921_v36 = vld [vmem:[#allocation2 + $0x20] sm:$0xff] }
  0xe9   : > { %v6923_v37 = vld [vmem:[#allocation2 + $0x1c] sm:$0xff]  ;;  %v570_v41 = vadd.f32 %v6805_v4, %v569_v35  ;;  %v1258_v43 = vrot.slane %v6921_v36, 3  ;;  %v1514_v44 = vshrl.u32 %v6921_v36, 16  ;;  %v1517_v46 = vshll.u32 %v6921_v36, 16 }
  0xea   : > { %v3603_v55 = vshll.u32 %v6923_v37, 16  ;;  %v3607_v14 = vshrl.u32 %v6923_v37, 16  ;;  %v631_v37 = vpop.f32.mrf.mxu3 }
  0xeb   : > { %v661_v47 = vmax.f32 %v570_v41, 0.0  ;;  %608 = vmatmul.bf16.gmra.mxu0 %v5890_v31  ;;  %v1259_v59 = vsel %vm1250_vm0, %v1256_v54, %v1258_v43  ;;  %v1516_v60 = vrot.slane %v1514_v44, 2  ;;  %v1519_v62 = vrot.slane %v1517_v46, 3  ;;  %v5954_v41 = vld [vmem:[%s9188_s3 + $0xe8] sm:$0xff] }
  0xec   : > { %1384 = vmatmul.bf16.gmra.mxu1 %v1259_v59  ;;  %v1890_v10 = vrot.slane %v1514_v44, 3  ;;  %v1891_v54 = vrot.slane %v1517_v46, 4  ;;  %v4302_v40 = vrot.slane %v3603_v55, 2  ;;  %v4301_v25 = vrot.slane %v3607_v14, 1  ;;  %2609 = vmatpush.bf16.msrb.mxu0 %v5954_v41  ;;  %v5891_v59 = vld [vmem:[%s6651_s12 + $0x68] sm:$0xff] }
  0xed   : > { %v948_v7 = vmul.f32 %v778_v3, %v661_v47  ;;  %v6949_v13 = vor.u32 %v1519_v62, %v1516_v60  ;;  %v3600_v3 = vrot.slane %v3598_v57, 1  ;;  %v632_v52 = vadd.f32 %v6805_v4, %v631_v37  ;;  %v6990_v60 = vpop.permute.xlu1 %802 }
  0xee   : > { %v6960_v24 = vor.u32 %v1891_v54, %v1890_v10  ;;  %v6967_v35 = vor.u32 %v4302_v40, %v4301_v25  ;;  %v903_v25 = vpop.permute.xlu2 %902 }
  0xef   : > { %v6042_v15 = vpack.c.bf16 %v948_v7, %v947_v1  ;;  %v1521_v21 = vsel %vm1477_vm1, %v6889_v9, %v6949_v13  ;;  %v3596_v9 = vshrl.u32 %v6919_v34, 16  ;;  %v3605_v34 = vrot.slane %v3603_v55, 1  ;;  %v5953_v55 = vld [vmem:[%s9188_s3 + $0xe0] sm:$0xff] }
  0xf0   : > { %v571_v19 = vpop.f32.mrf.mxu0  ;;  %1758 = vmatmul.bf16.gmra.mxu2 %v1521_v21  ;;  %v6965_v31 = vsel %vm1869_vm2, %v6891_v12, %v6960_v24  ;;  %v908_v12 = vpop.permute.xlu0 %907  ;;  %v6978_v46 = vsel %vm4292_vm3, %v4300_v33, %v6967_v35  ;;  %v686_v50 = vmax.f32 %v632_v52, 0.0  ;;  %2610 = vmatpush.bf16.msrb.mxu0 %v5953_v55 }
  0xf1   : > { %6298 = vst [vmem:[#allocation2 + $0x28] sm:$0xff] %v6042_v15   ;;  %v2386_v27 = vshrl.u32 %v6042_v15, 16  ;;  %v2389_v30 = vshll.u32 %v6042_v15, 16  ;;  %v3601_v47 = vor.u32 %v3600_v3, %v3596_v9  ;;  %v572_v49 = vadd.f32 %v6805_v4, %v571_v19 }
  0xf2   : > { %9237 = vst [vmem:[#allocation3_spill] sm:$0xff] %v6978_v46  ;;  %v6987_v57 = vor.u32 %v3607_v14, %v3605_v34  ;;  %v634_v17 = vpop.f32.mrf.mxu3  ;;  %v973_v37 = vmul.f32 %v903_v25, %v686_v50  ;;  %v5892_v25 = vld [vmem:[%s6651_s12 + $0x70] sm:$0xff] }
  0xf3   : > { %v2388_v42 = vrot.slane %v2386_v27, 3  ;;  %v2391_v44 = vrot.slane %v2389_v30, 4  ;;  %v6985_v56 = vsel %vm3043_vm4, %v3601_v47, %v3605_v34  ;;  %v662_v10 = vmax.f32 %v572_v49, 0.0  ;;  %v5951_v34 = vld [vmem:[%s9188_s3 + $0xd0] sm:$0xff] }
  0xf4   : > { %9238 = vst [vmem:[#allocation4_spill] sm:$0xff] %v6985_v56  ;;  %v635_v27 = vadd.f32 %v6805_v4, %v634_v17 }
  0xf5   : > { %v6982_v53 = vor.u32 %v2391_v44, %v2388_v42  ;;  %v949_v33 = vmul.f32 %v6878_v51, %v662_v10  ;;  %v7021_v47 = vpop.permute.xlu1 %917 }
  0xf6   : > { %v687_v36 = vmax.f32 %v635_v27, 0.0 }
  0xf7   : > { %v6998_v62 = vsel %vm1869_vm2, %v6911_v29, %v6982_v53  ;;  %v5952_v29 = vld [vmem:[%s9188_s3 + $0xd8] sm:$0xff] }
  0xf8   : > { %v574_v0 = vpop.f32.mrf.mxu0  ;;  %v7000_v1 = vld [vmem:[#allocation2 + $0x28] sm:$0xff]  ;;  %v7015_v30 = vpop.permute.xlu0 %912  ;;  %2611 = vmatpush.bf16.msrb.mxu0 %v5952_v29  ;;  %v974_v52 = vmul.f32 %v908_v12, %v687_v36 }
  0xf9   : > { %v5974_v7 = vld [vmem:[#allocation2 + $0x24] sm:$0xff]  ;;  %v575_v11 = vadd.f32 %v6805_v4, %v574_v0  ;;  %v1260_v54 = vrot.slane %v7000_v1, 3  ;;  %v1523_v14 = vshrl.u32 %v7000_v1, 16  ;;  %v1526_v15 = vshll.u32 %v7000_v1, 16 }
  0xfa   : > { %v3611_v40 = vshll.u32 %v5974_v7, 16  ;;  %v6107_v10 = vpack.c.bf16 %v974_v52, %v973_v37 }
  0xfb   : > { %v663_v16 = vmax.f32 %v575_v11, 0.0  ;;  %613 = vmatmul.bf16.gmra.mxu0 %v5891_v59  ;;  %v1261_v3 = vsel %vm1250_vm0, %v1258_v43, %v1260_v54  ;;  %v1525_v19 = vrot.slane %v1523_v14, 2  ;;  %v1528_v21 = vrot.slane %v1526_v15, 3 }
  0xfc   : > { %1389 = vmatmul.bf16.gmra.mxu1 %v1261_v3  ;;  %v1894_v38 = vrot.slane %v1523_v14, 3  ;;  %v1895_v42 = vrot.slane %v1526_v15, 4  ;;  %v3615_v43 = vshrl.u32 %v5974_v7, 16  ;;  %v4306_v49 = vrot.slane %v3611_v40, 2  ;;  %2612 = vmatpush.bf16.msrb.mxu0 %v5951_v34  ;;  %v636_v14 = vpop.f32.mrf.mxu3  ;;  %6311 = vst [vmem:[#allocation2 + $0x90] sm:$0xff] %v6107_v10  }
  0xfd   : > { %v950_v9 = vmul.f32 %v6884_v58, %v663_v16  ;;  %v7019_v41 = vor.u32 %v1528_v21, %v1525_v19  ;;  %v3613_v29 = vrot.slane %v3611_v40, 1  ;;  %v7056_v27 = vpop.permute.xlu1 %922  ;;  %v637_v34 = vadd.f32 %v6805_v4, %v636_v14 }
  0xfe   : > { %v7029_v59 = vor.u32 %v1895_v42, %v1894_v38  ;;  %v4305_v55 = vrot.slane %v3615_v43, 1 }
  0xff   : > { %v6047_v44 = vpack.c.bf16 %v950_v9, %v949_v33  ;;  %v1530_v58 = vsel %vm1477_vm1, %v6949_v13, %v7019_v41  ;;  %v5950_v13 = vld [vmem:[%s9188_s3 + $0xc8] sm:$0xff]  ;;  %v7053_v19 = vsel %vm3043_vm4, %v6987_v57, %v3613_v29  ;;  %v3617_v21 = vor.u32 %v3615_v43, %v3613_v29  ;;  %v5949_v33 = vld [vmem:[%s9188_s3 + $0xc0] sm:$0xff] }
 0x100   : > { %v576_v51 = vpop.f32.mrf.mxu0  ;;  %1763 = vmatmul.bf16.gmra.mxu2 %v1530_v58  ;;  %v7034_v11 = vsel %vm1869_vm2, %v6960_v24, %v7029_v59  ;;  %v7036_v50 = vor.u32 %v4306_v49, %v4305_v55  ;;  %v7041_v16 = vpop.permute.xlu0 %817  ;;  %2613 = vmatpush.bf16.msrb.mxu0 %v5950_v13  ;;  %9240 = vst [vmem:[#allocation6_spill] sm:$0xff] %v7053_v19  ;;  %v688_v29 = vmax.f32 %v637_v34, 0.0 }
 0x101   : > { %6299 = vst [vmem:[#allocation2 + $0x30] sm:$0xff] %v6047_v44   ;;  %v2395_v0 = vshrl.u32 %v6047_v44, 16  ;;  %v2398_v7 = vshll.u32 %v6047_v44, 16  ;;  %v577_v24 = vadd.f32 %v6805_v4, %v576_v51 }
 0x102   : > { %v7046_v17 = vsel %vm4292_vm3, %v6967_v35, %v7036_v50 }
 0x103   : > { %v2397_v12 = vrot.slane %v2395_v0, 3  ;;  %v2400_v15 = vrot.slane %v2398_v7, 4  ;;  %9239 = vst [vmem:[#allocation5_spill] sm:$0xff] %v7046_v17  ;;  %v664_v38 = vmax.f32 %v577_v24, 0.0 }
 0x104   : > { %2614 = vmatpush.bf16.msrb.mxu0 %v5949_v33 }
 0x105   : > { %v7049_v3 = vor.u32 %v2400_v15, %v2397_v12  ;;  %v951_v0 = vmul.f32 %v6943_v63, %v664_v38  ;;  %v7084_v24 = vpop.permute.xlu1 %827 }
 0x107   : > { %v7064_v35 = vsel %vm1869_vm2, %v6982_v53, %v7049_v3  ;;  %v639_v53 = vpop.f32.mrf.mxu3 }
 0x108   : > { %v579_v40 = vpop.f32.mrf.mxu0  ;;  %v7066_v9 = vld [vmem:[#allocation2 + $0x30] sm:$0xff]  ;;  %v7078_v55 = vpop.permute.xlu0 %822 }
 0x109   : > { %v5975_v37 = vld [vmem:[#allocation2 + $0x2c] sm:$0xff]  ;;  %v580_v57 = vadd.f32 %v6805_v4, %v579_v40  ;;  %v1262_v36 = vrot.slane %v7066_v9, 3  ;;  %v1532_v42 = vshrl.u32 %v7066_v9, 16  ;;  %v1535_v43 = vshll.u32 %v7066_v9, 16 }
 0x10a   : > { %v3619_v49 = vshll.u32 %v5975_v37, 16  ;;  %v3623_v12 = vshrl.u32 %v5975_v37, 16  ;;  %v808_v37 = vpop.permute.xlu2 %807 }
 0x10b   : > { %v665_v44 = vmax.f32 %v580_v57, 0.0  ;;  %618 = vmatmul.bf16.gmra.mxu0 %v5892_v25  ;;  %v1263_v51 = vsel %vm1250_vm0, %v1260_v54, %v1262_v36  ;;  %v1534_v58 = vrot.slane %v1532_v42, 2  ;;  %v1537_v52 = vrot.slane %v1535_v43, 3 }
 0x10c   : > { %1394 = vmatmul.bf16.gmra.mxu1 %v1263_v51  ;;  %v1898_v10 = vrot.slane %v1532_v42, 3  ;;  %v1899_v13 = vrot.slane %v1535_v43, 4  ;;  %v4310_v54 = vrot.slane %v3619_v49, 2  ;;  %v4309_v33 = vrot.slane %v3623_v12, 1 }
 0x10d   : > { %v952_v7 = vmul.f32 %v6947_v8, %v665_v44  ;;  %v7082_v14 = vor.u32 %v1537_v52, %v1534_v58  ;;  %v640_v8 = vadd.f32 %v6805_v4, %v639_v53  ;;  %v975_v43 = vmul.f32 %v7015_v30, %v688_v29 }
 0x10e   : > { %v7086_v1 = vor.u32 %v1899_v13, %v1898_v10  ;;  %v7097_v42 = vor.u32 %v4310_v54, %v4309_v33  ;;  %v3621_v52 = vrot.slane %v3619_v49, 1  ;;  %v7117_v54 = vpop.permute.xlu1 %842 }
 0x10f   : > { %v6052_v15 = vpack.c.bf16 %v952_v7, %v951_v0  ;;  %v1539_v63 = vsel %vm1477_vm1, %v7019_v41, %v7082_v14  ;;  %v689_v44 = vmax.f32 %v640_v8, 0.0  ;;  %v641_v41 = vpop.f32.mrf.mxu3  ;;  %v2186_v7 = vld [vmem:[#allocation2 + $0x8] sm:$0x8] }
 0x110   : > { %v581_v25 = vpop.f32.mrf.mxu0  ;;  %1768 = vmatmul.bf16.gmra.mxu2 %v1539_v63  ;;  %v7095_v57 = vsel %vm1869_vm2, %v7029_v59, %v7086_v1  ;;  %v7100_v58 = vpop.permute.xlu0 %837  ;;  %v7105_v53 = vsel %vm4292_vm3, %v7036_v50, %v7097_v42  ;;  %v7112_v30 = vsel %vm3043_vm4, %v3617_v21, %v3621_v52  ;;  %v7114_v13 = vor.u32 %v3623_v12, %v3621_v52 }
 0x111   : > { %6300 = vst [vmem:[#allocation2 + $0x38] sm:$0xff] %v6052_v15   ;;  %v2404_v40 = vshrl.u32 %v6052_v15, 16  ;;  %v2407_v38 = vshll.u32 %v6052_v15, 16  ;;  %v582_v59 = vadd.f32 %v6805_v4, %v581_v25  ;;  %v976_v0 = vmul.f32 %v7021_v47, %v689_v44  ;;  %v5893_v15 = vld [vmem:[%s6651_s12 + $0x78] sm:$0xff] }
 0x112   : > { %9241 = vst [vmem:[#allocation7_spill] sm:$0xff] %v7105_v53  ;;  %v2287_v47 = vunpack.c.l.b16 %v2186_v7 }
 0x113   : > { %v2406_v34 = vrot.slane %v2404_v40, 3  ;;  %v2409_v51 = vrot.slane %v2407_v38, 4  ;;  %9242 = vst [vmem:[#allocation8_spill] sm:$0xff] %v7112_v30  ;;  %v6112_v29 = vpack.c.bf16 %v976_v0, %v975_v43  ;;  %v666_v33 = vmax.f32 %v582_v59, 0.0  ;;  %v7136_v59 = vpop.permute.xlu2 %812 }
 0x114   : > { %v2329_v0 = vpack.c.b16 %v2288_v2, %v2287_v47 }
 0x115   : > { %v7109_v10 = vor.u32 %v2409_v51, %v2406_v34  ;;  %6312 = vst [vmem:[#allocation2 + $0x98] sm:$0xff] %v6112_v29  }
 0x117   : > { %v7122_v50 = vsel %vm1869_vm2, %v7049_v3, %v7109_v10  ;;  %v642_v3 = vadd.f32 %v6805_v4, %v641_v41  ;;  %v644_v43 = vpop.f32.mrf.mxu3 }
 0x118   : > { %v584_v49 = vpop.f32.mrf.mxu0  ;;  %v7124_v25 = vld [vmem:[#allocation2 + $0x38] sm:$0xff]  ;;  %v7140_v7 = vpop.permute.xlu0 %852 }
 0x119   : > { %v5976_v63 = vld [vmem:[#allocation2 + $0x34] sm:$0xff]  ;;  %v585_v21 = vadd.f32 %v6805_v4, %v584_v49  ;;  %v9194_v12 = vrot.slane %v7124_v25, 3  ;;  %v1541_v8 = vshrl.u32 %v7124_v25, 16  ;;  %v1544_v40 = vshll.u32 %v7124_v25, 16 }
 0x11a   : > { %v3627_v44 = vshll.u32 %v5976_v63, 16  ;;  %v3631_v9 = vshrl.u32 %v5976_v63, 16 }
 0x11b   : > { %v667_v38 = vmax.f32 %v585_v21, 0.0  ;;  %623 = vmatmul.bf16.gmra.mxu0 %v5893_v15  ;;  %v1265_v34 = vsel %vm1250_vm0, %v1262_v36, %v9194_v12  ;;  %v1543_v51 = vrot.slane %v1541_v8, 2  ;;  %v1546_v52 = vrot.slane %v1544_v40, 3  ;;  %v7145_v12 = vpop.permute.xlu1 %857 }
 0x11c   : > { %v953_v15 = vmul.f32 %v6990_v60, %v666_v33  ;;  %1399 = vmatmul.bf16.gmra.mxu1 %v1265_v34  ;;  %v1902_v29 = vrot.slane %v1541_v8, 3  ;;  %v1903_v49 = vrot.slane %v1544_v40, 4  ;;  %v690_v36 = vmax.f32 %v642_v3, 0.0 }
 0x11d   : > { %v954_v41 = vmul.f32 %v808_v37, %v667_v38  ;;  %v7143_v21 = vor.u32 %v1546_v52, %v1543_v51  ;;  %v4314_v56 = vrot.slane %v3627_v44, 2  ;;  %v2351_v60 = vshrl.u32 %v2329_v0, 16 }
 0x11e   : > { %v7147_v19 = vor.u32 %v1903_v49, %v1902_v29  ;;  %v2354_v37 = vshll.u32 %v2329_v0, 16  ;;  %v4313_v47 = vrot.slane %v3631_v9, 1  ;;  %v645_v33 = vadd.f32 %v6805_v4, %v644_v43 }
 0x11f   : > { %v6057_v30 = vpack.c.bf16 %v954_v41, %v953_v15  ;;  %v1548_v2 = vsel %vm1477_vm1, %v7082_v14, %v7143_v21  ;;  %v977_v3 = vmul.f32 %v7056_v27, %v690_v36  ;;  %v646_v14 = vpop.f32.mrf.mxu3  ;;  %v2353_v0 = vrot.slane %v2351_v60, 3  ;;  %v928_v41 = vpop.permute.xlu2 %927 }
 0x120   : > { %v586_v61 = vpop.f32.mrf.mxu0  ;;  %1773 = vmatmul.bf16.gmra.mxu2 %v1548_v2  ;;  %v7156_v40 = vsel %vm1869_vm2, %v7086_v1, %v7147_v19  ;;  %v7158_v38 = vor.u32 %v4314_v56, %v4313_v47  ;;  %v691_v34 = vmax.f32 %v645_v33, 0.0  ;;  %v2356_v15 = vrot.slane %v2354_v37, 4  ;;  %v7161_v29 = vpop.permute.xlu0 %867 }
 0x121   : > { %6301 = vst [vmem:[#allocation2 + $0x40] sm:$0xff] %v6057_v30   ;;  %v2413_v63 = vshrl.u32 %v6057_v30, 16  ;;  %v2416_v8 = vshll.u32 %v6057_v30, 16  ;;  %v3629_v1 = vrot.slane %v3627_v44, 1  ;;  %v587_v56 = vadd.f32 %v6805_v4, %v586_v61 }
 0x122   : > { %9243 = vst [vmem:[#allocation9_spill] sm:$0xff] %v7156_v40  ;;  %v7166_v30 = vsel %vm4292_vm3, %v7097_v42, %v7158_v38  ;;  %v978_v43 = vmul.f32 %v928_v41, %v691_v34  ;;  %v647_v27 = vadd.f32 %v6805_v4, %v646_v14  ;;  %v2357_v61 = vor.u32 %v2356_v15, %v2353_v0 }
 0x123   : > { %v2415_v51 = vrot.slane %v2413_v63, 3  ;;  %v2418_v52 = vrot.slane %v2416_v8, 4  ;;  %9244 = vst [vmem:[#allocation10_spill] sm:$0xff] %v7166_v30  ;;  %v7174_v36 = vsel %vm3043_vm4, %v7114_v13, %v3629_v1  ;;  %v3633_v2 = vor.u32 %v3631_v9, %v3629_v1  ;;  %v7176_v37 = vpop.permute.xlu1 %872 }
 0x124   : > { %9245 = vst [vmem:[#allocation11_spill] sm:$0xff] %v7174_v36  ;;  %v6117_v60 = vpack.c.bf16 %v978_v43, %v977_v3  ;;  %v668_v33 = vmax.f32 %v587_v56, 0.0  ;;  %v692_v8 = vmax.f32 %v647_v27, 0.0  ;;  %v2366_v9 = vsel %vm1869_vm2, %v2357_v61, %v6869_v45 }
 0x125   : > { %v7170_v49 = vor.u32 %v2418_v52, %v2415_v51  ;;  %v9246_v52 = vrot.slane %v7124_v25, 3 }
 0x126   : > { %6313 = vst [vmem:[#allocation2 + $0xa0] sm:$0xff] %v6117_v60   ;;  %v955_v56 = vmul.f32 %v7136_v59, %v668_v33 }
 0x127   : > { %v7181_v42 = vsel %vm1869_vm2, %v7109_v10, %v7170_v49  ;;  %v649_v51 = vpop.f32.mrf.mxu3 }
 0x128   : > { %v589_v44 = vpop.f32.mrf.mxu0  ;;  %v7183_v47 = vld [vmem:[#allocation2 + $0x40] sm:$0xff]  ;;  %v650_v1 = vadd.f32 %v6805_v4, %v649_v51  ;;  %v933_v45 = vpop.permute.xlu0 %932 }
 0x129   : > { %v590_v63 = vadd.f32 %v6805_v4, %v589_v44  ;;  %v5977_v13 = vld [vmem:[#allocation2 + $0x3c] sm:$0xff]  ;;  %v9195_v3 = vrot.slane %v7183_v47, 3  ;;  %v1550_v34 = vshrl.u32 %v7183_v47, 16  ;;  %v1553_v10 = vshll.u32 %v7183_v47, 16 }
 0x12a   : > { %v979_v27 = vmul.f32 %v933_v45, %v692_v8  ;;  %v3635_v60 = vshll.u32 %v5977_v13, 16  ;;  %v693_v61 = vmax.f32 %v650_v1, 0.0 }
 0x12b   : > { %v669_v14 = vmax.f32 %v590_v63, 0.0  ;;  %2615 = vmatmul.bf16.vlgmr.msrb.gmra.mxu0 %v2366_v9  ;;  %v1267_v0 = vsel %vm1250_vm0, %v9246_v52, %v9195_v3  ;;  %v1552_v15 = vrot.slane %v1550_v34, 2  ;;  %v1555_v41 = vrot.slane %v1553_v10, 3  ;;  %v938_v52 = vpop.permute.xlu1 %937 }
 0x12c   : > { %1404 = vmatmul.bf16.gmra.mxu1 %v1267_v0  ;;  %v1906_v63 = vrot.slane %v1550_v34, 3  ;;  %v1907_v9 = vrot.slane %v1553_v10, 4  ;;  %v1026_v36 = vpack.c.bf16 %v979_v27, %v979_v27  ;;  %v980_v30 = vmul.f32 %v938_v52, %v693_v61 }
 0x12d   : > { %v956_v43 = vmul.f32 %v7041_v16, %v669_v14  ;;  %v7199_v44 = vor.u32 %v1555_v41, %v1552_v15  ;;  %v3639_v16 = vshrl.u32 %v5977_v13, 16  ;;  %v4318_v14 = vrot.slane %v3635_v60, 2 }
 0x12e   : > { %v7204_v59 = vor.u32 %v1907_v9, %v1906_v63  ;;  %1067 = vst [vmem:[#allocation2 + $0xa8] sm:$0xf] %v1026_v36  ;;  %v1027_v34 = vpack.c.bf16 %v980_v30, %v980_v30  ;;  %v3637_v13 = vrot.slane %v3635_v60, 1  ;;  %v7230_v60 = vld [vmem:[#allocation2 + $0xa0] sm:$0xf] }
 0x12f   : > { %v6062_v25 = vpack.c.bf16 %v956_v43, %v955_v56  ;;  %v1557_v51 = vsel %vm1477_vm1, %v7143_v21, %v7199_v44  ;;  %v4317_v0 = vrot.slane %v3639_v16, 1  ;;  %v651_v21 = vpop.f32.mrf.mxu3 }
 0x130   : > { %v591_v3 = vpop.f32.mrf.mxu0  ;;  %1778 = vmatmul.bf16.gmra.mxu2 %v1557_v51  ;;  %v7209_v10 = vsel %vm1869_vm2, %v7147_v19, %v7204_v59  ;;  %1068 = vst [vmem:[#allocation2 + $0xac] sm:$0x3] %v1027_v34  ;;  %v7220_v36 = vsel %vm3043_vm4, %v3633_v2, %v3637_v13  ;;  %v7222_v19 = vor.u32 %v3639_v16, %v3637_v13  ;;  %v7242_v51 = vld [vmem:[#allocation2 + $0x90] sm:$0xff]  ;;  %v7244_v16 = vld [vmem:[#allocation2 + $0x98] sm:$0xff] }
 0x131   : > { %6302 = vst [vmem:[#allocation2 + $0x48] sm:$0xff] %v6062_v25   ;;  %v2422_v33 = vshrl.u32 %v6062_v25, 16  ;;  %v2425_v8 = vshll.u32 %v6062_v25, 16  ;;  %v7211_v1 = vor.u32 %v4318_v14, %v4317_v0  ;;  %v592_v45 = vadd.f32 %v6805_v4, %v591_v3  ;;  %v1110_v3 = vld [vmem:[#allocation2 + $0xa4] sm:$0x1] }
 0x132   : > { %9247 = vst [vmem:[#allocation12_spill] sm:$0xff] %v7209_v10  ;;  %v9198_v13 = vshrl.u32 %v7242_v51, 16 }
 0x133   : > { %v2424_v15 = vrot.slane %v2422_v33, 3  ;;  %v2427_v41 = vrot.slane %v2425_v8, 4  ;;  %v7217_v30 = vsel %vm4292_vm3, %v7158_v38, %v7211_v1  ;;  %9249 = vst [vmem:[#allocation14_spill] sm:$0xff] %v7220_v36  ;;  %v670_v4 = vmax.f32 %v592_v45, 0.0  ;;  %v7235_v38 = vld [vmem:[%s9187_s2] ss:$0 sm:$0xff] }
 0x134   : > { %9248 = vst [vmem:[#allocation13_spill] sm:$0xff] %v7217_v30  ;;  %v9196_v33 = vunpack.c.l.b16 %v7230_v60  ;;  %v9250_v8 = vrot.slane %v7183_v47, 3  ;;  %v9197_v45 = vshll.u32 %v7242_v51, 16 }
 0x135   : > { %v2428_v56 = vor.u32 %v2427_v41, %v2424_v15  ;;  %v1228_v15 = vunpack.c.l.b16 %v1110_v3 }
 0x137   : > { %v7226_v43 = vsel %vm1869_vm2, %v7170_v49, %v2428_v56  ;;  %v7265_v3 = vpack.c.b16 %v1228_v15, %v9196_v33 }
 0x138   : > { %v594_v27 = vpop.f32.mrf.mxu0  ;;  %v7228_v61 = vld [vmem:[#allocation2 + $0x48] sm:$0xff] }
 0x139   : > { %v595_v2 = vadd.f32 %v7235_v38, %v594_v27  ;;  %v1370_v63 = vpop.f32.mrf.mxu1  ;;  %v1268_v9 = vrot.slane %v7228_v61, 3  ;;  %v9202_v49 = vshrl.u32 %v7228_v61, 16  ;;  %v9200_v25 = vshll.u32 %v7228_v61, 16 }
 0x13a   : > { %v9199_v27 = vshrl.u32 %v7244_v16, 16  ;;  %v9253_v10 = vshrl.u32 %v7228_v61, 16 }
 0x13b   : > { %v671_v52 = vmax.f32 %v595_v2, 0.0  ;;  %2620 = vmatmul.bf16.gmra.mxu0 %v6874_v48  ;;  %v1269_v14 = vsel %vm1250_vm0, %v9250_v8, %v1268_v9  ;;  %v1561_v34 = vrot.slane %v9202_v49, 2  ;;  %v1564_v0 = vrot.slane %v9200_v25, 3 }
 0x13c   : > { %v957_v48 = vmul.f32 %v7078_v55, %v670_v4  ;;  %1409 = vmatmul.bf16.gmra.mxu1 %v1269_v14  ;;  %v1642_v55 = vrot.slane %v9198_v13, 2 }
 0x13d   : > { %v958_v41 = vmul.f32 %v7084_v24, %v671_v52  ;;  %v1565_v21 = vor.u32 %v1564_v0, %v1561_v34  ;;  %v1645_v24 = vrot.slane %v9197_v45, 3  ;;  %v1651_v34 = vrot.slane %v9199_v27, 2 }
 0x13e   : > { %v1658_v45 = vshrl.u32 %v7265_v3, 16 }
 0x13f   : > { %v6067_v47 = vpack.c.bf16 %v958_v41, %v957_v48  ;;  %v1566_v8 = vsel %vm1477_vm1, %v7199_v44, %v1565_v21  ;;  %v9201_v44 = vshll.u32 %v7244_v16, 16  ;;  %v7274_v41 = vor.u32 %v1645_v24, %v1642_v55 }
 0x140   : > { %v596_v2 = vpop.f32.mrf.mxu0  ;;  %1783 = vmatmul.bf16.gmra.mxu2 %v1566_v8  ;;  %v1660_v25 = vrot.slane %v1658_v45, 2 }
 0x141   : > { %6303 = vst [vmem:[#allocation2 + $0x50] sm:$0xff] %v6067_v47   ;;  %v2431_v4 = vshrl.u32 %v6067_v47, 16  ;;  %v2434_v52 = vshll.u32 %v6067_v47, 16  ;;  %v1372_v14 = vpop.f32.mrf.mxu1  ;;  %v1654_v33 = vrot.slane %v9201_v44, 3  ;;  %v597_v8 = vadd.f32 %v7235_v38, %v596_v2  ;;  %v5964_v47 = vld [vmem:[%s9188_s3 + $0x138] sm:$0xff] }
 0x142   : > { %2868 = vmatpush.bf16.msrb.mxu1 %v5964_v47 }
 0x143   : > { %v2433_v0 = vrot.slane %v2431_v4, 3  ;;  %v2436_v48 = vrot.slane %v2434_v52, 4  ;;  %v1744_v15 = vpop.f32.mrf.mxu2  ;;  %v1661_v4 = vshll.u32 %v7265_v3, 16  ;;  %v1655_v52 = vor.u32 %v1654_v33, %v1651_v34 }
 0x144   : > { %v7280_v13 = vadd.f32 %v1744_v15, %v1370_v63  ;;  %v672_v2 = vmax.f32 %v597_v8, 0.0 }
 0x145   : > { %v2437_v27 = vor.u32 %v2436_v48, %v2433_v0  ;;  %v1663_v24 = vrot.slane %v1661_v4, 3  ;;  %v7293_v63 = vsel %vm1477_vm1, %v7274_v41, %v1655_v52  ;;  %v833_v48 = vpop.permute.xlu2 %832 }
 0x146   : > { %9251 = vst [vmem:[#allocation15_spill] sm:$0xff] %v7280_v13  ;;  %v959_v36 = vmul.f32 %v833_v48, %v672_v2  ;;  %v7313_v13 = vld [vmem:[#allocation2 + $0xa8] sm:$0xf]  ;;  %v1910_v2 = vrot.slane %v9253_v10, 3 }
 0x147   : > { %v7287_v55 = vsel %vm1869_vm2, %v2428_v56, %v2437_v27  ;;  %v7296_v0 = vor.u32 %v1663_v24, %v1660_v25 }
 0x148   : > { %v599_v44 = vpop.f32.mrf.mxu0  ;;  %v7289_v49 = vld [vmem:[#allocation2 + $0x50] sm:$0xff] }
 0x149   : > { %v600_v15 = vadd.f32 %v7235_v38, %v599_v44  ;;  %v1375_v33 = vpop.f32.mrf.mxu1  ;;  %v1270_v45 = vrot.slane %v7289_v49, 3  ;;  %v1568_v56 = vshrl.u32 %v7289_v49, 16  ;;  %v1571_v34 = vshll.u32 %v7289_v49, 16 }
 0x14a   : > { %v7304_v4 = vsel %vm1477_vm1, %v1655_v52, %v7296_v0 }
 0x14b   : > { %v673_v47 = vmax.f32 %v600_v15, 0.0  ;;  %2625 = vmatmul.bf16.gmra.mxu0 %v6916_v32  ;;  %v1746_v8 = vpop.f32.mrf.mxu2  ;;  %v1271_v25 = vsel %vm1250_vm0, %v1268_v9, %v1270_v45  ;;  %v1570_v44 = vrot.slane %v1568_v56, 2  ;;  %v1573_v24 = vrot.slane %v1571_v34, 3 }
 0x14c   : > { %v7310_v53 = vadd.f32 %v1746_v8, %v1372_v14  ;;  %1414 = vmatmul.bf16.gmra.mxu1 %v1271_v25  ;;  %v6332_v14 = vld [vmem:[#allocation2 + $0xa0] sm:$0xff]   ;;  %v1914_v10 = vrot.slane %v1568_v56, 3 }
 0x14d   : > { %v960_v30 = vmul.f32 %v7100_v58, %v673_v47  ;;  %v1574_v49 = vor.u32 %v1573_v24, %v1570_v44  ;;  %v6194_v24 = vunpack.c.h.b16 %v6332_v14 }
 0x14e   : > { %9252 = vst [vmem:[#allocation16_spill] sm:$0xff] %v7310_v53 }
 0x14f   : > { %v6072_v15 = vpack.c.bf16 %v960_v30, %v959_v36  ;;  %v1575_v17 = vsel %vm1477_vm1, %v1565_v21, %v1574_v49  ;;  %v9254_v30 = vshll.u32 %v7228_v61, 16  ;;  %v9257_v61 = vunpack.c.l.b16 %v7313_v13 }
 0x150   : > { %v601_v32 = vpop.f32.mrf.mxu0  ;;  %1788 = vmatmul.bf16.gmra.mxu2 %v1575_v17 }
 0x151   : > { %6304 = vst [vmem:[#allocation2 + $0x58] sm:$0xff] %v6072_v15   ;;  %v2440_v52 = vshrl.u32 %v6072_v15, 16  ;;  %v2443_v46 = vshll.u32 %v6072_v15, 16  ;;  %v1377_v9 = vpop.f32.mrf.mxu1  ;;  %v1911_v36 = vrot.slane %v9254_v30, 4  ;;  %v602_v21 = vadd.f32 %v7235_v38, %v601_v32 }
 0x152   : > { %v7334_v30 = vpack.c.b16 %v9257_v61, %v6194_v24 }
 0x153   : > { %v2442_v48 = vrot.slane %v2440_v52, 3  ;;  %v2445_v58 = vrot.slane %v2443_v46, 4  ;;  %v1749_v47 = vpop.f32.mrf.mxu2  ;;  %v1912_v44 = vor.u32 %v1911_v36, %v1910_v2  ;;  %v1915_v2 = vrot.slane %v1571_v34, 4 }
 0x154   : > { %v7321_v17 = vadd.f32 %v1749_v47, %v1375_v33  ;;  %9258 = vst [vmem:[#allocation19_spill] sm:$0xff] %v7334_v30  ;;  %v674_v33 = vmax.f32 %v602_v21, 0.0 }
 0x155   : > { %v2446_v25 = vor.u32 %v2445_v58, %v2442_v48  ;;  %v7330_v8 = vsel %vm1869_vm2, %v7204_v59, %v1912_v44  ;;  %v848_v58 = vpop.permute.xlu2 %847  ;;  %v1916_v59 = vor.u32 %v1915_v2, %v1914_v10 }
 0x156   : > { %9255 = vst [vmem:[#allocation17_spill] sm:$0xff] %v7321_v17  ;;  %v961_v34 = vmul.f32 %v7117_v54, %v674_v33 }
 0x157   : > { %v7324_v15 = vsel %vm1869_vm2, %v2437_v27, %v2446_v25  ;;  %9256 = vst [vmem:[#allocation18_spill] sm:$0xff] %v7330_v8  ;;  %v7348_v53 = vsel %vm1869_vm2, %v1912_v44, %v1916_v59 }
 0x158   : > { %v604_v52 = vpop.f32.mrf.mxu0  ;;  %v7326_v46 = vld [vmem:[#allocation2 + $0x58] sm:$0xff]  ;;  %9260 = vst [vmem:[#allocation21_spill] sm:$0xff] %v7348_v53 }
 0x159   : > { %v605_v32 = vadd.f32 %v7235_v38, %v604_v52  ;;  %v1380_v48 = vpop.f32.mrf.mxu1  ;;  %v9203_v27 = vrot.slane %v7326_v46, 3  ;;  %v1577_v56 = vshrl.u32 %v7326_v46, 16  ;;  %v1580_v14 = vshll.u32 %v7326_v46, 16  ;;  %v7414_v8 = vld [vmem:[#allocation2 + $0x54] sm:$0xff] }
 0x15b   : > { %v675_v47 = vmax.f32 %v605_v32, 0.0  ;;  %2630 = vmatmul.bf16.gmra.mxu0 %v6998_v62  ;;  %v1751_v36 = vpop.f32.mrf.mxu2  ;;  %v1273_v21 = vsel %vm1250_vm0, %v1270_v45, %v9203_v27  ;;  %v1579_v24 = vrot.slane %v1577_v56, 2  ;;  %v1582_v52 = vrot.slane %v1580_v14, 3  ;;  %v7352_v62 = vld [vmem:[#allocation2 + $0x44] sm:$0xff]  ;;  %v7356_v27 = vld [vmem:[#allocation2 + $0x4c] sm:$0xff] }
 0x15c   : > { %v7345_v17 = vadd.f32 %v1751_v36, %v1377_v9  ;;  %1419 = vmatmul.bf16.gmra.mxu1 %v1273_v21  ;;  %v1918_v30 = vrot.slane %v1577_v56, 3  ;;  %v1919_v54 = vrot.slane %v1580_v14, 4  ;;  %v9205_v36 = vshrl.u32 %v7352_v62, 16 }
 0x15d   : > { %v962_v61 = vmul.f32 %v848_v58, %v675_v47  ;;  %v7350_v32 = vor.u32 %v1582_v52, %v1579_v24  ;;  %v9206_v47 = vshll.u32 %v7352_v62, 16 }
 0x15e   : > { %9259 = vst [vmem:[#allocation20_spill] sm:$0xff] %v7345_v17  ;;  %v7358_v44 = vor.u32 %v1919_v54, %v1918_v30  ;;  %v4321_v56 = vrot.slane %v9205_v36, 1  ;;  %v9207_v30 = vshll.u32 %v7356_v27, 16  ;;  %v9263_v54 = vshrl.u32 %v7242_v51, 16 }
 0x15f   : > { %v6077_v10 = vpack.c.bf16 %v962_v61, %v961_v34  ;;  %v1584_v45 = vsel %vm1477_vm1, %v1574_v49, %v7350_v32  ;;  %v4322_v14 = vrot.slane %v9206_v47, 2 }
 0x160   : > { %v606_v2 = vpop.f32.mrf.mxu0  ;;  %1793 = vmatmul.bf16.gmra.mxu2 %v1584_v45  ;;  %v7364_v49 = vsel %vm1869_vm2, %v1916_v59, %v7358_v44 }
 0x161   : > { %6305 = vst [vmem:[#allocation2 + $0x60] sm:$0xff] %v6077_v10   ;;  %v2449_v9 = vshrl.u32 %v6077_v10, 16  ;;  %v2452_v33 = vshll.u32 %v6077_v10, 16  ;;  %v1382_v58 = vpop.f32.mrf.mxu1  ;;  %v607_v34 = vadd.f32 %v7235_v38, %v606_v2  ;;  %v5963_v10 = vld [vmem:[%s9188_s3 + $0x130] sm:$0xff]  ;;  %v4323_v59 = vor.u32 %v4322_v14, %v4321_v56 }
 0x162   : > { %9261 = vst [vmem:[#allocation22_spill] sm:$0xff] %v7364_v49  ;;  %2869 = vmatpush.bf16.msrb.mxu1 %v5963_v10 }
 0x163   : > { %v2451_v21 = vrot.slane %v2449_v9, 3  ;;  %v2454_v24 = vrot.slane %v2452_v33, 4  ;;  %v1754_v52 = vpop.f32.mrf.mxu2  ;;  %v1946_v9 = vrot.slane %v9263_v54, 3  ;;  %v9264_v33 = vshll.u32 %v7242_v51, 16 }
 0x164   : > { %v7372_v61 = vadd.f32 %v1754_v52, %v1380_v48  ;;  %v9208_v48 = vshrl.u32 %v7356_v27, 16  ;;  %v4326_v51 = vrot.slane %v9207_v30, 2  ;;  %v676_v56 = vmax.f32 %v607_v34, 0.0 }
 0x165   : > { %v7377_v45 = vor.u32 %v2454_v24, %v2451_v21  ;;  %v1947_v36 = vrot.slane %v9264_v33, 4  ;;  %v7392_v21 = vsel %vm4292_vm3, %v7211_v1, %v4323_v59  ;;  %v9267_v34 = vshll.u32 %v7244_v16, 16 }
 0x166   : > { %9262 = vst [vmem:[#allocation23_spill] sm:$0xff] %v7372_v61 }
 0x167   : > { %v7385_v47 = vsel %vm1869_vm2, %v2446_v25, %v7377_v45  ;;  %9265 = vst [vmem:[#allocation24_spill] sm:$0xff] %v7392_v21  ;;  %v7394_v24 = vor.u32 %v1947_v36, %v1946_v9  ;;  %v4325_v25 = vrot.slane %v9208_v48, 1  ;;  %v9266_v9 = vshrl.u32 %v7244_v16, 16 }
 0x168   : > { %v609_v2 = vpop.f32.mrf.mxu0  ;;  %v7388_v52 = vld [vmem:[#allocation2 + $0x60] sm:$0xff]  ;;  %v9268_v48 = vrot.slane %v7326_v46, 3 }
 0x169   : > { %v610_v14 = vadd.f32 %v7235_v38, %v609_v2  ;;  %v1385_v10 = vpop.f32.mrf.mxu1  ;;  %v9209_v54 = vrot.slane %v7388_v52, 3  ;;  %v1586_v33 = vshrl.u32 %v7388_v52, 16  ;;  %v1589_v61 = vshll.u32 %v7388_v52, 16 }
 0x16a   : > { %v4327_v36 = vor.u32 %v4326_v51, %v4325_v25  ;;  %v1950_v30 = vrot.slane %v9266_v9, 3  ;;  %v1951_v2 = vrot.slane %v9267_v34, 4 }
 0x16b   : > { %v677_v1 = vmax.f32 %v610_v14, 0.0  ;;  %2635 = vmatmul.bf16.gmra.mxu0 %v7064_v35  ;;  %v1756_v21 = vpop.f32.mrf.mxu2  ;;  %v1275_v49 = vsel %vm1250_vm0, %v9268_v48, %v9209_v54  ;;  %v1588_v17 = vrot.slane %v1586_v33, 2  ;;  %v1591_v53 = vrot.slane %v1589_v61, 3 }
 0x16c   : > { %v963_v35 = vmul.f32 %v7140_v7, %v676_v56  ;;  %v7418_v14 = vadd.f32 %v1756_v21, %v1382_v58  ;;  %1424 = vmatmul.bf16.gmra.mxu1 %v1275_v49  ;;  %v1922_v16 = vrot.slane %v1586_v33, 3  ;;  %v1923_v9 = vrot.slane %v1589_v61, 4  ;;  %v7430_v56 = vld [vmem:[#allocation2 + $0x5c] sm:$0xff] }
 0x16d   : > { %v964_v51 = vmul.f32 %v7145_v12, %v677_v1  ;;  %v7420_v25 = vor.u32 %v1591_v53, %v1588_v17  ;;  %v7423_v46 = vsel %vm4292_vm3, %v4323_v59, %v4327_v36  ;;  %v7425_v48 = vor.u32 %v1951_v2, %v1950_v30  ;;  %v1848_v17 = vld [vmem:[#allocation2 + $0xa4] sm:$0x3] }
 0x16e   : > { %9269 = vst [vmem:[#allocation25_spill] sm:$0xff] %v7418_v14  ;;  %v7432_v12 = vor.u32 %v1923_v9, %v1922_v16  ;;  %v9211_v58 = vshll.u32 %v7414_v8, 16  ;;  %v9210_v53 = vshrl.u32 %v7414_v8, 16  ;;  %v9213_v9 = vshll.u32 %v7430_v56, 16 }
 0x16f   : > { %v6082_v34 = vpack.c.bf16 %v964_v51, %v963_v35  ;;  %9270 = vst [vmem:[#allocation26_spill] sm:$0xff] %v7423_v46  ;;  %v1593_v7 = vsel %vm1477_vm1, %v7350_v32, %v7420_v25  ;;  %v7439_v30 = vsel %vm1869_vm2, %v7394_v24, %v7425_v48  ;;  %v1867_v35 = vunpack.c.l.b16 %v1848_v17 }
 0x170   : > { %v611_v54 = vpop.f32.mrf.mxu0  ;;  %1798 = vmatmul.bf16.gmra.mxu2 %v1593_v7  ;;  %9271 = vst [vmem:[#allocation27_spill] sm:$0xff] %v7439_v30  ;;  %v7444_v32 = vsel %vm1869_vm2, %v7358_v44, %v7432_v12  ;;  %v4329_v21 = vrot.slane %v9210_v53, 1  ;;  %v4330_v33 = vrot.slane %v9211_v58, 2  ;;  %v9274_v53 = vunpack.c.l.b16 %v7230_v60 }
 0x171   : > { %6306 = vst [vmem:[#allocation2 + $0x68] sm:$0xff] %v6082_v34   ;;  %v2458_v49 = vshrl.u32 %v6082_v34, 16  ;;  %v2461_v61 = vshll.u32 %v6082_v34, 16  ;;  %v1387_v59 = vpop.f32.mrf.mxu1  ;;  %v9212_v34 = vshrl.u32 %v7430_v56, 16  ;;  %v612_v7 = vadd.f32 %v7235_v38, %v611_v54 }
 0x172   : > { %9272 = vst [vmem:[#allocation28_spill] sm:$0xff] %v7444_v32  ;;  %v4331_v16 = vor.u32 %v4330_v33, %v4329_v21  ;;  %v1868_v46 = vpack.c.b16 %v1867_v35, %v9274_v53  ;;  %v9278_v32 = vshll.u32 %v7352_v62, 16 }
 0x173   : > { %v2460_v1 = vrot.slane %v2458_v49, 3  ;;  %v2463_v2 = vrot.slane %v2461_v61, 4  ;;  %v1759_v51 = vpop.f32.mrf.mxu2  ;;  %v4333_v17 = vrot.slane %v9212_v34, 1  ;;  %v678_v60 = vmax.f32 %v612_v7, 0.0 }
 0x174   : > { %v7453_v30 = vadd.f32 %v1759_v51, %v1385_v10  ;;  %v7460_v58 = vsel %vm4292_vm3, %v4327_v36, %v4331_v16  ;;  %v1955_v61 = vshrl.u32 %v1868_v46, 16  ;;  %v1958_v54 = vshll.u32 %v1868_v46, 16 }
 0x175   : > { %v7455_v44 = vor.u32 %v2463_v2, %v2460_v1  ;;  %9275 = vst [vmem:[#allocation30_spill] sm:$0xff] %v7460_v58  ;;  %v4334_v10 = vrot.slane %v9213_v9, 2  ;;  %v863_v58 = vpop.permute.xlu2 %862  ;;  %v3645_v14 = vrot.slane %v9278_v32, 1  ;;  %v7510_v32 = vld [vmem:[#allocation2 + $0x94] sm:$0xff] }
 0x176   : > { %9273 = vst [vmem:[#allocation29_spill] sm:$0xff] %v7453_v30  ;;  %v1957_v53 = vrot.slane %v1955_v61, 3  ;;  %v1960_v1 = vrot.slane %v1958_v54, 4  ;;  %v9277_v61 = vrot.slane %v7388_v52, 3 }
 0x177   : > { %v7467_v49 = vsel %vm1869_vm2, %v7377_v45, %v7455_v44  ;;  %v7480_v9 = vor.u32 %v4334_v10, %v4333_v17 }
 0x178   : > { %v614_v21 = vpop.f32.mrf.mxu0  ;;  %v7471_v33 = vld [vmem:[#allocation2 + $0x68] sm:$0xff]  ;;  %v7478_v46 = vor.u32 %v1960_v1, %v1957_v53 }
 0x179   : > { %v615_v36 = vadd.f32 %v7235_v38, %v614_v21  ;;  %v1390_v2 = vpop.f32.mrf.mxu1  ;;  %v9214_v35 = vrot.slane %v7471_v33, 3  ;;  %v1595_v51 = vshrl.u32 %v7471_v33, 16  ;;  %v1598_v45 = vshll.u32 %v7471_v33, 16  ;;  %v7494_v1 = vld [vmem:[#allocation2 + $0x64] sm:$0xff] }
 0x17a   : > { %9276 = vst [vmem:[#allocation31_spill] sm:$0xff] %v7478_v46 }
 0x17b   : > { %v679_v34 = vmax.f32 %v615_v36, 0.0  ;;  %2640 = vmatmul.bf16.gmra.mxu0 %v7122_v50  ;;  %v1761_v7 = vpop.f32.mrf.mxu2  ;;  %v1277_v54 = vsel %vm1250_vm0, %v9277_v61, %v9214_v35  ;;  %v1597_v21 = vrot.slane %v1595_v51, 2  ;;  %v1600_v30 = vrot.slane %v1598_v45, 3 }
 0x17c   : > { %v965_v36 = vmul.f32 %v863_v58, %v678_v60  ;;  %v7490_v53 = vadd.f32 %v1761_v7, %v1387_v59  ;;  %1429 = vmatmul.bf16.gmra.mxu1 %v1277_v54  ;;  %v1926_v17 = vrot.slane %v1595_v51, 3  ;;  %v1927_v40 = vrot.slane %v1598_v45, 4 }
 0x17d   : > { %v966_v50 = vmul.f32 %v7161_v29, %v679_v34  ;;  %v7492_v10 = vor.u32 %v1600_v30, %v1597_v21  ;;  %v7499_v61 = vsel %vm1869_vm2, %v7425_v48, %v7478_v46  ;;  %v7503_v58 = vsel %vm4292_vm3, %v4331_v16, %v7480_v9  ;;  %v5972_v48 = vld [vmem:[%s9188_s3 + $0x178] sm:$0xff] }
 0x17e   : > { %9279 = vst [vmem:[#allocation32_spill] sm:$0xff] %v7499_v61  ;;  %v7508_v30 = vor.u32 %v1927_v40, %v1926_v17  ;;  %v7514_v34 = vsel %vm3043_vm4, %v7222_v19, %v3645_v14  ;;  %v9216_v45 = vshll.u32 %v7494_v1, 16  ;;  %v9215_v19 = vshrl.u32 %v7494_v1, 16  ;;  %3280 = vmatpush.bf16.msrb.mxu2 %v5972_v48  ;;  %v5962_v48 = vld [vmem:[%s9188_s3 + $0x128] sm:$0xff] }
 0x17f   : > { %v6087_v52 = vpack.c.bf16 %v966_v50, %v965_v36  ;;  %9280 = vst [vmem:[#allocation33_spill] sm:$0xff] %v7503_v58  ;;  %v1602_v59 = vsel %vm1477_vm1, %v7420_v25, %v7492_v10  ;;  %v7524_v25 = vld [vmem:[#allocation2 + $0x9c] sm:$0xff]  ;;  %v9218_v7 = vshrl.u32 %v7510_v32, 16  ;;  %v9283_v36 = vshll.u32 %v7356_v27, 16  ;;  %2870 = vmatpush.bf16.msrb.mxu1 %v5962_v48 }
 0x180   : > { %v616_v29 = vpop.f32.mrf.mxu0  ;;  %9281 = vst [vmem:[#allocation34_spill] sm:$0xff] %v7514_v34  ;;  %1803 = vmatmul.bf16.gmra.mxu2 %v1602_v59  ;;  %v7522_v40 = vsel %vm1869_vm2, %v7432_v12, %v7508_v30  ;;  %v4337_v12 = vrot.slane %v9215_v19, 1  ;;  %v4338_v59 = vrot.slane %v9216_v45, 2  ;;  %v9219_v35 = vshll.u32 %v7510_v32, 16 }
 0x181   : > { %6307 = vst [vmem:[#allocation2 + $0x70] sm:$0xff] %v6087_v52   ;;  %v2467_v16 = vshrl.u32 %v6087_v52, 16  ;;  %v2470_v60 = vshll.u32 %v6087_v52, 16  ;;  %v1392_v51 = vpop.f32.mrf.mxu1  ;;  %v3653_v50 = vrot.slane %v9283_v36, 1  ;;  %v617_v17 = vadd.f32 %v7235_v38, %v616_v29 }
 0x182   : > { %9282 = vst [vmem:[#allocation35_spill] sm:$0xff] %v7522_v40  ;;  %v9285_v36 = vshrl.u32 %v7352_v62, 16  ;;  %v7551_v45 = vor.u32 %v4338_v59, %v4337_v12  ;;  %v9220_v46 = vshrl.u32 %v7524_v25, 16  ;;  %v9287_v62 = vshrl.u32 %v7356_v27, 16 }
 0x183   : > { %v2469_v54 = vrot.slane %v2467_v16, 3  ;;  %v2472_v21 = vrot.slane %v2470_v60, 4  ;;  %v1764_v52 = vpop.f32.mrf.mxu2  ;;  %v5971_v16 = vld [vmem:[%s9188_s3 + $0x170] sm:$0xff]  ;;  %v4361_v60 = vrot.slane %v9218_v7, 1  ;;  %v9288_v12 = vshll.u32 %v7414_v8, 16 }
 0x184   : > { %v7537_v34 = vadd.f32 %v1764_v52, %v1390_v2  ;;  %v3649_v19 = vor.u32 %v9285_v36, %v3645_v14  ;;  %v4362_v2 = vrot.slane %v9219_v35, 2  ;;  %v9221_v52 = vshll.u32 %v7524_v25, 16  ;;  %3281 = vmatpush.bf16.msrb.mxu2 %v5971_v16  ;;  %v7587_v16 = vld [vmem:[#allocation2 + $0xa4] sm:$0xff] }
 0x185   : > { %v7545_v29 = vor.u32 %v2472_v21, %v2469_v54  ;;  %v3657_v14 = vor.u32 %v9287_v62, %v3653_v50  ;;  %v3661_v59 = vrot.slane %v9288_v12, 1  ;;  %v680_v36 = vmax.f32 %v617_v17, 0.0  ;;  %v5970_v17 = vld [vmem:[%s9188_s3 + $0x168] sm:$0xff] }
 0x186   : > { %9284 = vst [vmem:[#allocation36_spill] sm:$0xff] %v7537_v34  ;;  %v7563_v21 = vsel %vm3043_vm4, %v3649_v19, %v3653_v50  ;;  %v7574_v48 = vsel %vm4292_vm3, %v7480_v9, %v7551_v45  ;;  %v4366_v19 = vrot.slane %v9221_v52, 2  ;;  %v5961_v50 = vld [vmem:[%s9188_s3 + $0x120] sm:$0xff]  ;;  %v9291_v62 = vshrl.u32 %v7414_v8, 16 }
 0x187   : > { %v7560_v54 = vsel %vm1869_vm2, %v7455_v44, %v7545_v29  ;;  %9286 = vst [vmem:[#allocation37_spill] sm:$0xff] %v7563_v21  ;;  %v4365_v44 = vrot.slane %v9220_v46, 1  ;;  %v7590_v9 = vsel %vm3043_vm4, %v3657_v14, %v3661_v59  ;;  %2871 = vmatpush.bf16.msrb.mxu1 %v5961_v50  ;;  %v7600_v58 = vor.u32 %v4362_v2, %v4361_v60 }
 0x188   : > { %v619_v7 = vpop.f32.mrf.mxu0  ;;  %v7569_v35 = vld [vmem:[#allocation2 + $0x70] sm:$0xff]  ;;  %9289 = vst [vmem:[#allocation38_spill] sm:$0xff] %v7574_v48  ;;  %v7594_v12 = vor.u32 %v9291_v62, %v3661_v59  ;;  %v9222_v14 = vshrl.u32 %v7587_v16, 16  ;;  %v967_v8 = vmul.f32 %v7176_v37, %v680_v36  ;;  %v9292_v62 = vrot.slane %v7471_v33, 3  ;;  %3282 = vmatpush.bf16.msrb.mxu2 %v5970_v17  ;;  %v5960_v37 = vld [vmem:[%s9188_s3 + $0x118] sm:$0xff]  ;;  %v5969_v36 = vld [vmem:[%s9188_s3 + $0x160] sm:$0xff] }
 0x189   : > { %v620_v27 = vadd.f32 %v7235_v38, %v619_v7  ;;  %9290 = vst [vmem:[#allocation39_spill] sm:$0xff] %v7590_v9  ;;  %v1395_v46 = vpop.f32.mrf.mxu1  ;;  %v9224_v7 = vrot.slane %v7569_v35, 3  ;;  %v1604_v52 = vshrl.u32 %v7569_v35, 16  ;;  %v1607_v21 = vshll.u32 %v7569_v35, 16  ;;  %v878_v9 = vpop.permute.xlu2 %877  ;;  %v7622_v50 = vld [vmem:[#allocation2 + $0x6c] sm:$0xff] }
 0x18a   : > { %v4367_v61 = vor.u32 %v4366_v19, %v4365_v44  ;;  %v9223_v44 = vshll.u32 %v7587_v16, 16 }
 0x18b   : > { %v681_v48 = vmax.f32 %v620_v27, 0.0  ;;  %2645 = vmatmul.bf16.gmra.mxu0 %v7181_v42  ;;  %v1766_v59 = vpop.f32.mrf.mxu2  ;;  %v1279_v34 = vsel %vm1250_vm0, %v9292_v62, %v9224_v7  ;;  %v1606_v40 = vrot.slane %v1604_v52, 2  ;;  %v1609_v27 = vrot.slane %v1607_v21, 3  ;;  %v7609_v42 = vld [vmem:[#allocation2 + $0xac] sm:$0xff]  ;;  %2872 = vmatpush.bf16.msrb.mxu1 %v5960_v37 }
 0x18c   : > { %v7611_v2 = vadd.f32 %v1766_v59, %v1392_v51  ;;  %1434 = vmatmul.bf16.gmra.mxu1 %v1279_v34  ;;  %v1930_v33 = vrot.slane %v1604_v52, 3  ;;  %v1931_v17 = vrot.slane %v1607_v21, 4  ;;  %v7626_v34 = vsel %vm4292_vm3, %v7600_v58, %v4367_v61  ;;  %3283 = vmatpush.bf16.msrb.mxu2 %v5969_v36  ;;  %v5959_v62 = vld [vmem:[%s9188_s3 + $0x110] sm:$0xff] }
 0x18d   : > { %v968_v60 = vmul.f32 %v878_v9, %v681_v48  ;;  %v7620_v19 = vor.u32 %v1609_v27, %v1606_v40  ;;  %9294 = vst [vmem:[#allocation41_spill] sm:$0xff] %v7626_v34  ;;  %v4369_v51 = vrot.slane %v9222_v14, 1  ;;  %v4370_v9 = vrot.slane %v9223_v44, 2  ;;  %v5968_v27 = vld [vmem:[%s9188_s3 + $0x158] sm:$0xff] }
 0x18e   : > { %9293 = vst [vmem:[#allocation40_spill] sm:$0xff] %v7611_v2  ;;  %v7635_v59 = vor.u32 %v1931_v17, %v1930_v33  ;;  %v9227_v17 = vshll.u32 %v7622_v50, 16 }
 0x18f   : > { %v6092_v48 = vpack.c.bf16 %v968_v60, %v967_v8  ;;  %v1611_v40 = vsel %vm1477_vm1, %v7492_v10, %v7620_v19  ;;  %v9225_v8 = vshrl.u32 %v7609_v42, 16  ;;  %v4371_v10 = vor.u32 %v4370_v9, %v4369_v51  ;;  %2873 = vmatpush.bf16.msrb.mxu1 %v5959_v62 }
 0x190   : > { %v621_v52 = vpop.f32.mrf.mxu0  ;;  %1808 = vmatmul.bf16.gmra.mxu2 %v1611_v40  ;;  %v7648_v33 = vsel %vm1869_vm2, %v7508_v30, %v7635_v59  ;;  %v9226_v40 = vshrl.u32 %v7622_v50, 16  ;;  %v4342_v30 = vrot.slane %v9227_v17, 2  ;;  %v9297_v9 = vshll.u32 %v7430_v56, 16 }
 0x191   : > { %6308 = vst [vmem:[#allocation2 + $0x78] sm:$0xff] %v6092_v48   ;;  %v2476_v60 = vshrl.u32 %v6092_v48, 16  ;;  %v2479_v37 = vshll.u32 %v6092_v48, 16  ;;  %v1397_v36 = vpop.f32.mrf.mxu1  ;;  %v4373_v14 = vrot.slane %v9225_v8, 1  ;;  %v7655_v21 = vsel %vm4292_vm3, %v4367_v61, %v4371_v10  ;;  %3284 = vmatpush.bf16.msrb.mxu2 %v5968_v27  ;;  %v5958_v61 = vld [vmem:[%s9188_s3 + $0x108] sm:$0xff]  ;;  %v5967_v27 = vld [vmem:[%s9188_s3 + $0x150] sm:$0xff] }
 0x192   : > { %9295 = vst [vmem:[#allocation42_spill] sm:$0xff] %v7648_v33  ;;  %v4341_v51 = vrot.slane %v9226_v40, 1  ;;  %v3669_v34 = vrot.slane %v9297_v9, 1  ;;  %v9298_v33 = vshll.u32 %v7609_v42, 16  ;;  %v622_v62 = vadd.f32 %v7235_v38, %v621_v52 }
 0x193   : > { %v2478_v44 = vrot.slane %v2476_v60, 3  ;;  %v2481_v7 = vrot.slane %v2479_v37, 4  ;;  %9296 = vst [vmem:[#allocation43_spill] sm:$0xff] %v7655_v21  ;;  %v1769_v48 = vpop.f32.mrf.mxu2  ;;  %2874 = vmatpush.bf16.msrb.mxu1 %v5958_v61  ;;  %v9306_v61 = vshrl.u32 %v7510_v32, 16  ;;  %v9309_v21 = vshll.u32 %v7587_v16, 16 }
 0x194   : > { %v4374_v8 = vrot.slane %v9298_v33, 2  ;;  %v7666_v60 = vadd.f32 %v1769_v48, %v1395_v46  ;;  %v7676_v40 = vor.u32 %v4342_v30, %v4341_v51  ;;  %v7680_v9 = vsel %vm3043_vm4, %v7594_v12, %v3669_v34 }
 0x195   : > { %v7674_v37 = vor.u32 %v2481_v7, %v2478_v44  ;;  %9300 = vst [vmem:[#allocation45_spill] sm:$0xff] %v7680_v9  ;;  %v9302_v46 = vshrl.u32 %v7430_v56, 16  ;;  %v9303_v7 = vshll.u32 %v7510_v32, 16  ;;  %3285 = vmatpush.bf16.msrb.mxu2 %v5967_v27  ;;  %v9308_v32 = vrot.slane %v7569_v35, 3 }
 0x196   : > { %9299 = vst [vmem:[#allocation44_spill] sm:$0xff] %v7666_v60  ;;  %v7682_v33 = vor.u32 %v4374_v8, %v4373_v14  ;;  %v7702_v56 = vsel %vm4292_vm3, %v7551_v45, %v7676_v40  ;;  %v682_v14 = vmax.f32 %v622_v62, 0.0  ;;  %v5966_v8 = vld [vmem:[%s9188_s3 + $0x148] sm:$0xff] }
 0x197   : > { %v7686_v52 = vor.u32 %v9302_v46, %v3669_v34  ;;  %v7691_v48 = vsel %vm1869_vm2, %v7545_v29, %v7674_v37  ;;  %v7695_v44 = vrot.slane %v9303_v7, 1  ;;  %9304 = vst [vmem:[#allocation47_spill] sm:$0xff] %v7702_v56  ;;  %v5957_v34 = vld [vmem:[%s9188_s3 + $0x100] sm:$0xff]  ;;  %v3741_v56 = vrot.slane %v9309_v21, 1 }
 0x198   : > { %9301 = vst [vmem:[#allocation46_spill] sm:$0xff] %v7682_v33  ;;  %v624_v51 = vpop.f32.mrf.mxu0  ;;  %v7697_v30 = vld [vmem:[#allocation2 + $0x78] sm:$0xff]  ;;  %v7706_v12 = vsel %vm4292_vm3, %v4371_v10, %v7682_v33  ;;  %2875 = vmatpush.bf16.msrb.mxu1 %v5957_v34 }
 0x199   : > { %9305 = vst [vmem:[#allocation48_spill] sm:$0xff] %v7706_v12  ;;  %v625_v29 = vadd.f32 %v7235_v38, %v624_v51  ;;  %v3729_v45 = vor.u32 %v9306_v61, %v7695_v44  ;;  %v1400_v27 = vpop.f32.mrf.mxu1  ;;  %v9229_v46 = vrot.slane %v7697_v30, 3  ;;  %v1613_v10 = vshrl.u32 %v7697_v30, 16  ;;  %3286 = vmatpush.bf16.msrb.mxu2 %v5966_v8 }
 0x19a   : > { %v1616_v62 = vshll.u32 %v7697_v30, 16  ;;  %v9307_v51 = vshll.u32 %v7524_v25, 16 }
 0x19b   : > { %v683_v7 = vmax.f32 %v625_v29, 0.0  ;;  %2650 = vmatmul.bf16.gmra.mxu0 %v7226_v43  ;;  %v1771_v33 = vpop.f32.mrf.mxu2  ;;  %v1281_v61 = vsel %vm1250_vm0, %v9308_v32, %v9229_v46  ;;  %v1615_v12 = vrot.slane %v1613_v10, 2  ;;  %v969_v29 = vmul.f32 %v6909_v28, %v682_v14  ;;  %v7740_v32 = vld [vmem:[#allocation2 + $0x74] sm:$0xff] }
 0x19c   : > { %v3733_v17 = vrot.slane %v9307_v51, 1  ;;  %v1618_v9 = vrot.slane %v1616_v62, 3  ;;  %v7733_v34 = vadd.f32 %v1771_v33, %v1397_v36  ;;  %1439 = vmatmul.bf16.gmra.mxu1 %v1281_v61  ;;  %v5965_v51 = vld [vmem:[%s9188_s3 + $0x140] sm:$0xff]  ;;  %v1934_v35 = vrot.slane %v1613_v10, 3 }
 0x19d   : > { %v970_v43 = vmul.f32 %v6899_v20, %v683_v7  ;;  %v1935_v8 = vrot.slane %v1616_v62, 4  ;;  %v9310_v46 = vshll.u32 %v7609_v42, 16  ;;  %v9312_v20 = vshrl.u32 %v7524_v25, 16  ;;  %3287 = vmatpush.bf16.msrb.mxu2 %v5965_v51 }
 0x19e   : > { %v7738_v60 = vor.u32 %v1618_v9, %v1615_v12  ;;  %v7745_v28 = vsel %vm3043_vm4, %v3729_v45, %v3733_v17  ;;  %v9313_v12 = vshrl.u32 %v7587_v16, 16  ;;  %v9231_v61 = vshll.u32 %v7740_v32, 16 }
 0x19f   : > { %v3749_v21 = vrot.slane %v9310_v46, 1  ;;  %v6097_v2 = vpack.c.bf16 %v970_v43, %v969_v29  ;;  %9311 = vst [vmem:[#allocation49_spill] sm:$0xff] %v7745_v28  ;;  %v3737_v36 = vor.u32 %v9312_v20, %v3733_v17  ;;  %v7752_v9 = vor.u32 %v1935_v8, %v1934_v35 }
 0x1a0   : > { %v626_v33 = vpop.f32.mrf.mxu0  ;;  %v1620_v14 = vsel %vm1477_vm1, %v7620_v19, %v7738_v60  ;;  %v3745_v10 = vor.u32 %v9313_v12, %v3741_v56  ;;  %v9314_v46 = vshrl.u32 %v7609_v42, 16  ;;  %v9230_v16 = vshrl.u32 %v7740_v32, 16 }
 0x1a1   : > { %6309 = vst [vmem:[#allocation2 + $0x80] sm:$0xff] %v6097_v2   ;;  %v627_v45 = vadd.f32 %v7235_v38, %v626_v33  ;;  %1813 = vmatmul.bf16.gmra.mxu2 %v1620_v14  ;;  %v2485_v25 = vshrl.u32 %v6097_v2, 16  ;;  %v2488_v17 = vshll.u32 %v6097_v2, 16  ;;  %v1402_v7 = vpop.f32.mrf.mxu1  ;;  %v7764_v19 = vsel %vm1869_vm2, %v7635_v59, %v7752_v9 }
 0x1a2   : > { %v7758_v62 = vor.u32 %v9314_v46, %v3749_v21  ;;  %v7769_v42 = vsel %vm3043_vm4, %v3737_v36, %v3741_v56  ;;  %v9317_v38 = vshll.u32 %v7494_v1, 16  ;;  %v4345_v8 = vrot.slane %v9230_v16, 1 }
 0x1a3   : > { %9316 = vst [vmem:[#allocation51_spill] sm:$0xff] %v7769_v42  ;;  %v684_v29 = vmax.f32 %v627_v45, 0.0  ;;  %v2487_v43 = vrot.slane %v2485_v25, 3  ;;  %v2490_v51 = vrot.slane %v2488_v17, 4  ;;  %v1774_v2 = vpop.f32.mrf.mxu2  ;;  %v4346_v59 = vrot.slane %v9231_v61, 2 }
 0x1a4   : > { %9315 = vst [vmem:[#allocation50_spill] sm:$0xff] %v7758_v62  ;;  %v3677_v35 = vrot.slane %v9317_v38, 1  ;;  %v7778_v20 = vsel %vm3043_vm4, %v3745_v10, %v3749_v21  ;;  %v7781_v56 = vadd.f32 %v1774_v2, %v1400_v27  ;;  %v9320_v46 = vshrl.u32 %v7494_v1, 16 }
 0x1a5   : > { %9318 = vst [vmem:[#allocation52_spill] sm:$0xff] %v7778_v20  ;;  %v971_v33 = vmul.f32 %v6904_v23, %v684_v29  ;;  %v2491_v36 = vor.u32 %v2490_v51, %v2487_v43  ;;  %v7787_v12 = vor.u32 %v4346_v59, %v4345_v8 }
 0x1a6   : > { %v7785_v14 = vsel %vm3043_vm4, %v7686_v52, %v3677_v35  ;;  %v7791_v45 = vor.u32 %v9320_v46, %v3677_v35  ;;  %v9323_v35 = vrot.slane %v7697_v30, 3 }
 0x1a7   : > { %9319 = vst [vmem:[#allocation53_spill] sm:$0xff] %v7785_v14  ;;  %v6102_v25 = vpack.c.bf16 %v6958_v22, %v971_v33  ;;  %v7796_v21 = vsel %vm1869_vm2, %v7674_v37, %v2491_v36  ;;  %v7803_v52 = vsel %vm4292_vm3, %v7676_v40, %v7787_v12 }
 0x1a8   : > { %v7798_v23 = vpop.f32.mrf.mxu0  ;;  %v5921_v27 = vld [vmem:[#allocation2 + $0x80] sm:$0xff]  ;;  %9322 = vst [vmem:[#allocation55_spill] sm:$0xff] %v7803_v52 }
 0x1a9   : > { %9321 = vst [vmem:[#allocation54_spill] sm:$0xff] %v7798_v23  ;;  %v2494_v10 = vshrl.u32 %v6102_v25, 16  ;;  %v2497_v17 = vshll.u32 %v6102_v25, 16  ;;  %v1405_v1 = vpop.f32.mrf.mxu1  ;;  %v1282_v29 = vrot.slane %v5921_v27, 3  ;;  %v1622_v43 = vshrl.u32 %v5921_v27, 16 }
 0x1aa   : > { %6310 = vst [vmem:[#allocation2 + $0x88] sm:$0xff] %v6102_v25   ;;  %v1625_v51 = vshll.u32 %v5921_v27, 16 }
 0x1ab   : > { %2655 = vmatmul.bf16.gmra.mxu0 %v7287_v55  ;;  %v2496_v22 = vrot.slane %v2494_v10, 3  ;;  %v2499_v37 = vrot.slane %v2497_v17, 4  ;;  %v1776_v38 = vpop.f32.mrf.mxu2  ;;  %v1283_v2 = vsel %vm1250_vm0, %v9323_v35, %v1282_v29  ;;  %v1624_v8 = vrot.slane %v1622_v43, 2 }
 0x1ac   : > { %v1627_v59 = vrot.slane %v1625_v51, 3  ;;  %v7809_v40 = vadd.f32 %v1776_v38, %v1402_v7  ;;  %1444 = vmatmul.bf16.gmra.mxu1 %v1283_v2  ;;  %v1938_v46 = vrot.slane %v1622_v43, 3  ;;  %v1939_v16 = vrot.slane %v1625_v51, 4  ;;  %v7833_v38 = vld [vmem:[#allocation2 + $0x14] sm:$0xff]  }
 0x1ad   : > { %v7811_v33 = vor.u32 %v2499_v37, %v2496_v22 }
 0x1ae   : > { %v1628_v25 = vor.u32 %v1627_v59, %v1624_v8  ;;  %v1940_v17 = vor.u32 %v1939_v16, %v1938_v46  ;;  %v3047_v8 = vshll.u32 %v6853_v6, 16  ;;  %v7838_v59 = vld [vmem:[#allocation2 + $0x7c] sm:$0xff] }
 0x1af   : > { %v7815_v55 = vsel %vm1869_vm2, %v2491_v36, %v7811_v33 }
 0x1b0   : > { %v7817_v27 = vpop.f32.mrf.mxu0  ;;  %v1629_v30 = vsel %vm1477_vm1, %v7738_v60, %v1628_v25  ;;  %v7828_v36 = vsel %vm1869_vm2, %v7752_v9, %v1940_v17 }
 0x1b1   : > { %9324 = vst [vmem:[#allocation56_spill] sm:$0xff] %v7817_v27  ;;  %v7821_v10 = vld [vmem:[#allocation2 + $0x88] sm:$0xff]  ;;  %1818 = vmatmul.bf16.gmra.mxu2 %v1629_v30  ;;  %v1407_v7 = vpop.f32.mrf.mxu1 }
 0x1b2   : > { %v9232_v22 = vrot.slane %v7821_v10, 3  ;;  %v1631_v43 = vshrl.u32 %v7821_v10, 16  ;;  %v1634_v51 = vshll.u32 %v7821_v10, 16  ;;  %v7840_v30 = vld [vmem:[#allocation2 + $0x84] sm:$0xff]  ;;  %v7842_v62 = vld [vmem:[#allocation2 + $0x8c] sm:$0xff] }
 0x1b3   : > { %v1779_v37 = vpop.f32.mrf.mxu2  ;;  %v9235_v14 = vshll.u32 %v7842_v62, 16  ;;  %v9329_v27 = vshll.u32 %v7840_v30, 16 }
 0x1b4   : > { %v1285_v60 = vsel %vm1250_vm0, %v1282_v29, %v9232_v22  ;;  %v1633_v16 = vrot.slane %v1631_v43, 2  ;;  %v1636_v35 = vrot.slane %v1634_v51, 3  ;;  %v7835_v2 = vadd.f32 %v1779_v37, %v1405_v1 }
 0x1b5   : > { %1449 = vmatmul.bf16.vlgmr.msrb.gmra.mxu3 %v1285_v60  ;;  %v1942_v9 = vrot.slane %v1631_v43, 3  ;;  %v1943_v61 = vrot.slane %v1634_v51, 4  ;;  %v3052_v29 = vshll.u32 %v7833_v38, 16  ;;  %v3045_v60 = vshrl.u32 %v6853_v6, 16 }
 0x1b6   : > { %9325 = vst [vmem:[#allocation57_spill] sm:$0xff] %v7835_v2  ;;  %v1637_v46 = vor.u32 %v1636_v35, %v1633_v16  ;;  %v3049_v16 = vrot.slane %v3047_v8, 1  ;;  %v3699_v43 = vshll.u32 %v7838_v59, 16  ;;  %v9233_v51 = vshrl.u32 %v7838_v59, 16 }
 0x1b7   : > { %v1944_v37 = vor.u32 %v1943_v61, %v1942_v9  ;;  %v9236_v8 = vshrl.u32 %v7842_v62, 16  ;;  %v4354_v23 = vrot.slane %v9329_v27, 2  ;;  %v9331_v2 = vshrl.u32 %v7622_v50, 16 }
 0x1b8   : > { %v7844_v20 = vpop.f32.mrf.mxu0  ;;  %v7848_v22 = vsel %vm1477_vm1, %v1628_v25, %v1637_v46  ;;  %v7852_v1 = vsel %vm1477_vm1, %v1637_v46, %v7274_v41  ;;  %v9234_v25 = vshrl.u32 %v7840_v30, 16  ;;  %v4349_v41 = vrot.slane %v9233_v51, 1 }
 0x1b9   : > { %9326 = vst [vmem:[#allocation58_spill] sm:$0xff] %v7844_v20  ;;  %v1410_v35 = vpop.f32.mrf.mxu1  ;;  %v7858_v42 = vsel %vm1869_vm2, %v1940_v17, %v1944_v37  ;;  %v4350_v61 = vrot.slane %v3699_v43, 2  ;;  %v9328_v46 = vshll.u32 %v7622_v50, 16  ;;  %v3054_v17 = vrot.slane %v3052_v29, 1 }
 0x1ba   : > { %9327 = vst [vmem:[#allocation59_spill] sm:$0xff] %v7858_v42  ;;  %v4353_v28 = vrot.slane %v9234_v25, 1  ;;  %v4357_v42 = vrot.slane %v9236_v8, 1 }
 0x1bb   : > { %2660 = vmatmul.bf16.gmra.mxu0 %v7324_v15  ;;  %v3685_v9 = vrot.slane %v9328_v46, 1  ;;  %v1781_v20 = vpop.f32.mrf.mxu2  ;;  %v4358_v15 = vrot.slane %v9235_v14, 2  ;;  %v4351_v51 = vor.u32 %v4350_v61, %v4349_v41  ;;  %v3050_v46 = vor.u32 %v3049_v16, %v3045_v60 }
 0x1bc   : > { %v7875_v52 = vadd.f32 %v1781_v20, %v1407_v7  ;;  %2876 = vmatmul.bf16.vlgmr.msrb.gmra.mxu1 %v6853_v6  ;;  %v4355_v25 = vor.u32 %v4354_v23, %v4353_v28  ;;  %v7895_v41 = vsel %vm1869_vm2, %v1944_v37, %v7394_v24  ;;  %v6519_v23 = vld [vmem:[#allocation2 + $0x90] sm:$0xff]  ;;  %v9334_v16 = vrot.slane %v7821_v10, 3  ;;  %v6446_v24 = vld [vmem:[#allocation2 + $0x1c] sm:$0xff]  }
 0x1bd   : > { %v7882_v29 = vsel %vm3043_vm4, %v7791_v45, %v3685_v9  ;;  %v3689_v27 = vor.u32 %v9331_v2, %v3685_v9  ;;  %v7888_v14 = vsel %vm4292_vm3, %v7787_v12, %v4351_v51  ;;  %v4359_v20 = vor.u32 %v4358_v15, %v4357_v42 }
 0x1be   : > { %9330 = vst [vmem:[#allocation60_spill] sm:$0xff] %v7882_v29  ;;  %v3055_v6 = vsel %vm3043_vm4, %v3050_v46, %v3054_v17  ;;  %v7898_v45 = vsel %vm4292_vm3, %v4351_v51, %v4355_v25  ;;  %v1286_v12 = vrot.slane %v6519_v23, 3  ;;  %v9333_v42 = vshll.u32 %v7740_v32, 16 }
 0x1bf   : > { %v7901_v50 = vsel %vm4292_vm3, %v4355_v25, %v4359_v20  ;;  %v9336_v25 = vshrl.u32 %v7740_v32, 16  ;;  %v3060_v46 = vshll.u32 %v6446_v24, 16  ;;  %v3056_v10 = vshrl.u32 %v7833_v38, 16 }
 0x1c0   : > { %v7890_v7 = vpop.f32.mrf.mxu0  ;;  %v3693_v2 = vrot.slane %v9333_v42, 1  ;;  %v1287_v61 = vsel %vm1250_vm0, %v9334_v16, %v1286_v12 }
 0x1c1   : > { %9332 = vst [vmem:[#allocation61_spill] sm:$0xff] %v7890_v7  ;;  %3288 = vmatmul.bf16.vlgmr.msrb.gmra.mxu2 %v3055_v6  ;;  %v1412_v28 = vpop.f32.mrf.mxu1  ;;  %v3062_v42 = vrot.slane %v3060_v46, 1 }
 0x1c2   : > { %v7911_v51 = vsel %vm3043_vm4, %v3689_v27, %v3693_v2  ;;  %v3697_v9 = vor.u32 %v9336_v25, %v3693_v2  ;;  %v6520_v2 = vld [vmem:[#allocation2 + $0x98] sm:$0xff]  ;;  %v3701_v25 = vrot.slane %v3699_v43, 1  ;;  %v7937_v43 = vsel %vm4292_vm3, %v4359_v20, %v7600_v58 }
 0x1c3   : > { %v1784_v60 = vpop.f32.mrf.mxu2  ;;  %9335 = vst [vmem:[#allocation62_spill] sm:$0xff] %v7911_v51  ;;  %v6448_v51 = vld [vmem:[#allocation2 + $0x24] sm:$0xff]   ;;  %v9345_v58 = vshrl.u32 %v7840_v30, 16 }
 0x1c4   : > { %v7908_v37 = vadd.f32 %v1784_v60, %v1410_v35  ;;  %v3058_v35 = vor.u32 %v3056_v10, %v3054_v17  ;;  %v1288_v60 = vrot.slane %v6520_v2, 3 }
 0x1c5   : > { %1454 = vmatmul.bf16.gmra.mxu3 %v1287_v61 }
 0x1c6   : > { %v3063_v32 = vsel %vm3043_vm4, %v3058_v35, %v3062_v42 }
 0x1c8   : > { %v7915_v15 = vpop.f32.mrf.mxu0 }
 0x1c9   : > { %9337 = vst [vmem:[#allocation63_spill] sm:$0xff] %v7915_v15  ;;  %v1415_v6 = vpop.f32.mrf.mxu1 }
 0x1cb   : > { %2665 = vmatmul.bf16.gmra.mxu0 %v7385_v47  ;;  %v1786_v23 = vpop.f32.mrf.mxu2  ;;  %v1289_v47 = vsel %vm1250_vm0, %v1286_v12, %v1288_v60 }
 0x1cc   : > { %v7919_v16 = vadd.f32 %v1786_v23, %v1412_v28  ;;  %2881 = vmatmul.bf16.gmra.mxu1 %v7833_v38  ;;  %v7929_v28 = vsel %vm3043_vm4, %v3697_v9, %v3701_v25  ;;  %v9340_v38 = vshrl.u32 %v7838_v59, 16  ;;  %v3068_v23 = vshll.u32 %v6448_v51, 16 }
 0x1cd   : > { %9339 = vst [vmem:[#allocation65_spill] sm:$0xff] %v7929_v28  ;;  %v6460_v28 = vld [vmem:[#allocation2 + $0x54] sm:$0xff]  }
 0x1ce   : > { %v3705_v17 = vor.u32 %v9340_v38, %v3701_v25  ;;  %v3070_v59 = vrot.slane %v3068_v23, 1 }
 0x1d0   : > { %v7922_v27 = vpop.f32.mrf.mxu0 }
 0x1d1   : > { %9338 = vst [vmem:[#allocation64_spill] sm:$0xff] %v7922_v27  ;;  %3293 = vmatmul.bf16.gmra.mxu2 %v3063_v32  ;;  %v1417_v61 = vpop.f32.mrf.mxu1  ;;  %v3064_v32 = vshrl.u32 %v6446_v24, 16 }
 0x1d3   : > { %v1789_v8 = vpop.f32.mrf.mxu2  ;;  %v3066_v38 = vor.u32 %v3064_v32, %v3062_v42 }
 0x1d4   : > { %v7926_v29 = vadd.f32 %v1789_v8, %v1415_v6  ;;  %v9342_v8 = vshll.u32 %v7840_v30, 16  ;;  %v9343_v6 = vshll.u32 %v7842_v62, 16 }
 0x1d5   : > { %1459 = vmatmul.bf16.gmra.mxu3 %v1289_v47 }
 0x1d6   : > { %v3709_v12 = vrot.slane %v9342_v8, 1  ;;  %v3717_v9 = vrot.slane %v9343_v6, 1 }
 0x1d8   : > { %v7933_v46 = vpop.f32.mrf.mxu0  ;;  %v7947_v25 = vsel %vm3043_vm4, %v3705_v17, %v3709_v12  ;;  %v3713_v20 = vor.u32 %v9345_v58, %v3709_v12  ;;  %v1290_v17 = vrot.slane %v7265_v3, 3  ;;  %v6450_v12 = vld [vmem:[#allocation2 + $0x2c] sm:$0xff]   ;;  %v3072_v58 = vshrl.u32 %v6448_v51, 16 }
 0x1d9   : > { %9341 = vst [vmem:[#allocation66_spill] sm:$0xff] %v7933_v46  ;;  %v1420_v10 = vpop.f32.mrf.mxu1 }
 0x1da   : > { %9344 = vst [vmem:[#allocation67_spill] sm:$0xff] %v7947_v25  ;;  %v7954_v8 = vsel %vm3043_vm4, %v3713_v20, %v3717_v9 }
 0x1db   : > { %2670 = vmatmul.bf16.gmra.mxu0 %v7467_v49  ;;  %v1791_v35 = vpop.f32.mrf.mxu2  ;;  %v9346_v49 = vshrl.u32 %v7842_v62, 16  ;;  %9347 = vst [vmem:[#allocation68_spill] sm:$0xff] %v7954_v8  ;;  %v1291_v62 = vsel %vm1250_vm0, %v1288_v60, %v1290_v17  ;;  %v5947_v60 = vld [vmem:[%s9188_s3 + $0xb0] sm:$0xff] }
 0x1dc   : > { %v7944_v2 = vadd.f32 %v1791_v35, %v1417_v61  ;;  %2886 = vmatmul.bf16.gmra.mxu1 %v6446_v24  ;;  %v3071_v24 = vsel %vm3043_vm4, %v3066_v38, %v3070_v59  ;;  %v3076_v35 = vshll.u32 %v6450_v12, 16 }
 0x1dd   : > { %v3721_v47 = vor.u32 %v9346_v49, %v3717_v9 }
 0x1de   : > { %v3078_v20 = vrot.slane %v3076_v35, 1 }
 0x1df   : > { %v7958_v6 = vsel %vm3043_vm4, %v3721_v47, %v7695_v44  ;;  %v5948_v44 = vld [vmem:[%s9188_s3 + $0xb8] sm:$0xff] }
 0x1e0   : > { %9348 = vst [vmem:[#allocation69_spill] sm:$0xff] %v7958_v6  ;;  %v7960_v61 = vpop.f32.mrf.mxu0  ;;  %2032 = vmatpush.bf16.msrb.mxu3 %v5948_v44  ;;  %v5946_v44 = vld [vmem:[%s9188_s3 + $0xa8] sm:$0xff]  ;;  %v6454_v6 = vld [vmem:[#allocation2 + $0x3c] sm:$0xff]  }
 0x1e1   : > { %9349 = vst [vmem:[#allocation70_spill] sm:$0xff] %v7960_v61  ;;  %3298 = vmatmul.bf16.gmra.mxu2 %v3071_v24  ;;  %v1422_v30 = vpop.f32.mrf.mxu1 }
 0x1e3   : > { %v1794_v23 = vpop.f32.mrf.mxu2 }
 0x1e4   : > { %v7965_v42 = vadd.f32 %v1794_v23, %v1420_v10  ;;  %v3074_v10 = vor.u32 %v3072_v58, %v3070_v59  ;;  %2033 = vmatpush.bf16.msrb.mxu3 %v5947_v60 }
 0x1e5   : > { %1464 = vmatmul.bf16.gmra.mxu3 %v1291_v62 }
 0x1e6   : > { %v3079_v38 = vsel %vm3043_vm4, %v3074_v10, %v3078_v20 }
 0x1e8   : > { %v7970_v9 = vpop.f32.mrf.mxu0  ;;  %2034 = vmatpush.bf16.msrb.mxu3 %v5946_v44 }
 0x1e9   : > { %9350 = vst [vmem:[#allocation71_spill] sm:$0xff] %v7970_v9  ;;  %v1425_v32 = vpop.f32.mrf.mxu1 }
 0x1eb   : > { %2675 = vmatmul.bf16.gmra.mxu0 %v7560_v54  ;;  %v1796_v3 = vpop.f32.mrf.mxu2  ;;  %v6452_v54 = vld [vmem:[#allocation2 + $0x34] sm:$0xff]  }
 0x1ec   : > { %v7973_v49 = vadd.f32 %v1796_v3, %v1422_v30  ;;  %2891 = vmatmul.bf16.gmra.mxu1 %v6448_v51  ;;  %v3084_v51 = vshll.u32 %v6452_v54, 16  ;;  %v3080_v3 = vshrl.u32 %v6450_v12, 16 }
 0x1ee   : > { %v3086_v58 = vrot.slane %v3084_v51, 1 }
 0x1f0   : > { %v7978_v47 = vpop.f32.mrf.mxu0 }
 0x1f1   : > { %9351 = vst [vmem:[#allocation72_spill] sm:$0xff] %v7978_v47  ;;  %3303 = vmatmul.bf16.gmra.mxu2 %v3079_v38  ;;  %v1427_v24 = vpop.f32.mrf.mxu1 }
 0x1f3   : > { %v1799_v23 = vpop.f32.mrf.mxu2 }
 0x1f4   : > { %v7981_v62 = vadd.f32 %v1799_v23, %v1425_v32  ;;  %v3082_v32 = vor.u32 %v3080_v3, %v3078_v20  ;;  %v5945_v23 = vld [vmem:[%s9188_s3 + $0xa0] sm:$0xff] }
 0x1f5   : > { %1469 = vmatmul.bf16.gmra.mxu3 %v1290_v17 }
 0x1f6   : > { %v3087_v17 = vsel %vm3043_vm4, %v3082_v32, %v3086_v58  ;;  %2035 = vmatpush.bf16.msrb.mxu3 %v5945_v23 }
 0x1f8   : > { %v7983_v30 = vpop.f32.mrf.mxu0 }
 0x1f9   : > { %9352 = vst [vmem:[#allocation73_spill] sm:$0xff] %v7983_v30  ;;  %v1430_v59 = vpop.f32.mrf.mxu1 }
 0x1fb   : > { %2680 = vmatmul.bf16.gmra.mxu0 %v7691_v48  ;;  %v1801_v35 = vpop.f32.mrf.mxu2 }
 0x1fc   : > { %v7989_v60 = vadd.f32 %v1801_v35, %v1427_v24  ;;  %2896 = vmatmul.bf16.gmra.mxu1 %v6450_v12  ;;  %v3092_v12 = vshll.u32 %v6454_v6, 16  ;;  %v3088_v35 = vshrl.u32 %v6452_v54, 16 }
 0x1fe   : > { %v3094_v3 = vrot.slane %v3092_v12, 1 }
 0x200   : > { %v7991_v10 = vpop.f32.mrf.mxu0 }
 0x201   : > { %9353 = vst [vmem:[#allocation74_spill] sm:$0xff] %v7991_v10  ;;  %3308 = vmatmul.bf16.gmra.mxu2 %v3087_v17  ;;  %v1432_v38 = vpop.f32.mrf.mxu1  ;;  %v5944_v17 = vld [vmem:[%s9188_s3 + $0x98] sm:$0xff] }
 0x202   : > { %2036 = vmatpush.bf16.msrb.mxu3 %v5944_v17 }
 0x203   : > { %v1804_v44 = vpop.f32.mrf.mxu2 }
 0x204   : > { %v7997_v48 = vadd.f32 %v1804_v44, %v1430_v59  ;;  %v3090_v59 = vor.u32 %v3088_v35, %v3086_v58  ;;  %v3096_v35 = vshrl.u32 %v6454_v6, 16 }
 0x205   : > { %1823 = vmatmul.bf16.vlgmr.msra.gmra.mxu3 %v7848_v22 }
 0x206   : > { %v3095_v22 = vsel %vm3043_vm4, %v3090_v59, %v3094_v3 }
 0x208   : > { %v8000_v24 = vpop.f32.mrf.mxu0 }
 0x209   : > { %9354 = vst [vmem:[#allocation75_spill] sm:$0xff] %v8000_v24  ;;  %v1435_v20 = vpop.f32.mrf.mxu1 }
 0x20b   : > { %2685 = vmatmul.bf16.gmra.mxu0 %v7796_v21  ;;  %v1806_v51 = vpop.f32.mrf.mxu2  ;;  %v6456_v21 = vld [vmem:[#allocation2 + $0x44] sm:$0xff]  }
 0x20c   : > { %v8003_v32 = vadd.f32 %v1806_v51, %v1432_v38  ;;  %2901 = vmatmul.bf16.gmra.mxu1 %v6452_v54  ;;  %v5943_v54 = vld [vmem:[%s9188_s3 + $0x90] sm:$0xff]  ;;  %v3100_v58 = vshll.u32 %v6456_v21, 16 }
 0x20d   : > { %2037 = vmatpush.bf16.msrb.mxu3 %v5943_v54 }
 0x20e   : > { %v3102_v17 = vrot.slane %v3100_v58, 1 }
 0x210   : > { %v8008_v23 = vpop.f32.mrf.mxu0 }
 0x211   : > { %9355 = vst [vmem:[#allocation76_spill] sm:$0xff] %v8008_v23  ;;  %3313 = vmatmul.bf16.gmra.mxu2 %v3095_v22  ;;  %v1437_v44 = vpop.f32.mrf.mxu1 }
 0x213   : > { %v1809_v8 = vpop.f32.mrf.mxu2 }
 0x214   : > { %v8011_v24 = vadd.f32 %v1809_v8, %v1435_v20  ;;  %v6330_v8 = vld [vmem:[#allocation2 + $0x90] sm:$0xff]   ;;  %v3098_v20 = vor.u32 %v3096_v35, %v3094_v3 }
 0x215   : > { %1828 = vmatmul.bf16.gmra.mxu3 %v7852_v1  ;;  %v2503_v23 = vshrl.u32 %v6330_v8, 16  ;;  %v2506_v54 = vshll.u32 %v6330_v8, 16 }
 0x216   : > { %v3103_v22 = vsel %vm3043_vm4, %v3098_v20, %v3102_v17 }
 0x217   : > { %v2505_v58 = vrot.slane %v2503_v23, 3  ;;  %v5941_v23 = vld [vmem:[%s9188_s3 + $0x80] sm:$0xff] }
 0x218   : > { %v8017_v38 = vpop.f32.mrf.mxu0 }
 0x219   : > { %9356 = vst [vmem:[#allocation77_spill] sm:$0xff] %v8017_v38  ;;  %v1440_v12 = vpop.f32.mrf.mxu1  ;;  %v5942_v38 = vld [vmem:[%s9188_s3 + $0x88] sm:$0xff] }
 0x21a   : > { %2038 = vmatpush.bf16.msrb.mxu3 %v5942_v38 }
 0x21b   : > { %2690 = vmatmul.bf16.gmra.mxu0 %v7815_v55  ;;  %v1811_v51 = vpop.f32.mrf.mxu2 }
 0x21c   : > { %v8020_v59 = vadd.f32 %v1811_v51, %v1437_v44  ;;  %2906 = vmatmul.bf16.gmra.mxu1 %v6454_v6  ;;  %v2508_v44 = vrot.slane %v2506_v54, 4  ;;  %v6458_v51 = vld [vmem:[#allocation2 + $0x4c] sm:$0xff]   ;;  %v3104_v54 = vshrl.u32 %v6456_v21, 16 }
 0x21d   : > { %v3108_v20 = vshll.u32 %v6458_v51, 16 }
 0x21e   : > { %v2509_v35 = vor.u32 %v2508_v44, %v2505_v58  ;;  %2039 = vmatpush.bf16.msrb.mxu3 %v5941_v23 }
 0x220   : > { %v8022_v1 = vpop.f32.mrf.mxu0 }
 0x221   : > { %9357 = vst [vmem:[#allocation78_spill] sm:$0xff] %v8022_v1  ;;  %3318 = vmatmul.bf16.gmra.mxu2 %v3103_v22  ;;  %v1442_v55 = vpop.f32.mrf.mxu1  ;;  %v2510_v1 = vsel %vm1869_vm2, %v7811_v33, %v2509_v35  ;;  %v6331_v22 = vld [vmem:[#allocation2 + $0x98] sm:$0xff]  }
 0x222   : > { %v2512_v58 = vshrl.u32 %v6331_v22, 16  ;;  %v2515_v44 = vshll.u32 %v6331_v22, 16  ;;  %v3116_v22 = vshll.u32 %v6460_v28, 16 }
 0x224   : > { %v1814_v10 = vpop.f32.mrf.mxu2  ;;  %v2514_v25 = vrot.slane %v2512_v58, 3  ;;  %v2517_v30 = vrot.slane %v2515_v44, 4 }
 0x225   : > { %v8028_v6 = vadd.f32 %v1814_v10, %v1440_v12  ;;  %1833 = vmatmul.bf16.gmra.mxu3 %v7293_v63  ;;  %v3110_v10 = vrot.slane %v3108_v20, 1  ;;  %v3106_v63 = vor.u32 %v3104_v54, %v3102_v17  ;;  %v3118_v54 = vrot.slane %v3116_v22, 1 }
 0x226   : > { %v2518_v17 = vor.u32 %v2517_v30, %v2514_v25  ;;  %v6521_v30 = vld [vmem:[#allocation2 + $0xa0] sm:$0xff]  }
 0x227   : > { %v3111_v33 = vsel %vm3043_vm4, %v3106_v63, %v3110_v10  ;;  %v2521_v58 = vshrl.u32 %v6521_v30, 16  ;;  %v2524_v44 = vshll.u32 %v6521_v30, 16 }
 0x228   : > { %v8031_v3 = vpop.f32.mrf.mxu0  ;;  %v2519_v23 = vsel %vm1869_vm2, %v2509_v35, %v2518_v17 }
 0x229   : > { %9358 = vst [vmem:[#allocation79_spill] sm:$0xff] %v8031_v3  ;;  %v1445_v8 = vpop.f32.mrf.mxu1  ;;  %v2526_v22 = vrot.slane %v2524_v44, 4 }
 0x22b   : > { %2695 = vmatmul.bf16.gmra.mxu0 %v2510_v1 }
 0x22c   : > { %v1816_v38 = vpop.f32.mrf.mxu2  ;;  %2911 = vmatmul.bf16.gmra.mxu1 %v6456_v21  ;;  %v5999_v21 = vld [vmem:[%s9188_s3 + $0x1b8] sm:$0xff] }
 0x22d   : > { %v8038_v12 = vadd.f32 %v1816_v38, %v1442_v55  ;;  %3831 = vmatpush.bf16.msra.mxu3 %v5999_v21 }
 0x230   : > { %v8040_v3 = vpop.f32.mrf.mxu0 }
 0x231   : > { %9359 = vst [vmem:[#allocation80_spill] sm:$0xff] %v8040_v3  ;;  %3323 = vmatmul.bf16.gmra.mxu2 %v3111_v33  ;;  %v1447_v1 = vpop.f32.mrf.mxu1  ;;  %v9367_v3 = vunpack.c.l.b16 %v7313_v13 }
 0x234   : > { %v1819_v47 = vpop.f32.mrf.mxu2 }
 0x235   : > { %v8043_v9 = vadd.f32 %v1819_v47, %v1445_v8  ;;  %1838 = vmatmul.bf16.gmra.mxu3 %v7304_v4  ;;  %v6007_v4 = vld [vmem:[%s9188_s3 + $0x1f8] sm:$0xff]  ;;  %v3112_v8 = vshrl.u32 %v6458_v51, 16 }
 0x236   : > { %4117 = vmatpush.bf16.msra.mxu0 %v6007_v4  ;;  %v6005_v4 = vld [vmem:[%s9188_s3 + $0x1e8] sm:$0xff] }
 0x237   : > { %v3114_v25 = vor.u32 %v3112_v8, %v3110_v10  ;;  %v2523_v10 = vrot.slane %v2521_v58, 3 }
 0x238   : > { %v8049_v55 = vpop.f32.mrf.mxu0  ;;  %v8051_v20 = vpop.f32.mrf.mxu3 }
 0x239   : > { %9360 = vst [vmem:[#allocation81_spill] sm:$0xff] %v8049_v55  ;;  %v8054_v38 = vpop.f32.mrf.mxu1  ;;  %v3119_v21 = vsel %vm3043_vm4, %v3114_v25, %v3118_v54  ;;  %v6462_v25 = vld [vmem:[#allocation2 + $0x5c] sm:$0xff]   ;;  %v2527_v30 = vor.u32 %v2526_v22, %v2523_v10 }
 0x23a   : > { %9361 = vst [vmem:[#allocation82_spill] sm:$0xff] %v8054_v38  ;;  %v3124_v44 = vshll.u32 %v6462_v25, 16  ;;  %v6003_v10 = vld [vmem:[%s9188_s3 + $0x1d8] sm:$0xff] }
 0x23b   : > { %2700 = vmatmul.bf16.gmra.mxu0 %v2519_v23  ;;  %v6006_v23 = vld [vmem:[%s9188_s3 + $0x1f0] sm:$0xff] }
 0x23c   : > { %v1821_v47 = vpop.f32.mrf.mxu2  ;;  %2916 = vmatmul.bf16.gmra.mxu1 %v6458_v51  ;;  %4118 = vmatpush.bf16.msra.mxu0 %v6006_v23  ;;  %v6004_v23 = vld [vmem:[%s9188_s3 + $0x1e0] sm:$0xff] }
 0x23d   : > { %v8059_v63 = vadd.f32 %v1821_v47, %v1447_v1  ;;  %v6015_v1 = vld [vmem:[%s9188_s3 + $0x238] sm:$0xff]  ;;  %v2227_v47 = vld [vmem:[#allocation2 + $0xac] sm:$0x3] }
 0x23e   : > { %4455 = vmatpush.bf16.msra.mxu1 %v6015_v1  ;;  %v2528_v1 = vsel %vm1869_vm2, %v2518_v17, %v2527_v30 }
 0x240   : > { %v8061_v33 = vpop.f32.mrf.mxu0  ;;  %v8063_v35 = vpop.f32.mrf.mxu3  ;;  %4119 = vmatpush.bf16.msra.mxu0 %v6005_v4  ;;  %v3120_v4 = vshrl.u32 %v6460_v28, 16 }
 0x241   : > { %9362 = vst [vmem:[#allocation83_spill] sm:$0xff] %v8061_v33  ;;  %3328 = vmatmul.bf16.gmra.mxu2 %v3119_v21  ;;  %v8072_v51 = vpop.f32.mrf.mxu1  ;;  %v8080_v33 = vunpack.c.l.b16 %v2227_v47  ;;  %v3126_v47 = vrot.slane %v3124_v44, 1 }
 0x242   : > { %9363 = vst [vmem:[#allocation84_spill] sm:$0xff] %v8072_v51 }
 0x244   : > { %v8077_v8 = vpop.f32.mrf.mxu2  ;;  %4120 = vmatpush.bf16.msra.mxu0 %v6004_v23  ;;  %v6002_v23 = vld [vmem:[%s9188_s3 + $0x1d0] sm:$0xff] }
 0x245   : > { %9364 = vst [vmem:[#allocation85_spill] sm:$0xff] %v8077_v8  ;;  %1843 = vmatmul.bf16.gmra.mxu3 %v7296_v0  ;;  %v2349_v0 = vpack.c.b16 %v8080_v33, %v9367_v3 }
 0x247   : > { %v2530_v61 = vshrl.u32 %v2349_v0, 16  ;;  %v2533_v17 = vshll.u32 %v2349_v0, 16  ;;  %v6464_v0 = vld [vmem:[#allocation2 + $0x64] sm:$0xff]  }
 0x248   : > { %v8082_v21 = vpop.f32.mrf.mxu0  ;;  %v8084_v58 = vpop.f32.mrf.mxu3  ;;  %4121 = vmatpush.bf16.msra.mxu0 %v6003_v10 }
 0x249   : > { %9365 = vst [vmem:[#allocation86_spill] sm:$0xff] %v8082_v21  ;;  %v8090_v55 = vpop.f32.mrf.mxu1  ;;  %v3122_v21 = vor.u32 %v3120_v4, %v3118_v54  ;;  %v2532_v27 = vrot.slane %v2530_v61, 3  ;;  %v2535_v44 = vrot.slane %v2533_v17, 4  ;;  %v6000_v61 = vld [vmem:[%s9188_s3 + $0x1c0] sm:$0xff] }
 0x24a   : > { %9366 = vst [vmem:[#allocation87_spill] sm:$0xff] %v8090_v55 }
 0x24b   : > { %2705 = vmatmul.bf16.gmra.mxu0 %v2528_v1  ;;  %v3127_v3 = vsel %vm3043_vm4, %v3122_v21, %v3126_v47  ;;  %v2536_v21 = vor.u32 %v2535_v44, %v2532_v27 }
 0x24c   : > { %v8098_v22 = vpop.f32.mrf.mxu2  ;;  %2921 = vmatmul.bf16.gmra.mxu1 %v6460_v28  ;;  %4122 = vmatpush.bf16.msra.mxu0 %v6002_v23  ;;  %v6001_v28 = vld [vmem:[%s9188_s3 + $0x1c8] sm:$0xff] }
 0x24d   : > { %9368 = vst [vmem:[#allocation88_spill] sm:$0xff] %v8098_v22  ;;  %v2537_v17 = vsel %vm1869_vm2, %v2527_v30, %v2536_v21  ;;  %v5998_v30 = vld [vmem:[%s9188_s3 + $0x1b0] sm:$0xff] }
 0x24e   : > { %3832 = vmatpush.bf16.msra.mxu3 %v5998_v30  ;;  %v3136_v30 = vshrl.u32 %v6464_v0, 16 }
 0x250   : > { %v8100_v46 = vpop.f32.mrf.mxu0  ;;  %v8102_v13 = vpop.f32.mrf.mxu3  ;;  %4123 = vmatpush.bf16.msra.mxu0 %v6001_v28 }
 0x251   : > { %9369 = vst [vmem:[#allocation89_spill] sm:$0xff] %v8100_v46  ;;  %3333 = vmatmul.bf16.gmra.mxu2 %v3127_v3  ;;  %v8108_v1 = vpop.f32.mrf.mxu1  ;;  %v3132_v3 = vshll.u32 %v6464_v0, 16 }
 0x252   : > { %9370 = vst [vmem:[#allocation90_spill] sm:$0xff] %v8108_v1 }
 0x253   : > { %v3134_v27 = vrot.slane %v3132_v3, 1 }
 0x254   : > { %v8113_v54 = vpop.f32.mrf.mxu2  ;;  %4124 = vmatpush.bf16.msra.mxu0 %v6000_v61 }
 0x255   : > { %9371 = vst [vmem:[#allocation91_spill] sm:$0xff] %v8113_v54  ;;  %2040 = vmatmul.bf16.vlgmr.msrb.gmra.mxu3 %v6849_v5  ;;  %v3128_v5 = vshrl.u32 %v6462_v25, 16 }
 0x257   : > { %v3130_v44 = vor.u32 %v3128_v5, %v3126_v47  ;;  %v6014_v5 = vld [vmem:[%s9188_s3 + $0x230] sm:$0xff] }
 0x258   : > { %v8116_v10 = vpop.f32.mrf.mxu0  ;;  %v8118_v4 = vpop.f32.mrf.mxu3  ;;  %4456 = vmatpush.bf16.msra.mxu1 %v6014_v5 }
 0x259   : > { %9372 = vst [vmem:[#allocation92_spill] sm:$0xff] %v8116_v10  ;;  %v8124_v23 = vpop.f32.mrf.mxu1  ;;  %v3135_v15 = vsel %vm3043_vm4, %v3130_v44, %v3134_v27 }
 0x25a   : > { %9373 = vst [vmem:[#allocation93_spill] sm:$0xff] %v8124_v23 }
 0x25b   : > { %2710 = vmatmul.bf16.gmra.mxu0 %v2537_v17  ;;  %v6466_v17 = vld [vmem:[#allocation2 + $0x6c] sm:$0xff]  }
 0x25c   : > { %v8126_v46 = vpop.f32.mrf.mxu2  ;;  %2926 = vmatmul.bf16.gmra.mxu1 %v6462_v25  ;;  %v3140_v3 = vshll.u32 %v6466_v17, 16 }
 0x25d   : > { %9374 = vst [vmem:[#allocation94_spill] sm:$0xff] %v8126_v46 }
 0x260   : > { %v8128_v28 = vpop.f32.mrf.mxu0  ;;  %v8130_v10 = vpop.f32.mrf.mxu3 }
 0x261   : > { %9375 = vst [vmem:[#allocation95_spill] sm:$0xff] %v8128_v28  ;;  %3338 = vmatmul.bf16.gmra.mxu2 %v3135_v15  ;;  %v8136_v23 = vpop.f32.mrf.mxu1  ;;  %v3142_v28 = vrot.slane %v3140_v3, 1 }
 0x262   : > { %9376 = vst [vmem:[#allocation96_spill] sm:$0xff] %v8136_v23  ;;  %v3138_v23 = vor.u32 %v3136_v30, %v3134_v27  ;;  %v4007_v27 = vrot.slane %v6906_v26, 1 }
 0x264   : > { %v8138_v61 = vpop.f32.mrf.mxu2 }
 0x265   : > { %9377 = vst [vmem:[#allocation97_spill] sm:$0xff] %v8138_v61  ;;  %2045 = vmatmul.bf16.gmra.mxu3 %v6864_v39  ;;  %v3143_v61 = vsel %vm3043_vm4, %v3138_v23, %v3142_v28 }
 0x268   : > { %v8141_v25 = vpop.f32.mrf.mxu0  ;;  %v8143_v47 = vpop.f32.mrf.mxu3 }
 0x269   : > { %9378 = vst [vmem:[#allocation98_spill] sm:$0xff] %v8141_v25  ;;  %v8148_v44 = vpop.f32.mrf.mxu1 }
 0x26a   : > { %9379 = vst [vmem:[#allocation99_spill] sm:$0xff] %v8148_v44  ;;  %v6468_v44 = vld [vmem:[#allocation2 + $0x74] sm:$0xff]  }
 0x26b   : > { %2715 = vmatmul.bf16.gmra.mxu0 %v2536_v21  ;;  %v6522_v21 = vld [vmem:[#allocation2 + $0x1c] sm:$0xff]  ;;  %v3148_v30 = vshll.u32 %v6468_v44, 16 }
 0x26c   : > { %v8150_v15 = vpop.f32.mrf.mxu2  ;;  %2931 = vmatmul.bf16.gmra.mxu1 %v6464_v0  ;;  %v4008_v5 = vrot.slane %v6522_v21, 1 }
 0x26d   : > { %9380 = vst [vmem:[#allocation100_spill] sm:$0xff] %v8150_v15 }
 0x26e   : > { %v4009_v23 = vsel %vm4006_vm5, %v4007_v27, %v4008_v5  ;;  %v6523_v27 = vld [vmem:[#allocation2 + $0x24] sm:$0xff] }
 0x270   : > { %v8152_v39 = vpop.f32.mrf.mxu0  ;;  %v8154_v25 = vpop.f32.mrf.mxu3 }
 0x271   : > { %9381 = vst [vmem:[#allocation101_spill] sm:$0xff] %v8152_v39  ;;  %3343 = vmatmul.bf16.gmra.mxu2 %v3143_v61  ;;  %v8157_v46 = vpop.f32.mrf.mxu1 }
 0x272   : > { %9382 = vst [vmem:[#allocation102_spill] sm:$0xff] %v8157_v46  ;;  %v3144_v46 = vshrl.u32 %v6466_v17, 16 }
 0x274   : > { %v8159_v1 = vpop.f32.mrf.mxu2 }
 0x275   : > { %9383 = vst [vmem:[#allocation103_spill] sm:$0xff] %v8159_v1  ;;  %2050 = vmatmul.bf16.gmra.mxu3 %v6897_v18  ;;  %v3150_v1 = vrot.slane %v3148_v30, 1  ;;  %v3146_v18 = vor.u32 %v3144_v46, %v3142_v28  ;;  %v5997_v28 = vld [vmem:[%s9188_s3 + $0x1a8] sm:$0xff] }
 0x276   : > { %3833 = vmatpush.bf16.msra.mxu3 %v5997_v28 }
 0x278   : > { %v8162_v3 = vpop.f32.mrf.mxu0  ;;  %v8164_v0 = vpop.f32.mrf.mxu3 }
 0x279   : > { %9384 = vst [vmem:[#allocation104_spill] sm:$0xff] %v8162_v3  ;;  %v8167_v39 = vpop.f32.mrf.mxu1  ;;  %v3151_v3 = vsel %vm3043_vm4, %v3146_v18, %v3150_v1 }
 0x27a   : > { %9385 = vst [vmem:[#allocation105_spill] sm:$0xff] %v8167_v39  ;;  %v6470_v39 = vld [vmem:[#allocation2 + $0x7c] sm:$0xff]  }
 0x27b   : > { %4125 = vmatmul.bf16.vlgmr.msra.gmra.mxu0 %v4009_v23  ;;  %v4010_v23 = vrot.slane %v6523_v27, 1  ;;  %v3156_v46 = vshll.u32 %v6470_v39, 16 }
 0x27c   : > { %v8170_v61 = vpop.f32.mrf.mxu2  ;;  %2936 = vmatmul.bf16.gmra.mxu1 %v6466_v17 }
 0x27d   : > { %9386 = vst [vmem:[#allocation106_spill] sm:$0xff] %v8170_v61  ;;  %v3158_v18 = vrot.slane %v3156_v46, 1 }
 0x280   : > { %v8172_v21 = vpop.f32.mrf.mxu0  ;;  %v1472_v15 = vpop.f32.mrf.mxu3 }
 0x281   : > { %9387 = vst [vmem:[#allocation107_spill] sm:$0xff] %v8172_v21  ;;  %3348 = vmatmul.bf16.gmra.mxu2 %v3151_v3  ;;  %v8175_v54 = vpop.f32.mrf.mxu1  ;;  %v4011_v15 = vsel %vm4006_vm5, %v4008_v5, %v4010_v23  ;;  %v6013_v5 = vld [vmem:[%s9188_s3 + $0x228] sm:$0xff] }
 0x282   : > { %9388 = vst [vmem:[#allocation108_spill] sm:$0xff] %v8175_v54  ;;  %4457 = vmatpush.bf16.msra.mxu1 %v6013_v5 }
 0x284   : > { %v8177_v26 = vpop.f32.mrf.mxu2 }
 0x285   : > { %9389 = vst [vmem:[#allocation109_spill] sm:$0xff] %v8177_v26  ;;  %2055 = vmatmul.bf16.gmra.mxu3 %v6965_v31  ;;  %v3152_v31 = vshrl.u32 %v6468_v44, 16 }
 0x287   : > { %v3154_v27 = vor.u32 %v3152_v31, %v3150_v1  ;;  %v6524_v1 = vld [vmem:[#allocation2 + $0x2c] sm:$0xff] }
 0x288   : > { %v8180_v61 = vpop.f32.mrf.mxu0  ;;  %v8182_v30 = vpop.f32.mrf.mxu3 }
 0x289   : > { %9390 = vst [vmem:[#allocation110_spill] sm:$0xff] %v8180_v61  ;;  %v8187_v17 = vpop.f32.mrf.mxu1  ;;  %v3159_v54 = vsel %vm3043_vm4, %v3154_v27, %v3158_v18 }
 0x28a   : > { %9391 = vst [vmem:[#allocation111_spill] sm:$0xff] %v8187_v17  ;;  %v3160_v17 = vshrl.u32 %v6470_v39, 16 }
 0x28b   : > { %4130 = vmatmul.bf16.gmra.mxu0 %v4011_v15  ;;  %v6472_v15 = vld [vmem:[#allocation2 + $0x84] sm:$0xff]  }
 0x28c   : > { %v8190_v3 = vpop.f32.mrf.mxu2  ;;  %2941 = vmatmul.bf16.gmra.mxu1 %v6468_v44  ;;  %v4012_v44 = vrot.slane %v6524_v1, 1  ;;  %v3164_v27 = vshll.u32 %v6472_v15, 16  ;;  %v3162_v5 = vor.u32 %v3160_v17, %v3158_v18 }
 0x28d   : > { %9392 = vst [vmem:[#allocation112_spill] sm:$0xff] %v8190_v3 }
 0x290   : > { %v8192_v61 = vpop.f32.mrf.mxu0  ;;  %v8194_v21 = vpop.f32.mrf.mxu3 }
 0x291   : > { %9393 = vst [vmem:[#allocation113_spill] sm:$0xff] %v8192_v61  ;;  %3353 = vmatmul.bf16.gmra.mxu2 %v3159_v54  ;;  %v8197_v26 = vpop.f32.mrf.mxu1  ;;  %v4013_v61 = vsel %vm4006_vm5, %v4010_v23, %v4012_v44 }
 0x292   : > { %9394 = vst [vmem:[#allocation114_spill] sm:$0xff] %v8197_v26 }
 0x294   : > { %v8202_v28 = vpop.f32.mrf.mxu2 }
 0x295   : > { %9395 = vst [vmem:[#allocation115_spill] sm:$0xff] %v8202_v28  ;;  %2060 = vmatmul.bf16.gmra.mxu3 %v7034_v11  ;;  %v3166_v28 = vrot.slane %v3164_v27, 1  ;;  %v3168_v27 = vshrl.u32 %v6472_v15, 16 }
 0x297   : > { %v3167_v1 = vsel %vm3043_vm4, %v3162_v5, %v3166_v28 }
 0x298   : > { %v8205_v46 = vpop.f32.mrf.mxu0  ;;  %v8207_v31 = vpop.f32.mrf.mxu3 }
 0x299   : > { %9396 = vst [vmem:[#allocation116_spill] sm:$0xff] %v8205_v46  ;;  %v8209_v54 = vpop.f32.mrf.mxu1 }
 0x29a   : > { %9397 = vst [vmem:[#allocation117_spill] sm:$0xff] %v8209_v54  ;;  %v6474_v54 = vld [vmem:[#allocation2 + $0x8c] sm:$0xff]  }
 0x29b   : > { %4135 = vmatmul.bf16.gmra.mxu0 %v4013_v61  ;;  %v6525_v61 = vld [vmem:[#allocation2 + $0x34] sm:$0xff]  ;;  %v3172_v5 = vshll.u32 %v6474_v54, 16 }
 0x29c   : > { %v8212_v26 = vpop.f32.mrf.mxu2  ;;  %2946 = vmatmul.bf16.gmra.mxu1 %v6470_v39  ;;  %v4014_v23 = vrot.slane %v6525_v61, 1 }
 0x29d   : > { %9398 = vst [vmem:[#allocation118_spill] sm:$0xff] %v8212_v26 }
 0x29e   : > { %v4015_v18 = vsel %vm4006_vm5, %v4012_v44, %v4014_v23  ;;  %v5996_v44 = vld [vmem:[%s9188_s3 + $0x1a0] sm:$0xff] }
 0x29f   : > { %3834 = vmatpush.bf16.msra.mxu3 %v5996_v44  ;;  %v6012_v44 = vld [vmem:[%s9188_s3 + $0x220] sm:$0xff] }
 0x2a0   : > { %v8214_v3 = vpop.f32.mrf.mxu0  ;;  %v8216_v11 = vpop.f32.mrf.mxu3  ;;  %4458 = vmatpush.bf16.msra.mxu1 %v6012_v44 }
 0x2a1   : > { %9399 = vst [vmem:[#allocation119_spill] sm:$0xff] %v8214_v3  ;;  %3358 = vmatmul.bf16.gmra.mxu2 %v3167_v1  ;;  %v8219_v46 = vpop.f32.mrf.mxu1  ;;  %v3170_v3 = vor.u32 %v3168_v27, %v3166_v28  ;;  %v6526_v28 = vld [vmem:[#allocation2 + $0x3c] sm:$0xff]  ;;  %v6476_v27 = vld [vmem:[#allocation2 + $0x94] sm:$0xff]  }
 0x2a2   : > { %9400 = vst [vmem:[#allocation120_spill] sm:$0xff] %v8219_v46  ;;  %v3174_v46 = vrot.slane %v3172_v5, 1  ;;  %v3184_v44 = vshrl.u32 %v6476_v27, 16 }
 0x2a4   : > { %v8221_v7 = vpop.f32.mrf.mxu2 }
 0x2a5   : > { %9401 = vst [vmem:[#allocation121_spill] sm:$0xff] %v8221_v7  ;;  %2065 = vmatmul.bf16.gmra.mxu3 %v7095_v57 }
 0x2a8   : > { %v8224_v26 = vpop.f32.mrf.mxu0  ;;  %v8226_v39 = vpop.f32.mrf.mxu3 }
 0x2a9   : > { %9402 = vst [vmem:[#allocation122_spill] sm:$0xff] %v8224_v26  ;;  %v8228_v17 = vpop.f32.mrf.mxu1  ;;  %v3175_v26 = vsel %vm3043_vm4, %v3170_v3, %v3174_v46 }
 0x2aa   : > { %9403 = vst [vmem:[#allocation123_spill] sm:$0xff] %v8228_v17 }
 0x2ab   : > { %4140 = vmatmul.bf16.gmra.mxu0 %v4015_v18  ;;  %v9408_v18 = vld [vmem:[#allocation9_spill] sm:$0xff] }
 0x2ac   : > { %v8231_v1 = vpop.f32.mrf.mxu2  ;;  %2951 = vmatmul.bf16.gmra.mxu1 %v6472_v15  ;;  %v4016_v15 = vrot.slane %v6526_v28, 1 }
 0x2ad   : > { %9404 = vst [vmem:[#allocation124_spill] sm:$0xff] %v8231_v1  ;;  %v3180_v1 = vshll.u32 %v6476_v27, 16 }
 0x2b0   : > { %v8233_v57 = vpop.f32.mrf.mxu0  ;;  %v8235_v61 = vpop.f32.mrf.mxu3 }
 0x2b1   : > { %9405 = vst [vmem:[#allocation125_spill] sm:$0xff] %v8233_v57  ;;  %3363 = vmatmul.bf16.gmra.mxu2 %v3175_v26  ;;  %v8238_v7 = vpop.f32.mrf.mxu1  ;;  %v4017_v26 = vsel %vm4006_vm5, %v4014_v23, %v4016_v15 }
 0x2b2   : > { %9406 = vst [vmem:[#allocation126_spill] sm:$0xff] %v8238_v7  ;;  %v3176_v7 = vshrl.u32 %v6474_v54, 16 }
 0x2b4   : > { %v8243_v17 = vpop.f32.mrf.mxu2 }
 0x2b5   : > { %9407 = vst [vmem:[#allocation127_spill] sm:$0xff] %v8243_v17  ;;  %2070 = vmatmul.bf16.gmra.mxu3 %v9408_v18  ;;  %v3178_v17 = vor.u32 %v3176_v7, %v3174_v46  ;;  %v3182_v18 = vrot.slane %v3180_v1, 1  ;;  %v6527_v7 = vld [vmem:[#allocation2 + $0x44] sm:$0xff] }
 0x2b6   : > { %v4018_v46 = vrot.slane %v6527_v7, 1 }
 0x2b8   : > { %v8246_v5 = vpop.f32.mrf.mxu0  ;;  %v8248_v57 = vpop.f32.mrf.mxu3  ;;  %v4019_v51 = vsel %vm4006_vm5, %v4016_v15, %v4018_v46 }
 0x2b9   : > { %9409 = vst [vmem:[#allocation9_spill] sm:$0xff] %v8246_v5  ;;  %v8250_v3 = vpop.f32.mrf.mxu1 }
 0x2ba   : > { %9410 = vst [vmem:[#allocation128_spill] sm:$0xff] %v8250_v3  ;;  %v3183_v3 = vsel %vm3043_vm4, %v3178_v17, %v3182_v18 }
 0x2bb   : > { %4145 = vmatmul.bf16.gmra.mxu0 %v4017_v26 }
 0x2bc   : > { %v8253_v55 = vpop.f32.mrf.mxu2  ;;  %2956 = vmatmul.bf16.gmra.mxu1 %v6474_v54  ;;  %v6477_v54 = vld [vmem:[#allocation2 + $0x9c] sm:$0xff]  }
 0x2bd   : > { %9411 = vst [vmem:[#allocation129_spill] sm:$0xff] %v8253_v55  ;;  %v9415_v55 = vld [vmem:[#allocation12_spill] sm:$0xff]  ;;  %v3188_v17 = vshll.u32 %v6477_v54, 16  ;;  %v3192_v38 = vshrl.u32 %v6477_v54, 16 }
 0x2bf   : > { %v3190_v7 = vrot.slane %v3188_v17, 1  ;;  %v9425_v17 = vld [vmem:[#allocation19_spill] sm:$0xff] }
 0x2c0   : > { %v8258_v28 = vpop.f32.mrf.mxu0  ;;  %v8260_v5 = vpop.f32.mrf.mxu3 }
 0x2c1   : > { %9412 = vst [vmem:[#allocation130_spill] sm:$0xff] %v8258_v28  ;;  %3368 = vmatmul.bf16.gmra.mxu2 %v3183_v3  ;;  %v8263_v23 = vpop.f32.mrf.mxu1 }
 0x2c2   : > { %9413 = vst [vmem:[#allocation131_spill] sm:$0xff] %v8263_v23  ;;  %v3186_v23 = vor.u32 %v3184_v44, %v3182_v18  ;;  %v6528_v18 = vld [vmem:[#allocation2 + $0x4c] sm:$0xff] }
 0x2c4   : > { %v8265_v26 = vpop.f32.mrf.mxu2  ;;  %v3191_v8 = vsel %vm3043_vm4, %v3186_v23, %v3190_v7 }
 0x2c5   : > { %9414 = vst [vmem:[#allocation132_spill] sm:$0xff] %v8265_v26  ;;  %2075 = vmatmul.bf16.gmra.mxu3 %v9415_v55  ;;  %v6023_v55 = vld [vmem:[%s9190_s5 + $0x38] sm:$0xff] }
 0x2c6   : > { %4784 = vmatpush.bf16.msra.mxu2 %v6023_v55  ;;  %v3196_v55 = vshll.u32 %v9425_v17, 16 }
 0x2c8   : > { %v8268_v22 = vpop.f32.mrf.mxu0  ;;  %v8270_v1 = vpop.f32.mrf.mxu3 }
 0x2c9   : > { %9416 = vst [vmem:[#allocation12_spill] sm:$0xff] %v8268_v22  ;;  %v8272_v28 = vpop.f32.mrf.mxu1 }
 0x2ca   : > { %9417 = vst [vmem:[#allocation133_spill] sm:$0xff] %v8270_v1  ;;  %v9426_v1 = vld [vmem:[#allocation15_spill] sm:$0xff] }
 0x2cb   : > { %9418 = vst [vmem:[#allocation134_spill] sm:$0xff] %v8272_v28  ;;  %4150 = vmatmul.bf16.gmra.mxu0 %v4019_v51  ;;  %v9423_v51 = vld [vmem:[#allocation18_spill] sm:$0xff] }
 0x2cc   : > { %v8275_v3 = vpop.f32.mrf.mxu2  ;;  %2961 = vmatmul.bf16.gmra.mxu1 %v6476_v27  ;;  %v4020_v27 = vrot.slane %v6528_v18, 1  ;;  %v3022_v18 = vld [vmem:[#allocation2 + $0xac] sm:$0x7] }
 0x2cd   : > { %9419 = vst [vmem:[#allocation135_spill] sm:$0xff] %v8275_v3 }
 0x2d0   : > { %v8280_v22 = vpop.f32.mrf.mxu0  ;;  %v1846_v26 = vpop.f32.mrf.mxu3 }
 0x2d1   : > { %9420 = vst [vmem:[#allocation136_spill] sm:$0xff] %v8280_v22  ;;  %3373 = vmatmul.bf16.gmra.mxu2 %v3191_v8  ;;  %v8283_v28 = vpop.f32.mrf.mxu1  ;;  %v4021_v8 = vsel %vm4006_vm5, %v4018_v46, %v4020_v27 }
 0x2d2   : > { %9421 = vst [vmem:[#allocation137_spill] sm:$0xff] %v8283_v28  ;;  %v3194_v28 = vor.u32 %v3192_v38, %v3190_v7  ;;  %v9431_v38 = vld [vmem:[#allocation16_spill] sm:$0xff] }
 0x2d4   : > { %v8285_v15 = vpop.f32.mrf.mxu2 }
 0x2d5   : > { %9422 = vst [vmem:[#allocation138_spill] sm:$0xff] %v8285_v15  ;;  %2080 = vmatmul.bf16.gmra.mxu3 %v9423_v51  ;;  %v3198_v51 = vrot.slane %v3196_v55, 1  ;;  %v6010_v55 = vld [vmem:[%s9188_s3 + $0x210] sm:$0xff]  ;;  %v9437_v15 = vld [vmem:[#allocation17_spill] sm:$0xff] }
 0x2d8   : > { %v8288_v44 = vpop.f32.mrf.mxu0  ;;  %v2041_v3 = vpop.f32.mrf.mxu3 }
 0x2d9   : > { %9424 = vst [vmem:[#allocation18_spill] sm:$0xff] %v8288_v44  ;;  %v8292_v22 = vadd.f32 %v2041_v3, %v9426_v1  ;;  %v8294_v26 = vpop.f32.mrf.mxu1  ;;  %v5995_v44 = vld [vmem:[%s9188_s3 + $0x198] sm:$0xff] }
 0x2da   : > { %9428 = vst [vmem:[#allocation15_spill] sm:$0xff] %v8294_v26  ;;  %v6011_v1 = vld [vmem:[%s9188_s3 + $0x218] sm:$0xff]  ;;  %3835 = vmatpush.bf16.msra.mxu3 %v5995_v44  ;;  %v3041_v26 = vunpack.c.l.b16 %v3022_v18 }
 0x2db   : > { %9427 = vst [vmem:[#allocation19_spill] sm:$0xff] %v8292_v22  ;;  %4155 = vmatmul.bf16.gmra.mxu0 %v4021_v8  ;;  %4459 = vmatpush.bf16.msra.mxu1 %v6011_v1  ;;  %v3199_v8 = vsel %vm3043_vm4, %v3194_v28, %v3198_v51  ;;  %v9435_v1 = vld [vmem:[#allocation21_spill] sm:$0xff]  ;;  %v6529_v18 = vld [vmem:[#allocation2 + $0x54] sm:$0xff] }
 0x2dc   : > { %v8297_v23 = vpop.f32.mrf.mxu2  ;;  %2966 = vmatmul.bf16.gmra.mxu1 %v6477_v54  ;;  %v3042_v44 = vpack.c.b16 %v3041_v26, %v3041_v26  ;;  %v6009_v28 = vld [vmem:[%s9188_s3 + $0x208] sm:$0xff] }
 0x2dd   : > { %9429 = vst [vmem:[#allocation139_spill] sm:$0xff] %v8297_v23 }
 0x2df   : > { %4460 = vmatpush.bf16.msra.mxu1 %v6010_v55 }
 0x2e0   : > { %v8305_v3 = vpop.f32.mrf.mxu0  ;;  %v2043_v46 = vpop.f32.mrf.mxu3 }
 0x2e1   : > { %9430 = vst [vmem:[#allocation140_spill] sm:$0xff] %v8305_v3  ;;  %v8309_v7 = vadd.f32 %v2043_v46, %v9431_v38  ;;  %3378 = vmatmul.bf16.gmra.mxu2 %v3199_v8  ;;  %v8311_v54 = vpop.f32.mrf.mxu1  ;;  %v4022_v46 = vrot.slane %v6529_v18, 1  ;;  %v3200_v3 = vshrl.u32 %v9425_v17, 16 }
 0x2e2   : > { %9433 = vst [vmem:[#allocation141_spill] sm:$0xff] %v8311_v54  ;;  %v3204_v54 = vshll.u32 %v3042_v44, 16 }
 0x2e3   : > { %9432 = vst [vmem:[#allocation16_spill] sm:$0xff] %v8309_v7  ;;  %4461 = vmatpush.bf16.msra.mxu1 %v6009_v28  ;;  %v4023_v55 = vsel %vm4006_vm5, %v4020_v27, %v4022_v46 }
 0x2e4   : > { %v8316_v23 = vpop.f32.mrf.mxu2 }
 0x2e5   : > { %9434 = vst [vmem:[#allocation142_spill] sm:$0xff] %v8316_v23  ;;  %2085 = vmatmul.bf16.gmra.mxu3 %v9435_v1  ;;  %v6008_v1 = vld [vmem:[%s9188_s3 + $0x200] sm:$0xff]  ;;  %v3206_v23 = vrot.slane %v3204_v54, 1 }
 0x2e7   : > { %4462 = vmatpush.bf16.msra.mxu1 %v6008_v1 }
 0x2e8   : > { %v8322_v38 = vpop.f32.mrf.mxu0  ;;  %v2046_v8 = vpop.f32.mrf.mxu3 }
 0x2e9   : > { %9436 = vst [vmem:[#allocation21_spill] sm:$0xff] %v8322_v38  ;;  %v8326_v7 = vadd.f32 %v2046_v8, %v9437_v15  ;;  %v8328_v26 = vpop.f32.mrf.mxu1  ;;  %v3202_v38 = vor.u32 %v3200_v3, %v3198_v51  ;;  %v9441_v8 = vld [vmem:[#allocation20_spill] sm:$0xff] }
 0x2ea   : > { %9439 = vst [vmem:[#allocation143_spill] sm:$0xff] %v8328_v26 }
 0x2eb   : > { %9438 = vst [vmem:[#allocation17_spill] sm:$0xff] %v8326_v7  ;;  %4160 = vmatmul.bf16.gmra.mxu0 %v4023_v55  ;;  %v3207_v28 = vsel %vm3043_vm4, %v3202_v38, %v3206_v23  ;;  %v9444_v7 = vld [vmem:[#allocation22_spill] sm:$0xff] }
 0x2ec   : > { %v8334_v18 = vpop.f32.mrf.mxu2  ;;  %2971 = vmatmul.bf16.gmra.mxu1 %v9425_v17  ;;  %v9445_v17 = vld [vmem:[#allocation23_spill] sm:$0xff] }
 0x2ed   : > { %9440 = vst [vmem:[#allocation144_spill] sm:$0xff] %v8334_v18  ;;  %v6530_v18 = vld [vmem:[#allocation2 + $0x5c] sm:$0xff] }
 0x2ee   : > { %v4024_v51 = vrot.slane %v6530_v18, 1 }
 0x2f0   : > { %v2718_v22 = vpop.f32.mrf.mxu0  ;;  %v2048_v15 = vpop.f32.mrf.mxu3  ;;  %v4025_v1 = vsel %vm4006_vm5, %v4022_v46, %v4024_v51  ;;  %v9451_v46 = vld [vmem:[#allocation28_spill] sm:$0xff] }
 0x2f1   : > { %v8339_v26 = vadd.f32 %v2048_v15, %v9441_v8  ;;  %3383 = vmatmul.bf16.gmra.mxu2 %v3207_v28  ;;  %v8341_v27 = vpop.f32.mrf.mxu1  ;;  %v6022_v22 = vld [vmem:[%s9190_s5 + $0x30] sm:$0xff]  ;;  %v2798_v15 = vpack.c.b16 %v8080_v33, %v8080_v33 }
 0x2f2   : > { %9442 = vst [vmem:[#allocation20_spill] sm:$0xff] %v8341_v27  ;;  %4785 = vmatpush.bf16.msra.mxu2 %v6022_v22  ;;  %v9448_v27 = vld [vmem:[#allocation25_spill] sm:$0xff]  ;;  %v5994_v33 = vld [vmem:[%s9188_s3 + $0x190] sm:$0xff] }
 0x2f3   : > { %3836 = vmatpush.bf16.msra.mxu3 %v5994_v33 }
 0x2f4   : > { %v8343_v55 = vpop.f32.mrf.mxu2 }
 0x2f5   : > { %9443 = vst [vmem:[#allocation145_spill] sm:$0xff] %v8343_v55  ;;  %2090 = vmatmul.bf16.gmra.mxu3 %v9444_v7  ;;  %v3208_v7 = vshrl.u32 %v3042_v44, 16  ;;  %v6531_v44 = vld [vmem:[#allocation2 + $0x64] sm:$0xff] }
 0x2f6   : > { %v4026_v22 = vrot.slane %v6531_v44, 1 }
 0x2f7   : > { %v3210_v18 = vor.u32 %v3208_v7, %v3206_v23  ;;  %v9452_v23 = vld [vmem:[#allocation29_spill] sm:$0xff] }
 0x2f8   : > { %v2051_v3 = vpop.f32.mrf.mxu3  ;;  %v4027_v7 = vsel %vm4006_vm5, %v4024_v51, %v4026_v22 }
 0x2f9   : > { %v8350_v54 = vadd.f32 %v2051_v3, %v9445_v17  ;;  %v8352_v38 = vpop.f32.mrf.mxu1 }
 0x2fa   : > { %9446 = vst [vmem:[#allocation22_spill] sm:$0xff] %v8352_v38 }
 0x2fb   : > { %4165 = vmatmul.bf16.gmra.mxu0 %v4025_v1 }
 0x2fc   : > { %v8357_v28 = vpop.f32.mrf.mxu2  ;;  %2976 = vmatmul.bf16.gmra.mxu1 %v2798_v15 }
 0x2fd   : > { %9447 = vst [vmem:[#allocation23_spill] sm:$0xff] %v8357_v28 }
 0x300   : > { %v2053_v8 = vpop.f32.mrf.mxu3 }
 0x301   : > { %v8360_v55 = vadd.f32 %v2053_v8, %v9448_v27  ;;  %3388 = vmatmul.bf16.gmra.mxu2 %v3210_v18  ;;  %v8362_v3 = vpop.f32.mrf.mxu1  ;;  %v9456_v8 = vld [vmem:[#allocation3_spill] sm:$0xff] }
 0x302   : > { %9449 = vst [vmem:[#allocation25_spill] sm:$0xff] %v8362_v3  ;;  %v8379_v3 = vpop.f32.mrf.mxu0 }
 0x304   : > { %v8364_v17 = vpop.f32.mrf.mxu2 }
 0x305   : > { %9450 = vst [vmem:[#allocation146_spill] sm:$0xff] %v8364_v17  ;;  %2095 = vmatmul.bf16.gmra.mxu3 %v9451_v46 }
 0x308   : > { %v2056_v1 = vpop.f32.mrf.mxu3 }
 0x309   : > { %v8371_v15 = vadd.f32 %v2056_v1, %v9452_v23  ;;  %v8373_v27 = vpop.f32.mrf.mxu1  ;;  %v9460_v1 = vld [vmem:[#allocation35_spill] sm:$0xff]  ;;  %v6532_v23 = vld [vmem:[#allocation2 + $0x6c] sm:$0xff] }
 0x30a   : > { %9454 = vst [vmem:[#allocation29_spill] sm:$0xff] %v8373_v27  ;;  %v4028_v27 = vrot.slane %v6532_v23, 1  ;;  %v8395_v28 = vpop.f32.mrf.mxu0 }
 0x30b   : > { %9453 = vst [vmem:[#allocation28_spill] sm:$0xff] %v8371_v15  ;;  %4170 = vmatmul.bf16.gmra.mxu0 %v4027_v7  ;;  %v9461_v7 = vld [vmem:[#allocation36_spill] sm:$0xff] }
 0x30c   : > { %v8376_v18 = vpop.f32.mrf.mxu2  ;;  %4463 = vmatmul.bf16.vlgmr.msra.gmra.mxu1 %v9456_v8  ;;  %v4029_v8 = vsel %vm4006_vm5, %v4026_v22, %v4028_v27 }
 0x30d   : > { %9455 = vst [vmem:[#allocation147_spill] sm:$0xff] %v8376_v18 }
 0x310   : > { %v2058_v46 = vpop.f32.mrf.mxu3 }
 0x311   : > { %v8382_v17 = vadd.f32 %v2058_v46, %v7490_v53  ;;  %v8384_v33 = vpop.f32.mrf.mxu1  ;;  %v9465_v46 = vld [vmem:[#allocation5_spill] sm:$0xff] }
 0x312   : > { %9458 = vst [vmem:[#allocation148_spill] sm:$0xff] %v8384_v33  ;;  %v8410_v22 = vpop.f32.mrf.mxu0 }
 0x313   : > { %9457 = vst [vmem:[#allocation3_spill] sm:$0xff] %v8382_v17 }
 0x314   : > { %v8386_v44 = vpop.f32.mrf.mxu2 }
 0x315   : > { %9459 = vst [vmem:[#allocation149_spill] sm:$0xff] %v8386_v44  ;;  %2100 = vmatmul.bf16.gmra.mxu3 %v9460_v1  ;;  %v9466_v44 = vld [vmem:[#allocation40_spill] sm:$0xff] }
 0x318   : > { %v2061_v51 = vpop.f32.mrf.mxu3 }
 0x319   : > { %v8390_v38 = vadd.f32 %v2061_v51, %v9461_v7  ;;  %v8392_v18 = vpop.f32.mrf.mxu1  ;;  %v6021_v51 = vld [vmem:[%s9190_s5 + $0x28] sm:$0xff] }
 0x31a   : > { %9463 = vst [vmem:[#allocation36_spill] sm:$0xff] %v8392_v18  ;;  %v9470_v18 = vld [vmem:[#allocation42_spill] sm:$0xff]  ;;  %4786 = vmatpush.bf16.msra.mxu2 %v6021_v51 }
 0x31b   : > { %9462 = vst [vmem:[#allocation35_spill] sm:$0xff] %v8390_v38  ;;  %4175 = vmatmul.bf16.gmra.mxu0 %v4029_v8  ;;  %v6533_v8 = vld [vmem:[#allocation2 + $0x74] sm:$0xff]  ;;  %v9471_v38 = vld [vmem:[#allocation44_spill] sm:$0xff] }
 0x31c   : > { %v8397_v53 = vpop.f32.mrf.mxu2  ;;  %4468 = vmatmul.bf16.gmra.mxu1 %v9465_v46 }
 0x31d   : > { %9464 = vst [vmem:[#allocation150_spill] sm:$0xff] %v8397_v53  ;;  %v4030_v53 = vrot.slane %v6533_v8, 1 }
 0x320   : > { %v2063_v33 = vpop.f32.mrf.mxu3 }
 0x321   : > { %v8401_v1 = vadd.f32 %v2063_v33, %v9466_v44  ;;  %v8403_v23 = vpop.f32.mrf.mxu1  ;;  %v4031_v44 = vsel %vm4006_vm5, %v4028_v27, %v4030_v53  ;;  %v6534_v27 = vld [vmem:[#allocation2 + $0x7c] sm:$0xff] }
 0x322   : > { %9468 = vst [vmem:[#allocation40_spill] sm:$0xff] %v8403_v23 }
 0x323   : > { %9467 = vst [vmem:[#allocation5_spill] sm:$0xff] %v8401_v1  ;;  %v9474_v1 = vld [vmem:[#allocation7_spill] sm:$0xff] }
 0x324   : > { %v8408_v7 = vpop.f32.mrf.mxu2 }
 0x325   : > { %9469 = vst [vmem:[#allocation151_spill] sm:$0xff] %v8408_v7  ;;  %2105 = vmatmul.bf16.gmra.mxu3 %v9470_v18  ;;  %v8422_v7 = vpop.f32.mrf.mxu0 }
 0x328   : > { %v2066_v46 = vpop.f32.mrf.mxu3 }
 0x329   : > { %v8414_v17 = vadd.f32 %v2066_v46, %v9471_v38  ;;  %v8416_v33 = vpop.f32.mrf.mxu1  ;;  %v5993_v38 = vld [vmem:[%s9188_s3 + $0x188] sm:$0xff]  ;;  %v4032_v46 = vrot.slane %v6534_v27, 1 }
 0x32a   : > { %9472 = vst [vmem:[#allocation42_spill] sm:$0xff] %v8416_v33  ;;  %3837 = vmatpush.bf16.msra.mxu3 %v5993_v38 }
 0x32b   : > { %4180 = vmatmul.bf16.gmra.mxu0 %v4031_v44 }
 0x32c   : > { %v8419_v23 = vpop.f32.mrf.mxu2  ;;  %4473 = vmatmul.bf16.gmra.mxu1 %v9474_v1 }
 0x32d   : > { %9473 = vst [vmem:[#allocation44_spill] sm:$0xff] %v8419_v23  ;;  %v8435_v44 = vpop.f32.mrf.mxu0  ;;  %v9480_v23 = vld [vmem:[#allocation10_spill] sm:$0xff] }
 0x330   : > { %v2068_v15 = vpop.f32.mrf.mxu3 }
 0x331   : > { %v8425_v18 = vadd.f32 %v2068_v15, %v7733_v34  ;;  %v8427_v51 = vpop.f32.mrf.mxu1  ;;  %v4033_v15 = vsel %vm4006_vm5, %v4030_v53, %v4032_v46 }
 0x332   : > { %9476 = vst [vmem:[#allocation152_spill] sm:$0xff] %v8427_v51 }
 0x333   : > { %9475 = vst [vmem:[#allocation7_spill] sm:$0xff] %v8425_v18 }
 0x334   : > { %v8432_v8 = vpop.f32.mrf.mxu2 }
 0x335   : > { %9477 = vst [vmem:[#allocation153_spill] sm:$0xff] %v8432_v8  ;;  %2110 = vmatmul.bf16.gmra.mxu3 %v7764_v19  ;;  %v8451_v27 = vpop.f32.mrf.mxu0 }
 0x338   : > { %v2071_v1 = vpop.f32.mrf.mxu3 }
 0x339   : > { %v8438_v33 = vadd.f32 %v2071_v1, %v7781_v56  ;;  %v8440_v34 = vpop.f32.mrf.mxu1  ;;  %v6535_v56 = vld [vmem:[#allocation2 + $0x84] sm:$0xff] }
 0x33a   : > { %9478 = vst [vmem:[#allocation154_spill] sm:$0xff] %v8440_v34  ;;  %v4034_v1 = vrot.slane %v6535_v56, 1 }
 0x33b   : > { %4185 = vmatmul.bf16.gmra.mxu0 %v4033_v15  ;;  %v9484_v15 = vld [vmem:[#allocation57_spill] sm:$0xff] }
 0x33c   : > { %v8443_v51 = vpop.f32.mrf.mxu2  ;;  %4478 = vmatmul.bf16.gmra.mxu1 %v9480_v23  ;;  %v4035_v23 = vsel %vm4006_vm5, %v4032_v46, %v4034_v1  ;;  %v9491_v46 = vld [vmem:[#allocation59_spill] sm:$0xff] }
 0x33d   : > { %9479 = vst [vmem:[#allocation155_spill] sm:$0xff] %v8443_v51 }
 0x340   : > { %v2073_v8 = vpop.f32.mrf.mxu3 }
 0x341   : > { %v8447_v19 = vadd.f32 %v2073_v8, %v7809_v40  ;;  %v8449_v38 = vpop.f32.mrf.mxu1  ;;  %v6020_v40 = vld [vmem:[%s9190_s5 + $0x20] sm:$0xff] }
 0x342   : > { %9482 = vst [vmem:[#allocation156_spill] sm:$0xff] %v8449_v38  ;;  %v8467_v38 = vpop.f32.mrf.mxu0  ;;  %4787 = vmatpush.bf16.msra.mxu2 %v6020_v40 }
 0x343   : > { %9481 = vst [vmem:[#allocation10_spill] sm:$0xff] %v8447_v19 }
 0x344   : > { %v8453_v18 = vpop.f32.mrf.mxu2 }
 0x345   : > { %9483 = vst [vmem:[#allocation157_spill] sm:$0xff] %v8453_v18  ;;  %2115 = vmatmul.bf16.gmra.mxu3 %v7828_v36  ;;  %v9488_v36 = vld [vmem:[#allocation13_spill] sm:$0xff] }
 0x348   : > { %v2076_v53 = vpop.f32.mrf.mxu3 }
 0x349   : > { %v8457_v34 = vadd.f32 %v2076_v53, %v9484_v15  ;;  %v8459_v51 = vpop.f32.mrf.mxu1 }
 0x34a   : > { %9486 = vst [vmem:[#allocation158_spill] sm:$0xff] %v8459_v51 }
 0x34b   : > { %9485 = vst [vmem:[#allocation57_spill] sm:$0xff] %v8457_v34  ;;  %4190 = vmatmul.bf16.gmra.mxu0 %v4035_v23  ;;  %v6536_v23 = vld [vmem:[#allocation2 + $0x8c] sm:$0xff]  ;;  %v8478_v34 = vpop.f32.mrf.mxu0 }
 0x34c   : > { %v8465_v8 = vpop.f32.mrf.mxu2  ;;  %4483 = vmatmul.bf16.gmra.mxu1 %v9488_v36  ;;  %v4036_v18 = vrot.slane %v6536_v23, 1 }
 0x34d   : > { %9487 = vst [vmem:[#allocation159_spill] sm:$0xff] %v8465_v8 }
 0x34e   : > { %v4037_v40 = vsel %vm4006_vm5, %v4034_v1, %v4036_v18 }
 0x350   : > { %v2078_v56 = vpop.f32.mrf.mxu3 }
 0x351   : > { %v8471_v53 = vadd.f32 %v2078_v56, %v7875_v52  ;;  %v8473_v15 = vpop.f32.mrf.mxu1  ;;  %v5992_v52 = vld [vmem:[%s9188_s3 + $0x180] sm:$0xff] }
 0x352   : > { %9489 = vst [vmem:[#allocation13_spill] sm:$0xff] %v8473_v15  ;;  %3838 = vmatpush.bf16.msra.mxu3 %v5992_v52 }
 0x353   : > { %v8492_v15 = vpop.f32.mrf.mxu0 }
 0x354   : > { %v8475_v51 = vpop.f32.mrf.mxu2 }
 0x355   : > { %9490 = vst [vmem:[#allocation160_spill] sm:$0xff] %v8475_v51  ;;  %2120 = vmatmul.bf16.gmra.mxu3 %v9491_v46  ;;  %v9495_v46 = vld [vmem:[#allocation24_spill] sm:$0xff] }
 0x358   : > { %v2081_v8 = vpop.f32.mrf.mxu3 }
 0x359   : > { %v8481_v19 = vadd.f32 %v2081_v8, %v7908_v37  ;;  %v8483_v36 = vpop.f32.mrf.mxu1 }
 0x35a   : > { %9493 = vst [vmem:[#allocation161_spill] sm:$0xff] %v8483_v36 }
 0x35b   : > { %9492 = vst [vmem:[#allocation59_spill] sm:$0xff] %v8481_v19  ;;  %4195 = vmatmul.bf16.gmra.mxu0 %v4037_v40  ;;  %v6537_v40 = vld [vmem:[#allocation2 + $0x94] sm:$0xff]  ;;  %v8508_v19 = vpop.f32.mrf.mxu0 }
 0x35c   : > { %v8489_v56 = vpop.f32.mrf.mxu2  ;;  %4488 = vmatmul.bf16.gmra.mxu1 %v9495_v46  ;;  %v4038_v51 = vrot.slane %v6537_v40, 1 }
 0x35d   : > { %9494 = vst [vmem:[#allocation162_spill] sm:$0xff] %v8489_v56 }
 0x35e   : > { %v4039_v52 = vsel %vm4006_vm5, %v4036_v18, %v4038_v51  ;;  %v6019_v18 = vld [vmem:[%s9190_s5 + $0x18] sm:$0xff] }
 0x35f   : > { %4788 = vmatpush.bf16.msra.mxu2 %v6019_v18 }
 0x360   : > { %v2083_v23 = vpop.f32.mrf.mxu3 }
 0x361   : > { %v8495_v37 = vadd.f32 %v2083_v23, %v7919_v16  ;;  %v8497_v8 = vpop.f32.mrf.mxu1  ;;  %v9502_v23 = vld [vmem:[#allocation26_spill] sm:$0xff] }
 0x362   : > { %9497 = vst [vmem:[#allocation163_spill] sm:$0xff] %v8497_v8 }
 0x363   : > { %9496 = vst [vmem:[#allocation24_spill] sm:$0xff] %v8495_v37  ;;  %v9515_v37 = vld [vmem:[#allocation33_spill] sm:$0xff] }
 0x364   : > { %v8499_v36 = vpop.f32.mrf.mxu2 }
 0x365   : > { %9498 = vst [vmem:[#allocation164_spill] sm:$0xff] %v8499_v36  ;;  %2125 = vmatmul.bf16.gmra.mxu3 %v7895_v41 }
 0x368   : > { %v2086_v1 = vpop.f32.mrf.mxu3 }
 0x369   : > { %v8503_v56 = vadd.f32 %v2086_v1, %v7926_v29  ;;  %v8505_v46 = vpop.f32.mrf.mxu1  ;;  %v8520_v29 = vpop.f32.mrf.mxu0  ;;  %v9506_v1 = vld [vmem:[#allocation27_spill] sm:$0xff] }
 0x36a   : > { %9500 = vst [vmem:[#allocation166_spill] sm:$0xff] %v8505_v46 }
 0x36b   : > { %9499 = vst [vmem:[#allocation165_spill] sm:$0xff] %v8503_v56  ;;  %4200 = vmatmul.bf16.gmra.mxu0 %v4039_v52  ;;  %v6538_v52 = vld [vmem:[#allocation2 + $0x9c] sm:$0xff] }
 0x36c   : > { %v8510_v16 = vpop.f32.mrf.mxu2  ;;  %4493 = vmatmul.bf16.gmra.mxu1 %v9502_v23  ;;  %v4040_v46 = vrot.slane %v6538_v52, 1 }
 0x36d   : > { %9501 = vst [vmem:[#allocation167_spill] sm:$0xff] %v8510_v16 }
 0x370   : > { %v2088_v8 = vpop.f32.mrf.mxu3 }
 0x371   : > { %v8514_v41 = vadd.f32 %v2088_v8, %v7944_v2  ;;  %v8516_v36 = vpop.f32.mrf.mxu1  ;;  %v4041_v8 = vsel %vm4006_vm5, %v4038_v51, %v4040_v46 }
 0x372   : > { %9504 = vst [vmem:[#allocation168_spill] sm:$0xff] %v8516_v36 }
 0x373   : > { %9503 = vst [vmem:[#allocation26_spill] sm:$0xff] %v8514_v41 }
 0x374   : > { %v8518_v40 = vpop.f32.mrf.mxu2 }
 0x375   : > { %9505 = vst [vmem:[#allocation169_spill] sm:$0xff] %v8518_v40  ;;  %2130 = vmatmul.bf16.gmra.mxu3 %v9506_v1  ;;  %v9510_v40 = vld [vmem:[#allocation30_spill] sm:$0xff]  ;;  %v8535_v1 = vpop.f32.mrf.mxu0 }
 0x378   : > { %v2091_v23 = vpop.f32.mrf.mxu3 }
 0x379   : > { %v8527_v16 = vadd.f32 %v2091_v23, %v7965_v42  ;;  %v8529_v2 = vpop.f32.mrf.mxu1  ;;  %v9513_v42 = vld [vmem:[#allocation32_spill] sm:$0xff] }
 0x37a   : > { %9508 = vst [vmem:[#allocation170_spill] sm:$0xff] %v8529_v2  ;;  %v6539_v23 = vld [vmem:[#allocation2 + $0xa4] sm:$0xff] }
 0x37b   : > { %9507 = vst [vmem:[#allocation27_spill] sm:$0xff] %v8527_v16  ;;  %4205 = vmatmul.bf16.gmra.mxu0 %v4041_v8  ;;  %v4042_v2 = vrot.slane %v6539_v23, 1  ;;  %v6540_v23 = vld [vmem:[#allocation2 + $0xac] sm:$0xff] }
 0x37c   : > { %v8532_v36 = vpop.f32.mrf.mxu2  ;;  %4498 = vmatmul.bf16.gmra.mxu1 %v9510_v40 }
 0x37d   : > { %9509 = vst [vmem:[#allocation171_spill] sm:$0xff] %v8532_v36  ;;  %v8543_v51 = vpop.f32.mrf.mxu0  ;;  %v4043_v40 = vsel %vm4006_vm5, %v4040_v46, %v4042_v2 }
 0x380   : > { %v2093_v41 = vpop.f32.mrf.mxu3 }
 0x381   : > { %v8538_v56 = vadd.f32 %v2093_v41, %v7973_v49  ;;  %v2979_v18 = vpop.f32.mrf.mxu1 }
 0x383   : > { %9511 = vst [vmem:[#allocation30_spill] sm:$0xff] %v8538_v56 }
 0x384   : > { %v8540_v52 = vpop.f32.mrf.mxu2 }
 0x385   : > { %9512 = vst [vmem:[#allocation172_spill] sm:$0xff] %v8540_v52  ;;  %2135 = vmatmul.bf16.gmra.mxu3 %v9513_v42  ;;  %v8553_v18 = vpop.f32.mrf.mxu0  ;;  %v9517_v42 = vld [vmem:[#allocation31_spill] sm:$0xff]  ;;  %v4044_v52 = vrot.slane %v6540_v23, 1 }
 0x387   : > { %v4045_v46 = vsel %vm4006_vm5, %v4042_v2, %v4044_v52 }
 0x388   : > { %v2096_v16 = vpop.f32.mrf.mxu3 }
 0x389   : > { %v8546_v8 = vadd.f32 %v2096_v16, %v7981_v62 }
 0x38b   : > { %9514 = vst [vmem:[#allocation32_spill] sm:$0xff] %v8546_v8  ;;  %4210 = vmatmul.bf16.gmra.mxu0 %v4043_v40 }
 0x38c   : > { %v3391_v36 = vpop.f32.mrf.mxu2  ;;  %4503 = vmatmul.bf16.gmra.mxu1 %v9515_v37  ;;  %v9519_v37 = vld [vmem:[#allocation38_spill] sm:$0xff] }
 0x38d   : > { %v3474_v36 = vld [vmem:[#allocation2 + $0xb4] sm:$0x7]  ;;  %v8560_v16 = vpop.f32.mrf.mxu0 }
 0x390   : > { %v2098_v49 = vpop.f32.mrf.mxu3 }
 0x391   : > { %v8551_v41 = vadd.f32 %v2098_v49, %v7989_v60  ;;  %v3573_v60 = vunpack.c.l.b16 %v3474_v36  ;;  %v6018_v49 = vld [vmem:[%s9190_s5 + $0x10] sm:$0xff] }
 0x392   : > { %4789 = vmatpush.bf16.msra.mxu2 %v6018_v49 }
 0x393   : > { %9516 = vst [vmem:[#allocation33_spill] sm:$0xff] %v8551_v41  ;;  %v8569_v23 = vpack.c.b16 %v3573_v60, %v3573_v60  ;;  %v9523_v60 = vld [vmem:[#allocation47_spill] sm:$0xff] }
 0x395   : > { %2140 = vmatmul.bf16.gmra.mxu3 %v9517_v42  ;;  %v4046_v2 = vrot.slane %v8569_v23, 1 }
 0x398   : > { %v2101_v56 = vpop.f32.mrf.mxu3 }
 0x399   : > { %v8557_v62 = vadd.f32 %v2101_v56, %v7997_v48  ;;  %v8571_v48 = vpop.f32.mrf.mxu1  ;;  %v9521_v56 = vld [vmem:[#allocation4_spill] sm:$0xff] }
 0x39b   : > { %9518 = vst [vmem:[#allocation31_spill] sm:$0xff] %v8557_v62  ;;  %4215 = vmatmul.bf16.gmra.mxu0 %v4045_v46  ;;  %v8575_v46 = vpop.f32.mrf.mxu0  ;;  %v4047_v62 = vsel %vm4006_vm5, %v4044_v52, %v4046_v2 }
 0x39c   : > { %4508 = vmatmul.bf16.gmra.mxu1 %v9519_v37 }
 0x3a0   : > { %v2103_v40 = vpop.f32.mrf.mxu3 }
 0x3a1   : > { %v8567_v42 = vadd.f32 %v2103_v40, %v8003_v32  ;;  %v8581_v32 = vpop.f32.mrf.mxu1 }
 0x3a3   : > { %9520 = vst [vmem:[#allocation38_spill] sm:$0xff] %v8567_v42  ;;  %v8584_v49 = vpop.f32.mrf.mxu0  ;;  %v9525_v42 = vld [vmem:[#allocation6_spill] sm:$0xff] }
 0x3a5   : > { %3839 = vmatmul.bf16.vlgmr.msra.gmra.mxu3 %v9521_v56 }
 0x3a8   : > { %v2106_v36 = vpop.f32.mrf.mxu3 }
 0x3a9   : > { %v8578_v37 = vadd.f32 %v2106_v36, %v8011_v24  ;;  %v8590_v41 = vpop.f32.mrf.mxu1 }
 0x3ab   : > { %9522 = vst [vmem:[#allocation4_spill] sm:$0xff] %v8578_v37  ;;  %4220 = vmatmul.bf16.gmra.mxu0 %v4047_v62  ;;  %v8595_v52 = vpop.f32.mrf.mxu0  ;;  %v9526_v62 = vld [vmem:[#allocation55_spill] sm:$0xff] }
 0x3ac   : > { %4513 = vmatmul.bf16.gmra.mxu1 %v9523_v60 }
 0x3b0   : > { %v2108_v40 = vpop.f32.mrf.mxu3 }
 0x3b1   : > { %v8587_v56 = vadd.f32 %v2108_v40, %v8020_v59  ;;  %v8598_v60 = vpop.f32.mrf.mxu1  ;;  %v9527_v59 = vld [vmem:[#allocation8_spill] sm:$0xff] }
 0x3b3   : > { %9524 = vst [vmem:[#allocation47_spill] sm:$0xff] %v8587_v56 }
 0x3b5   : > { %3844 = vmatmul.bf16.gmra.mxu3 %v9525_v42 }
 0x3b8   : > { %v2111_v8 = vpop.f32.mrf.mxu3 }
 0x3b9   : > { %v8593_v24 = vadd.f32 %v2111_v8, %v8028_v6  ;;  %v8607_v56 = vpop.f32.mrf.mxu1  ;;  %v6017_v6 = vld [vmem:[%s9190_s5 + $0x8] sm:$0xff] }
 0x3ba   : > { %4790 = vmatpush.bf16.msra.mxu2 %v6017_v6 }
 0x3bb   : > { %4225 = vmatmul.bf16.gmra.mxu0 %v4046_v2 }
 0x3bc   : > { %4518 = vmatmul.bf16.gmra.mxu1 %v9526_v62  ;;  %v9529_v62 = vld [vmem:[#allocation11_spill] sm:$0xff] }
 0x3c0   : > { %v2113_v36 = vpop.f32.mrf.mxu3 }
 0x3c1   : > { %v8601_v37 = vadd.f32 %v2113_v36, %v8038_v12  ;;  %v8616_v12 = vpop.f32.mrf.mxu1 }
 0x3c5   : > { %3849 = vmatmul.bf16.gmra.mxu3 %v9527_v59 }
 0x3c8   : > { %v2116_v42 = vpop.f32.mrf.mxu3 }
 0x3c9   : > { %v8605_v40 = vadd.f32 %v2116_v42, %v8043_v9  ;;  %v1825_v9 = vadd.f32 %v8182_v30, %v8051_v20  ;;  %v8626_v42 = vpop.f32.mrf.mxu1 }
 0x3cc   : > { %4523 = vmatmul.bf16.gmra.mxu1 %v7888_v14  ;;  %v1827_v14 = vadd.f32 %v8194_v21, %v8063_v35 }
 0x3d0   : > { %v2118_v8 = vpop.f32.mrf.mxu3 }
 0x3d1   : > { %v8614_v2 = vadd.f32 %v2118_v8, %v8059_v63  ;;  %v9531_v8 = vld [vmem:[#allocation14_spill] sm:$0xff]  ;;  %v8633_v20 = vpop.f32.mrf.mxu1 }
 0x3d3   : > { %9528 = vst [vmem:[#allocation6_spill] sm:$0xff] %v8614_v2 }
 0x3d5   : > { %3854 = vmatmul.bf16.gmra.mxu3 %v9529_v62  ;;  %v1830_v62 = vadd.f32 %v8207_v31, %v8084_v58  ;;  %v9534_v58 = vld [vmem:[#allocation34_spill] sm:$0xff]  ;;  %v1835_v31 = vadd.f32 %v8226_v39, %v8118_v4 }
 0x3d8   : > { %v2121_v36 = vpop.f32.mrf.mxu3 }
 0x3d9   : > { %v8621_v59 = vadd.f32 %v2121_v36, %v1825_v9  ;;  %v8642_v9 = vpop.f32.mrf.mxu1  ;;  %v6016_v36 = vld [vmem:[%s9190_s5] sm:$0xff] }
 0x3da   : > { %4791 = vmatpush.bf16.msra.mxu2 %v6016_v36 }
 0x3dc   : > { %4528 = vmatmul.bf16.gmra.mxu1 %v7898_v45  ;;  %v1832_v45 = vadd.f32 %v8216_v11, %v8102_v13  ;;  %v1837_v13 = vadd.f32 %v8235_v61, %v8130_v10 }
 0x3e0   : > { %v2123_v6 = vpop.f32.mrf.mxu3 }
 0x3e1   : > { %v8628_v63 = vadd.f32 %v2123_v6, %v1827_v14  ;;  %v8652_v14 = vpop.f32.mrf.mxu1 }
 0x3e3   : > { %9530 = vst [vmem:[#allocation55_spill] sm:$0xff] %v8628_v63 }
 0x3e5   : > { %3859 = vmatmul.bf16.gmra.mxu3 %v9531_v8  ;;  %v9537_v8 = vld [vmem:[#allocation37_spill] sm:$0xff] }
 0x3e8   : > { %v2126_v2 = vpop.f32.mrf.mxu3 }
 0x3e9   : > { %v8635_v30 = vadd.f32 %v2126_v2, %v1830_v62  ;;  %v1840_v62 = vadd.f32 %v8248_v57, %v8143_v47 }
 0x3eb   : > { %9532 = vst [vmem:[#allocation8_spill] sm:$0xff] %v8635_v30  ;;  %v9556_v30 = vld [vmem:[#allocation88_spill] sm:$0xff] }
 0x3ec   : > { %4533 = vmatmul.bf16.gmra.mxu1 %v7901_v50 }
 0x3f0   : > { %v2128_v35 = vpop.f32.mrf.mxu3 }
 0x3f1   : > { %v8640_v21 = vadd.f32 %v2128_v35, %v1832_v45  ;;  %v8662_v45 = vpop.f32.mrf.mxu1  ;;  %v9539_v35 = vld [vmem:[#allocation41_spill] sm:$0xff] }
 0x3f3   : > { %9533 = vst [vmem:[#allocation11_spill] sm:$0xff] %v8640_v21 }
 0x3f5   : > { %3864 = vmatmul.bf16.gmra.mxu3 %v9534_v58  ;;  %v9541_v58 = vld [vmem:[#allocation39_spill] sm:$0xff] }
 0x3f8   : > { %v2131_v2 = vpop.f32.mrf.mxu3 }
 0x3f9   : > { %v8650_v50 = vadd.f32 %v2131_v2, %v1835_v31  ;;  %v8669_v10 = vpop.f32.mrf.mxu1  ;;  %v9542_v31 = vld [vmem:[#allocation133_spill] sm:$0xff] }
 0x3fa   : > { %v1845_v47 = vadd.f32 %v9542_v31, %v8164_v0  ;;  %v9550_v0 = vld [vmem:[#allocation56_spill] sm:$0xff] }
 0x3fb   : > { %9535 = vst [vmem:[#allocation14_spill] sm:$0xff] %v8650_v50 }
 0x3fc   : > { %4538 = vmatmul.bf16.gmra.mxu1 %v7937_v43  ;;  %v1842_v43 = vadd.f32 %v8260_v5, %v8154_v25 }
 0x400   : > { %v2133_v11 = vpop.f32.mrf.mxu3 }
 0x401   : > { %v8657_v6 = vadd.f32 %v2133_v11, %v1837_v13  ;;  %v8678_v13 = vpop.f32.mrf.mxu1  ;;  %v9544_v11 = vld [vmem:[#allocation43_spill] sm:$0xff] }
 0x403   : > { %9536 = vst [vmem:[#allocation34_spill] sm:$0xff] %v8657_v6 }
 0x405   : > { %3869 = vmatmul.bf16.gmra.mxu3 %v9537_v8  ;;  %v9545_v8 = vld [vmem:[#allocation19_spill] sm:$0xff] }
 0x408   : > { %v2136_v4 = vpop.f32.mrf.mxu3 }
 0x409   : > { %v8664_v39 = vadd.f32 %v2136_v4, %v1840_v62  ;;  %v9546_v62 = vld [vmem:[#allocation54_spill] sm:$0xff] }
 0x40a   : > { %v2720_v25 = vadd.f32 %v9546_v62, %v9545_v8  ;;  %v9547_v4 = vld [vmem:[#allocation82_spill] sm:$0xff]  ;;  %v9553_v62 = vld [vmem:[#allocation48_spill] sm:$0xff] }
 0x40b   : > { %9538 = vst [vmem:[#allocation37_spill] sm:$0xff] %v8664_v39 }
 0x40c   : > { %4543 = vmatmul.bf16.gmra.mxu1 %v9539_v35  ;;  %v2981_v35 = vadd.f32 %v9547_v4, %v2720_v25  ;;  %v9554_v25 = vld [vmem:[#allocation17_spill] sm:$0xff] }
 0x410   : > { %v2138_v36 = vpop.f32.mrf.mxu3 }
 0x411   : > { %v8671_v61 = vadd.f32 %v2138_v36, %v1842_v43  ;;  %v8684_v43 = vpop.f32.mrf.mxu1  ;;  %v9548_v36 = vld [vmem:[#allocation45_spill] sm:$0xff] }
 0x413   : > { %9540 = vst [vmem:[#allocation41_spill] sm:$0xff] %v8671_v61  ;;  %v9549_v61 = vld [vmem:[#allocation16_spill] sm:$0xff] }
 0x414   : > { %v2721_v31 = vadd.f32 %v9550_v0, %v9549_v61 }
 0x415   : > { %3874 = vmatmul.bf16.gmra.mxu3 %v9541_v58  ;;  %v4271_v58 = vld [vmem:[#allocation2 + $0xb4] sm:$0xf] }
 0x416   : > { %v4290_v39 = vunpack.c.l.b16 %v4271_v58 }
 0x418   : > { %v2141_v57 = vpop.f32.mrf.mxu3  ;;  %v4291_v21 = vpack.c.b16 %v4290_v39, %v4290_v39  ;;  %v8702_v39 = vld [vmem:[%s9189_s4] ss:$0 sm:$0xff] }
 0x419   : > { %v8676_v2 = vadd.f32 %v2141_v57, %v1845_v47  ;;  %v9551_v47 = vld [vmem:[#allocation85_spill] sm:$0xff] }
 0x41a   : > { %v3393_v57 = vadd.f32 %v9551_v47, %v2981_v35  ;;  %v4378_v0 = vshrl.u32 %v4291_v21, 16  ;;  %v4381_v35 = vshll.u32 %v4291_v21, 16 }
 0x41b   : > { %9543 = vst [vmem:[#allocation39_spill] sm:$0xff] %v8676_v2 }
 0x41c   : > { %4548 = vmatmul.bf16.gmra.mxu1 %v9544_v11  ;;  %v9552_v11 = vld [vmem:[#allocation84_spill] sm:$0xff]  ;;  %v4380_v47 = vrot.slane %v4378_v0, 1 }
 0x41d   : > { %v2982_v50 = vadd.f32 %v9552_v11, %v2721_v31 }
 0x41f   : > { %v3394_v63 = vadd.f32 %v9556_v30, %v2982_v50  ;;  %v9558_v50 = vld [vmem:[#allocation53_spill] sm:$0xff] }
 0x420   : > { %v2143_v5 = vpop.f32.mrf.mxu3 }
 0x421   : > { %v9555_v5 = vld [vmem:[#allocation58_spill] sm:$0xff] }
 0x422   : > { %v2722_v4 = vadd.f32 %v9555_v5, %v9554_v25 }
 0x425   : > { %3879 = vmatmul.bf16.gmra.mxu3 %v9548_v36  ;;  %v8695_v36 = vpop.f32.mrf.mxu1 }
 0x428   : > { %v3840_v2 = vpop.f32.mrf.mxu3 }
 0x429   : > { %v3944_v6 = vadd.f32 %v3840_v2, %v3393_v57  ;;  %v9557_v2 = vld [vmem:[#allocation87_spill] sm:$0xff]  ;;  %v4383_v57 = vrot.slane %v4381_v35, 2 }
 0x42a   : > { %v2983_v31 = vadd.f32 %v9557_v2, %v2722_v4 }
 0x42b   : > { %v4230_v8 = vadd.f32 %v8379_v3, %v3944_v6  ;;  %v4384_v5 = vor.u32 %v4383_v57, %v4380_v47 }
 0x42c   : > { %4553 = vmatmul.bf16.gmra.mxu1 %v9553_v62  ;;  %v9560_v62 = vld [vmem:[#allocation91_spill] sm:$0xff] }
 0x42d   : > { %v4568_v58 = vadd.f32 %v8571_v48, %v4230_v8  ;;  %v9559_v48 = vld [vmem:[#allocation61_spill] sm:$0xff]  ;;  %v3395_v25 = vadd.f32 %v9560_v62, %v2983_v31 }
 0x42e   : > { %v2723_v21 = vadd.f32 %v9559_v48, %v8339_v26  ;;  %v9563_v26 = vld [vmem:[#allocation63_spill] sm:$0xff] }
 0x42f   : > { %v4613_v11 = vadd.f32 %v8702_v39, %v4568_v58  ;;  %v9561_v58 = vld [vmem:[#allocation90_spill] sm:$0xff]  ;;  %v2724_v31 = vadd.f32 %v9563_v26, %v8350_v54  ;;  %v9567_v54 = vld [vmem:[#allocation64_spill] sm:$0xff] }
 0x430   : > { %v3842_v61 = vpop.f32.mrf.mxu3 }
 0x431   : > { %v3945_v3 = vadd.f32 %v3842_v61, %v3394_v63  ;;  %v4654_v4 = vmax.f32 %v4613_v11, 0.0 }
 0x433   : > { %v4231_v6 = vadd.f32 %v8395_v28, %v3945_v3  ;;  %v8713_v28 = vpop.f32.mrf.mxu1  ;;  %v2984_v3 = vadd.f32 %v9561_v58, %v2723_v21 }
 0x435   : > { %v4569_v30 = vadd.f32 %v8581_v32, %v4231_v6  ;;  %3884 = vmatmul.bf16.gmra.mxu3 %v9558_v50  ;;  %v9562_v32 = vld [vmem:[#allocation46_spill] sm:$0xff] }
 0x436   : > { %v4385_v6 = vsel %vm4292_vm3, %v9562_v32, %v4384_v5 }
 0x437   : > { %v4614_v8 = vadd.f32 %v8702_v39, %v4569_v30  ;;  %v9564_v30 = vld [vmem:[#allocation94_spill] sm:$0xff] }
 0x438   : > { %v3845_v63 = vpop.f32.mrf.mxu3  ;;  %v3396_v47 = vadd.f32 %v9564_v30, %v2984_v3  ;;  %v9571_v30 = vld [vmem:[#allocation66_spill] sm:$0xff] }
 0x439   : > { %v4655_v61 = vmax.f32 %v4614_v8, 0.0  ;;  %v3946_v0 = vadd.f32 %v3845_v63, %v3395_v25  ;;  %v9565_v8 = vld [vmem:[#allocation93_spill] sm:$0xff] }
 0x43a   : > { %v2985_v62 = vadd.f32 %v9565_v8, %v2724_v31  ;;  %v9570_v31 = vld [vmem:[#allocation28_spill] sm:$0xff] }
 0x43b   : > { %v4695_v35 = vpack.c.bf16 %v4655_v61, %v4654_v4  ;;  %v4232_v2 = vadd.f32 %v8410_v22, %v3946_v0  ;;  %v8723_v48 = vpop.f32.mrf.mxu1  ;;  %v9566_v22 = vld [vmem:[#allocation60_spill] sm:$0xff]  ;;  %v2725_v4 = vadd.f32 %v9567_v54, %v8360_v55  ;;  %v9568_v61 = vld [vmem:[#allocation97_spill] sm:$0xff]  ;;  %v2726_v55 = vadd.f32 %v9571_v30, %v9570_v31  ;;  %v9576_v54 = vld [vmem:[#allocation70_spill] sm:$0xff] }
 0x43c   : > { %4558 = vmatmul.bf16.gmra.mxu1 %v4385_v6  ;;  %v3397_v0 = vadd.f32 %v9568_v61, %v2985_v62  ;;  %v9569_v6 = vld [vmem:[#allocation96_spill] sm:$0xff]  ;;  %v9573_v62 = vld [vmem:[#allocation99_spill] sm:$0xff]  ;;  %v9581_v31 = vld [vmem:[#allocation106_spill] sm:$0xff] }
 0x43d   : > { %4792 = vmatmul.bf16.vlgmr.msra.gmra.mxu2 %v4695_v35  ;;  %v4570_v11 = vadd.f32 %v8590_v41, %v4232_v2  ;;  %v2986_v2 = vadd.f32 %v9569_v6, %v2725_v4  ;;  %v9577_v61 = vld [vmem:[#allocation103_spill] sm:$0xff] }
 0x43e   : > { %v9579_v6 = vld [vmem:[#allocation35_spill] sm:$0xff] }
 0x43f   : > { %v4615_v63 = vadd.f32 %v8702_v39, %v4570_v11 }
 0x440   : > { %v3847_v57 = vpop.f32.mrf.mxu3 }
 0x441   : > { %v3947_v50 = vadd.f32 %v3847_v57, %v3396_v47  ;;  %v4656_v3 = vmax.f32 %v4615_v63, 0.0  ;;  %v9572_v47 = vld [vmem:[#allocation100_spill] sm:$0xff]  ;;  %v9574_v63 = vld [vmem:[#allocation62_spill] sm:$0xff] }
 0x442   : > { %v3398_v57 = vadd.f32 %v9572_v47, %v2986_v2  ;;  %v9580_v2 = vld [vmem:[#allocation71_spill] sm:$0xff] }
 0x443   : > { %v4233_v21 = vadd.f32 %v8422_v7, %v3947_v50  ;;  %v8735_v26 = vpop.f32.mrf.mxu1 }
 0x445   : > { %v4571_v25 = vadd.f32 %v8598_v60, %v4233_v21  ;;  %3889 = vmatmul.bf16.gmra.mxu3 %v9566_v22 }
 0x447   : > { %v4616_v41 = vadd.f32 %v8702_v39, %v4571_v25  ;;  %v2987_v25 = vadd.f32 %v9573_v62, %v2726_v55  ;;  %v9583_v62 = vld [vmem:[#allocation65_spill] sm:$0xff] }
 0x448   : > { %v3850_v35 = vpop.f32.mrf.mxu3 }
 0x449   : > { %v3948_v58 = vadd.f32 %v3850_v35, %v3397_v0  ;;  %v4657_v32 = vmax.f32 %v4616_v41, 0.0  ;;  %v3399_v0 = vadd.f32 %v9577_v61, %v2987_v25  ;;  %v9584_v25 = vld [vmem:[#allocation5_spill] sm:$0xff] }
 0x44b   : > { %v4696_v7 = vpack.c.bf16 %v4657_v32, %v4656_v3  ;;  %v4234_v60 = vadd.f32 %v8435_v44, %v3948_v58  ;;  %v9578_v32 = vld [vmem:[#allocation102_spill] sm:$0xff] }
 0x44c   : > { %4563 = vmatmul.bf16.gmra.mxu1 %v4384_v5  ;;  %v9575_v5 = vld [vmem:[#allocation3_spill] sm:$0xff] }
 0x44d   : > { %4797 = vmatmul.bf16.gmra.mxu2 %v4696_v7  ;;  %v4572_v50 = vadd.f32 %v8607_v56, %v4234_v60  ;;  %v2727_v4 = vadd.f32 %v9576_v54, %v9575_v5  ;;  %v2728_v60 = vadd.f32 %v9580_v2, %v9579_v6  ;;  %v9590_v2 = vld [vmem:[#allocation111_spill] sm:$0xff] }
 0x44f   : > { %v4617_v44 = vadd.f32 %v8702_v39, %v4572_v50  ;;  %v2988_v7 = vadd.f32 %v9578_v32, %v2727_v4  ;;  %v9582_v50 = vld [vmem:[#allocation105_spill] sm:$0xff] }
 0x450   : > { %v3852_v11 = vpop.f32.mrf.mxu3 }
 0x451   : > { %v3949_v21 = vadd.f32 %v3852_v11, %v3398_v57  ;;  %v4658_v58 = vmax.f32 %v4617_v44, 0.0  ;;  %v3400_v30 = vadd.f32 %v9581_v31, %v2988_v7  ;;  %v9586_v44 = vld [vmem:[#allocation109_spill] sm:$0xff] }
 0x453   : > { %v4235_v8 = vadd.f32 %v8451_v27, %v3949_v21  ;;  %v2989_v21 = vadd.f32 %v9582_v50, %v2728_v60  ;;  %v9594_v50 = vld [vmem:[#allocation115_spill] sm:$0xff] }
 0x455   : > { %v4573_v22 = vadd.f32 %v8616_v12, %v4235_v8  ;;  %3894 = vmatmul.bf16.gmra.mxu3 %v9574_v63  ;;  %v3401_v5 = vadd.f32 %v9586_v44, %v2989_v21  ;;  %v9596_v44 = vld [vmem:[#allocation75_spill] sm:$0xff] }
 0x457   : > { %v4618_v41 = vadd.f32 %v8702_v39, %v4573_v22  ;;  %v9585_v22 = vld [vmem:[#allocation72_spill] sm:$0xff] }
 0x458   : > { %v3855_v35 = vpop.f32.mrf.mxu3  ;;  %v2729_v63 = vadd.f32 %v9585_v22, %v9584_v25  ;;  %v9595_v25 = vld [vmem:[#allocation114_spill] sm:$0xff] }
 0x459   : > { %v3950_v56 = vadd.f32 %v3855_v35, %v3399_v0  ;;  %v4659_v3 = vmax.f32 %v4618_v41, 0.0  ;;  %v9587_v41 = vld [vmem:[#allocation108_spill] sm:$0xff] }
 0x45a   : > { %v2990_v35 = vadd.f32 %v9587_v41, %v2729_v63 }
 0x45b   : > { %v4697_v27 = vpack.c.bf16 %v4659_v3, %v4658_v58  ;;  %v4236_v12 = vadd.f32 %v8467_v38, %v3950_v56  ;;  %v9588_v56 = vld [vmem:[#allocation73_spill] sm:$0xff]  ;;  %v9589_v3 = vld [vmem:[#allocation112_spill] sm:$0xff] }
 0x45c   : > { %v2730_v58 = vadd.f32 %v9588_v56, %v8414_v17  ;;  %v8779_v17 = vpop.f32.mrf.mxu0 }
 0x45d   : > { %4802 = vmatmul.bf16.gmra.mxu2 %v4697_v27  ;;  %v4574_v47 = vadd.f32 %v8626_v42, %v4236_v12  ;;  %v3402_v27 = vadd.f32 %v9589_v3, %v2990_v35  ;;  %v9600_v3 = vld [vmem:[#allocation10_spill] sm:$0xff] }
 0x45e   : > { %v2991_v60 = vadd.f32 %v9590_v2, %v2730_v58  ;;  %v9599_v58 = vld [vmem:[#allocation68_spill] sm:$0xff] }
 0x45f   : > { %v4619_v38 = vadd.f32 %v8702_v39, %v4574_v47  ;;  %v9593_v47 = vld [vmem:[#allocation74_spill] sm:$0xff] }
 0x460   : > { %v3857_v55 = vpop.f32.mrf.mxu3 }
 0x461   : > { %v3951_v57 = vadd.f32 %v3857_v55, %v3400_v30  ;;  %v4660_v61 = vmax.f32 %v4619_v38, 0.0  ;;  %v9591_v30 = vld [vmem:[#allocation67_spill] sm:$0xff] }
 0x462   : > { %v9592_v55 = vld [vmem:[#allocation7_spill] sm:$0xff] }
 0x463   : > { %v4237_v11 = vadd.f32 %v8478_v34, %v3951_v57  ;;  %v2731_v57 = vadd.f32 %v9593_v47, %v9592_v55 }
 0x465   : > { %v4575_v8 = vadd.f32 %v8633_v20, %v4237_v11  ;;  %3899 = vmatmul.bf16.gmra.mxu3 %v9583_v62  ;;  %v8781_v11 = vpop.f32.mrf.mxu1  ;;  %v2992_v22 = vadd.f32 %v9595_v25, %v2731_v57  ;;  %v9604_v57 = vld [vmem:[#allocation57_spill] sm:$0xff]  ;;  %v9607_v25 = vld [vmem:[#allocation123_spill] sm:$0xff] }
 0x467   : > { %v4620_v54 = vadd.f32 %v8702_v39, %v4575_v8 }
 0x468   : > { %v3860_v4 = vpop.f32.mrf.mxu3 }
 0x469   : > { %v3952_v42 = vadd.f32 %v3860_v4, %v3401_v5  ;;  %v4661_v0 = vmax.f32 %v4620_v54, 0.0  ;;  %v2732_v5 = vadd.f32 %v9596_v44, %v8438_v33  ;;  %v9597_v54 = vld [vmem:[#allocation118_spill] sm:$0xff] }
 0x46a   : > { %v3404_v4 = vadd.f32 %v9597_v54, %v2992_v22 }
 0x46b   : > { %v4698_v34 = vpack.c.bf16 %v4661_v0, %v4660_v61  ;;  %v4238_v20 = vadd.f32 %v8492_v15, %v3952_v42  ;;  %v8790_v61 = vpop.f32.mrf.mxu0 }
 0x46d   : > { %4807 = vmatmul.bf16.gmra.mxu2 %v4698_v34  ;;  %v4576_v7 = vadd.f32 %v8642_v9, %v4238_v20  ;;  %v3403_v9 = vadd.f32 %v9594_v50, %v2991_v60  ;;  %v8792_v0 = vpop.f32.mrf.mxu1  ;;  %v9598_v20 = vld [vmem:[#allocation117_spill] sm:$0xff] }
 0x46e   : > { %v2993_v56 = vadd.f32 %v9598_v20, %v2732_v5  ;;  %v9605_v50 = vld [vmem:[#allocation77_spill] sm:$0xff] }
 0x46f   : > { %v4621_v15 = vadd.f32 %v8702_v39, %v4576_v7  ;;  %v9602_v7 = vld [vmem:[#allocation121_spill] sm:$0xff] }
 0x470   : > { %v3862_v32 = vpop.f32.mrf.mxu3  ;;  %v9608_v5 = vld [vmem:[#allocation69_spill] sm:$0xff] }
 0x471   : > { %v3953_v12 = vadd.f32 %v3862_v32, %v3402_v27  ;;  %v4662_v62 = vmax.f32 %v4621_v15, 0.0  ;;  %v9601_v27 = vld [vmem:[#allocation76_spill] sm:$0xff] }
 0x472   : > { %v2733_v32 = vadd.f32 %v9601_v27, %v9600_v3  ;;  %v9603_v15 = vld [vmem:[#allocation120_spill] sm:$0xff]  ;;  %v9612_v3 = vld [vmem:[#allocation59_spill] sm:$0xff] }
 0x473   : > { %v4239_v6 = vadd.f32 %v8508_v19, %v3953_v12  ;;  %v3405_v12 = vadd.f32 %v9602_v7, %v2993_v56  ;;  %v9613_v27 = vld [vmem:[#allocation79_spill] sm:$0xff] }
 0x474   : > { %v2994_v55 = vadd.f32 %v9603_v15, %v2733_v32  ;;  %v2736_v32 = vadd.f32 %v9613_v27, %v9612_v3  ;;  %v9626_v27 = vld [vmem:[#allocation26_spill] sm:$0xff] }
 0x475   : > { %v4577_v31 = vadd.f32 %v8652_v14, %v4239_v6  ;;  %3904 = vmatmul.bf16.gmra.mxu3 %v9591_v30  ;;  %v8806_v30 = vpop.f32.mrf.mxu1 }
 0x477   : > { %v4622_v21 = vadd.f32 %v8702_v39, %v4577_v31 }
 0x478   : > { %v3865_v19 = vpop.f32.mrf.mxu3 }
 0x479   : > { %v3954_v8 = vadd.f32 %v3865_v19, %v3403_v9  ;;  %v4663_v38 = vmax.f32 %v4622_v21, 0.0  ;;  %v2734_v9 = vadd.f32 %v9605_v50, %v9604_v57  ;;  %v9606_v21 = vld [vmem:[#allocation124_spill] sm:$0xff] }
 0x47a   : > { %v3406_v19 = vadd.f32 %v9606_v21, %v2994_v55  ;;  %v9616_v55 = vld [vmem:[#allocation49_spill] sm:$0xff]  ;;  %v9617_v57 = vld [vmem:[#allocation24_spill] sm:$0xff] }
 0x47b   : > { %v4699_v14 = vpack.c.bf16 %v4663_v38, %v4662_v62  ;;  %v4240_v63 = vadd.f32 %v8520_v29, %v3954_v8  ;;  %v2995_v22 = vadd.f32 %v9607_v25, %v2734_v9  ;;  %v9618_v50 = vld [vmem:[#allocation80_spill] sm:$0xff] }
 0x47c   : > { %v2737_v9 = vadd.f32 %v9618_v50, %v9617_v57  ;;  %v9619_v21 = vld [vmem:[#allocation132_spill] sm:$0xff]  ;;  %v9630_v57 = vld [vmem:[#allocation27_spill] sm:$0xff]  ;;  %v9631_v50 = vld [vmem:[#allocation86_spill] sm:$0xff] }
 0x47d   : > { %4812 = vmatmul.bf16.gmra.mxu2 %v4699_v14  ;;  %v4578_v34 = vadd.f32 %v8662_v45, %v4240_v63  ;;  %v8818_v44 = vpop.f32.mrf.mxu1 }
 0x47f   : > { %v4623_v33 = vadd.f32 %v8702_v39, %v4578_v34  ;;  %v9610_v34 = vld [vmem:[#allocation127_spill] sm:$0xff] }
 0x480   : > { %v3867_v42 = vpop.f32.mrf.mxu3 }
 0x481   : > { %v3955_v41 = vadd.f32 %v3867_v42, %v3404_v4  ;;  %v4664_v60 = vmax.f32 %v4623_v33, 0.0  ;;  %v9609_v4 = vld [vmem:[#allocation78_spill] sm:$0xff] }
 0x482   : > { %v2735_v42 = vadd.f32 %v9609_v4, %v8471_v53  ;;  %v9622_v4 = vld [vmem:[#allocation81_spill] sm:$0xff] }
 0x483   : > { %v4241_v35 = vadd.f32 %v8535_v1, %v3955_v41  ;;  %v8804_v1 = vpop.f32.mrf.mxu0 }
 0x485   : > { %v4579_v29 = vadd.f32 %v8669_v10, %v4241_v35  ;;  %3909 = vmatmul.bf16.gmra.mxu3 %v9599_v58  ;;  %v9611_v58 = vld [vmem:[#allocation126_spill] sm:$0xff]  ;;  %v8833_v53 = vpop.f32.mrf.mxu1 }
 0x486   : > { %v2996_v33 = vadd.f32 %v9611_v58, %v2735_v42  ;;  %v9624_v58 = vld [vmem:[#allocation134_spill] sm:$0xff] }
 0x487   : > { %v4624_v6 = vadd.f32 %v8702_v39, %v4579_v29 }
 0x488   : > { %v3870_v2 = vpop.f32.mrf.mxu3 }
 0x489   : > { %v3956_v45 = vadd.f32 %v3870_v2, %v3405_v12  ;;  %v4665_v31 = vmax.f32 %v4624_v6, 0.0  ;;  %v9614_v12 = vld [vmem:[#allocation129_spill] sm:$0xff] }
 0x48a   : > { %v3408_v6 = vadd.f32 %v9614_v12, %v2996_v33 }
 0x48b   : > { %v4700_v10 = vpack.c.bf16 %v4665_v31, %v4664_v60  ;;  %v4242_v47 = vadd.f32 %v8543_v51, %v3956_v45  ;;  %v8816_v63 = vpop.f32.mrf.mxu0 }
 0x48d   : > { %4817 = vmatmul.bf16.gmra.mxu2 %v4700_v10  ;;  %v4580_v62 = vadd.f32 %v8678_v13, %v4242_v47  ;;  %v3407_v13 = vadd.f32 %v9610_v34, %v2995_v22  ;;  %v9615_v10 = vld [vmem:[#allocation128_spill] sm:$0xff]  ;;  %v9620_v22 = vld [vmem:[#allocation131_spill] sm:$0xff] }
 0x48e   : > { %v2997_v15 = vadd.f32 %v9615_v10, %v2736_v32  ;;  %v9623_v34 = vld [vmem:[#allocation135_spill] sm:$0xff] }
 0x48f   : > { %v4625_v54 = vadd.f32 %v8702_v39, %v4580_v62  ;;  %v9627_v32 = vld [vmem:[#allocation83_spill] sm:$0xff] }
 0x490   : > { %v3872_v8 = vpop.f32.mrf.mxu3  ;;  %v2739_v12 = vadd.f32 %v9627_v32, %v9626_v27 }
 0x491   : > { %v3957_v38 = vadd.f32 %v3872_v8, %v3406_v19  ;;  %v4666_v20 = vmax.f32 %v4625_v54, 0.0  ;;  %v3409_v19 = vadd.f32 %v9619_v21, %v2997_v15  ;;  %v9621_v54 = vld [vmem:[#allocation165_spill] sm:$0xff]  ;;  %v9632_v21 = vld [vmem:[#allocation139_spill] sm:$0xff] }
 0x492   : > { %v2738_v42 = vadd.f32 %v9622_v4, %v9621_v54  ;;  %v9629_v15 = vld [vmem:[#allocation137_spill] sm:$0xff] }
 0x493   : > { %v4243_v14 = vadd.f32 %v8553_v18, %v3957_v38  ;;  %v8831_v7 = vpop.f32.mrf.mxu0  ;;  %v8848_v38 = vpop.f32.mrf.mxu1 }
 0x494   : > { %v2999_v33 = vadd.f32 %v9624_v58, %v2738_v42  ;;  %v9634_v42 = vld [vmem:[#allocation52_spill] sm:$0xff] }
 0x495   : > { %v4581_v51 = vadd.f32 %v8684_v43, %v4243_v14  ;;  %3914 = vmatmul.bf16.gmra.mxu3 %v9608_v5 }
 0x497   : > { %v4626_v41 = vadd.f32 %v8702_v39, %v4581_v51  ;;  %v2998_v51 = vadd.f32 %v9620_v22, %v2737_v9  ;;  %v2740_v9 = vadd.f32 %v9631_v50, %v9630_v57  ;;  %v9633_v22 = vld [vmem:[#allocation15_spill] sm:$0xff]  ;;  %v9641_v50 = vld [vmem:[#allocation144_spill] sm:$0xff] }
 0x498   : > { %v3875_v18 = vpop.f32.mrf.mxu3 }
 0x499   : > { %v3958_v35 = vadd.f32 %v3875_v18, %v3407_v13  ;;  %v4667_v56 = vmax.f32 %v4626_v41, 0.0  ;;  %v3410_v13 = vadd.f32 %v9623_v34, %v2998_v51  ;;  %v3001_v51 = vadd.f32 %v9633_v22, %v2740_v9  ;;  %v9635_v34 = vld [vmem:[#allocation30_spill] sm:$0xff]  ;;  %v9642_v22 = vld [vmem:[#allocation143_spill] sm:$0xff] }
 0x49b   : > { %v4701_v29 = vpack.c.bf16 %v4667_v56, %v4666_v20  ;;  %v4244_v43 = vadd.f32 %v8560_v16, %v3958_v35  ;;  %v8858_v56 = vpop.f32.mrf.mxu1 }
 0x49d   : > { %4822 = vmatmul.bf16.gmra.mxu2 %v4701_v29  ;;  %v4582_v45 = vadd.f32 %v8695_v36, %v4244_v43  ;;  %v8846_v36 = vpop.f32.mrf.mxu0  ;;  %v9625_v43 = vld [vmem:[#allocation51_spill] sm:$0xff] }
 0x49f   : > { %v4627_v47 = vadd.f32 %v8702_v39, %v4582_v45 }
 0x4a0   : > { %v3877_v2 = vpop.f32.mrf.mxu3 }
 0x4a1   : > { %v3959_v60 = vadd.f32 %v3877_v2, %v3408_v6  ;;  %v4668_v14 = vmax.f32 %v4627_v47, 0.0  ;;  %v9628_v6 = vld [vmem:[#allocation138_spill] sm:$0xff] }
 0x4a3   : > { %v4245_v31 = vadd.f32 %v8575_v46, %v3959_v60  ;;  %v8873_v47 = vpop.f32.mrf.mxu1 }
 0x4a5   : > { %v4583_v16 = vadd.f32 %v8713_v28, %v4245_v31  ;;  %3919 = vmatmul.bf16.gmra.mxu3 %v9616_v55  ;;  %v8856_v20 = vpop.f32.mrf.mxu0 }
 0x4a7   : > { %v4628_v8 = vadd.f32 %v8702_v39, %v4583_v16  ;;  %v3000_v16 = vadd.f32 %v9629_v15, %v2739_v12  ;;  %v9639_v15 = vld [vmem:[#allocation32_spill] sm:$0xff] }
 0x4a8   : > { %v3880_v62 = vpop.f32.mrf.mxu3 }
 0x4a9   : > { %v3960_v46 = vadd.f32 %v3880_v62, %v3409_v19  ;;  %v4669_v25 = vmax.f32 %v4628_v8, 0.0  ;;  %v3412_v19 = vadd.f32 %v9632_v21, %v3000_v16  ;;  %v9640_v16 = vld [vmem:[#allocation92_spill] sm:$0xff] }
 0x4ab   : > { %v4702_v28 = vpack.c.bf16 %v4669_v25, %v4668_v14  ;;  %v4246_v5 = vadd.f32 %v8584_v49, %v3960_v46  ;;  %v8882_v25 = vld [vmem:[%s9191_s6] ss:$0 sm:$0xff] }
 0x4ad   : > { %4827 = vmatmul.bf16.gmra.mxu2 %v4702_v28  ;;  %v4584_v18 = vadd.f32 %v8723_v48, %v4246_v5  ;;  %v3411_v48 = vadd.f32 %v9628_v6, %v2999_v33  ;;  %v8871_v55 = vpop.f32.mrf.mxu0 }
 0x4af   : > { %v4629_v3 = vadd.f32 %v8702_v39, %v4584_v18 }
 0x4b0   : > { %v3882_v41 = vpop.f32.mrf.mxu3 }
 0x4b1   : > { %v3961_v35 = vadd.f32 %v3882_v41, %v3410_v13  ;;  %v4670_v31 = vmax.f32 %v4629_v3, 0.0  ;;  %v9636_v13 = vld [vmem:[#allocation89_spill] sm:$0xff] }
 0x4b2   : > { %v2741_v41 = vadd.f32 %v9636_v13, %v9635_v34  ;;  %v9644_v34 = vld [vmem:[#allocation33_spill] sm:$0xff]  ;;  %v9645_v13 = vld [vmem:[#allocation95_spill] sm:$0xff] }
 0x4b3   : > { %v4247_v29 = vadd.f32 %v8595_v52, %v3961_v35  ;;  %v8895_v35 = vpop.f32.mrf.mxu1 }
 0x4b5   : > { %v4585_v49 = vadd.f32 %v8735_v26, %v4247_v29  ;;  %3924 = vmatmul.bf16.gmra.mxu3 %v9625_v43  ;;  %v8893_v18 = vpop.f32.mrf.mxu0  ;;  %v9637_v29 = vld [vmem:[#allocation142_spill] sm:$0xff] }
 0x4b7   : > { %v4630_v2 = vadd.f32 %v8702_v39, %v4585_v49 }
 0x4b8   : > { %v3885_v45 = vpop.f32.mrf.mxu3 }
 0x4b9   : > { %v3962_v60 = vadd.f32 %v3885_v45, %v3411_v48  ;;  %v4671_v52 = vmax.f32 %v4630_v2, 0.0  ;;  %v9638_v2 = vld [vmem:[#allocation141_spill] sm:$0xff] }
 0x4ba   : > { %v3002_v45 = vadd.f32 %v9638_v2, %v2741_v41  ;;  %v2743_v41 = vadd.f32 %v9645_v13, %v9644_v34  ;;  %v9647_v2 = vld [vmem:[#allocation20_spill] sm:$0xff]  ;;  %v9654_v34 = vld [vmem:[#allocation146_spill] sm:$0xff] }
 0x4bb   : > { %v4703_v10 = vpack.c.bf16 %v4671_v52, %v4670_v31  ;;  %v4248_v26 = vadd.f32 %v8779_v17, %v3962_v60  ;;  %v307_v17 = vld [vmem:[%s6651_s12] sm:$0xff]   ;;  %v3755_v31 = vshll.u32 %v8569_v23, 16 }
 0x4bc   : > { %v4898_v58 = vunpack.c.h.bf16 %v307_v17  ;;  %v3414_v9 = vadd.f32 %v9641_v50, %v3002_v45  ;;  %v3004_v45 = vadd.f32 %v9647_v2, %v2743_v41  ;;  %v9650_v50 = vld [vmem:[#allocation23_spill] sm:$0xff]  ;;  %v9656_v2 = vld [vmem:[#allocation4_spill] sm:$0xff] }
 0x4bd   : > { %4832 = vmatmul.bf16.gmra.mxu2 %v4703_v10  ;;  %v4586_v8 = vadd.f32 %v8781_v11, %v4248_v26  ;;  %v4897_v11 = vunpack.c.l.bf16 %v307_v17  ;;  %v2742_v26 = vadd.f32 %v9640_v16, %v9639_v15  ;;  %v309_v17 = vld [vmem:[%s6651_s12 + $0x8] sm:$0xff]   ;;  %v9648_v15 = vld [vmem:[#allocation31_spill] sm:$0xff]  ;;  %v9649_v16 = vld [vmem:[#allocation98_spill] sm:$0xff] }
 0x4bf   : > { %v4631_v5 = vadd.f32 %v8702_v39, %v4586_v8  ;;  %v3757_v8 = vrot.slane %v3755_v31, 1 }
 0x4c0   : > { %v3887_v62 = vpop.f32.mrf.mxu3  ;;  %v4793_v46 = vpop.f32.mrf.mxu2 }
 0x4c1   : > { %v3963_v14 = vadd.f32 %v3887_v62, %v3412_v19  ;;  %v4794_v4 = vadd.f32 %v8882_v25, %v4793_v46  ;;  %v4672_v43 = vmax.f32 %v4631_v5, 0.0  ;;  %v8914_v62 = vpop.f32.mrf.mxu0  ;;  %v8916_v46 = vpop.f32.mrf.mxu1  ;;  %v9643_v5 = vld [vmem:[#allocation50_spill] sm:$0xff] }
 0x4c3   : > { %v4249_v28 = vadd.f32 %v8790_v61, %v3963_v14  ;;  %v3413_v61 = vadd.f32 %v9637_v29, %v3001_v51  ;;  %v4938_v3 = vadd.f32 %v4897_v11, %v4794_v4  ;;  %v3003_v51 = vadd.f32 %v9642_v22, %v2742_v26  ;;  %v9646_v29 = vld [vmem:[#allocation145_spill] sm:$0xff]  ;;  %v9651_v22 = vld [vmem:[#allocation22_spill] sm:$0xff] }
 0x4c4   : > { %v2744_v26 = vadd.f32 %v9649_v16, %v9648_v15  ;;  %v9658_v15 = vld [vmem:[#allocation147_spill] sm:$0xff] }
 0x4c5   : > { %v4587_v54 = vadd.f32 %v8792_v0, %v4249_v28  ;;  %3929 = vmatmul.bf16.gmra.mxu3 %v9634_v42  ;;  %v4979_v52 = vmax.f32 %v4938_v3, 0.0  ;;  %v4899_v42 = vunpack.c.l.bf16 %v309_v17 }
 0x4c7   : > { %v4632_v33 = vadd.f32 %v8702_v39, %v4587_v54  ;;  %v3758_v54 = vsel %vm3043_vm4, %v9643_v5, %v3757_v8 }
 0x4c8   : > { %v3890_v49 = vpop.f32.mrf.mxu3  ;;  %v4795_v0 = vpop.f32.mrf.mxu2 }
 0x4c9   : > { %v3964_v27 = vadd.f32 %v3890_v49, %v3413_v61  ;;  %v4796_v32 = vadd.f32 %v8882_v25, %v4795_v0  ;;  %v4673_v12 = vmax.f32 %v4632_v33, 0.0  ;;  %v3415_v61 = vadd.f32 %v9646_v29, %v3003_v51 }
 0x4ca   : > { %v3005_v51 = vadd.f32 %v9651_v22, %v2744_v26  ;;  %v9660_v22 = vld [vmem:[#allocation47_spill] sm:$0xff] }
 0x4cb   : > { %v4939_v6 = vadd.f32 %v4898_v58, %v4796_v32  ;;  %v4704_v48 = vpack.c.bf16 %v4673_v12, %v4672_v43  ;;  %v4250_v60 = vadd.f32 %v8804_v1, %v3964_v27  ;;  %v4900_v58 = vunpack.c.h.bf16 %v309_v17  ;;  %v8932_v32 = vpop.f32.mrf.mxu0  ;;  %v8934_v12 = vpop.f32.mrf.mxu1 }
 0x4cc   : > { %v3417_v13 = vadd.f32 %v9654_v34, %v3005_v51  ;;  %v9661_v51 = vld [vmem:[#allocation107_spill] sm:$0xff] }
 0x4cd   : > { %v4980_v10 = vmax.f32 %v4939_v6, 0.0  ;;  %4837 = vmatmul.bf16.gmra.mxu2 %v4704_v48  ;;  %v4588_v1 = vadd.f32 %v8806_v30, %v4250_v60 }
 0x4cf   : > { %v6198_v57 = vpack.c.bf16 %v4980_v10, %v4979_v52  ;;  %v4633_v4 = vadd.f32 %v8702_v39, %v4588_v1  ;;  %v3759_v10 = vshrl.u32 %v8569_v23, 16 }
 0x4d0   : > { %v3892_v21 = vpop.f32.mrf.mxu3  ;;  %v4798_v19 = vpop.f32.mrf.mxu2 }
 0x4d1   : > { %6199 = vst [vmem:[%s8908_s25] sm:$0xff] %v6198_v57   ;;  %v3965_v14 = vadd.f32 %v3892_v21, %v3414_v9  ;;  %v4799_v11 = vadd.f32 %v8882_v25, %v4798_v19  ;;  %v4674_v0 = vmax.f32 %v4633_v4, 0.0  ;;  %v3416_v9 = vadd.f32 %v9650_v50, %v3004_v45  ;;  %v9657_v45 = vld [vmem:[#allocation104_spill] sm:$0xff] }
 0x4d2   : > { %v3761_v17 = vor.u32 %v3759_v10, %v3757_v8 }
 0x4d3   : > { %v4251_v28 = vadd.f32 %v8816_v63, %v3965_v14  ;;  %v4940_v43 = vadd.f32 %v4899_v42, %v4799_v11  ;;  %v8948_v5 = vpop.f32.mrf.mxu0  ;;  %v9652_v11 = vld [vmem:[#allocation38_spill] sm:$0xff]  ;;  %v9653_v42 = vld [vmem:[#allocation101_spill] sm:$0xff] }
 0x4d4   : > { %v2745_v8 = vadd.f32 %v9653_v42, %v9652_v11 }
 0x4d5   : > { %v4589_v30 = vadd.f32 %v8818_v44, %v4251_v28  ;;  %3934 = vmatmul.bf16.gmra.mxu3 %v3758_v54  ;;  %v4981_v31 = vmax.f32 %v4940_v43, 0.0  ;;  %v311_v28 = vld [vmem:[%s6651_s12 + $0x10] sm:$0xff]   ;;  %v8950_v54 = vpop.f32.mrf.mxu1 }
 0x4d7   : > { %v4634_v63 = vadd.f32 %v8702_v39, %v4589_v30  ;;  %v4901_v30 = vunpack.c.l.bf16 %v311_v28 }
 0x4d8   : > { %v3895_v33 = vpop.f32.mrf.mxu3  ;;  %v4800_v49 = vpop.f32.mrf.mxu2 }
 0x4d9   : > { %v3966_v3 = vadd.f32 %v3895_v33, %v3415_v61  ;;  %v4801_v27 = vadd.f32 %v8882_v25, %v4800_v49  ;;  %v4675_v44 = vmax.f32 %v4634_v63, 0.0 }
 0x4db   : > { %v4941_v6 = vadd.f32 %v4900_v58, %v4801_v27  ;;  %v4705_v48 = vpack.c.bf16 %v4675_v44, %v4674_v0  ;;  %v4252_v60 = vadd.f32 %v8831_v7, %v3966_v3  ;;  %v9655_v3 = vld [vmem:[#allocation25_spill] sm:$0xff] }
 0x4dc   : > { %v3006_v27 = vadd.f32 %v9655_v3, %v2745_v8 }
 0x4dd   : > { %v4982_v52 = vmax.f32 %v4941_v6, 0.0  ;;  %4842 = vmatmul.bf16.gmra.mxu2 %v4705_v48  ;;  %v4590_v1 = vadd.f32 %v8833_v53, %v4252_v60  ;;  %v2746_v60 = vadd.f32 %v9657_v45, %v9656_v2 }
 0x4de   : > { %v3418_v16 = vadd.f32 %v9658_v15, %v3006_v27  ;;  %v9665_v27 = vld [vmem:[#allocation150_spill] sm:$0xff] }
 0x4df   : > { %v6203_v57 = vpack.c.bf16 %v4982_v52, %v4981_v31  ;;  %v4635_v23 = vadd.f32 %v8702_v39, %v4590_v1  ;;  %v8963_v31 = vpop.f32.mrf.mxu0  ;;  %v8965_v52 = vpop.f32.mrf.mxu1 }
 0x4e0   : > { %v3897_v21 = vpop.f32.mrf.mxu3  ;;  %v4803_v19 = vpop.f32.mrf.mxu2 }
 0x4e1   : > { %6423 = vst [vmem:[%s8908_s25 + $0x8] sm:$0xff] %v6203_v57   ;;  %v3967_v14 = vadd.f32 %v3897_v21, %v3416_v9  ;;  %v4804_v53 = vadd.f32 %v8882_v25, %v4803_v19  ;;  %v4676_v58 = vmax.f32 %v4635_v23, 0.0  ;;  %v9659_v21 = vld [vmem:[#allocation29_spill] sm:$0xff]  ;;  %v2747_v23 = vadd.f32 %v9661_v51, %v9660_v22 }
 0x4e2   : > { %v3007_v19 = vadd.f32 %v9659_v21, %v2746_v60  ;;  %v315_v60 = vld [vmem:[%s6651_s12 + $0x20] sm:$0xff]  }
 0x4e3   : > { %v4253_v7 = vadd.f32 %v8846_v36, %v3967_v14  ;;  %v4902_v36 = vunpack.c.h.bf16 %v311_v28  ;;  %v4942_v63 = vadd.f32 %v4901_v30, %v4804_v53 }
 0x4e5   : > { %v4591_v4 = vadd.f32 %v8848_v38, %v4253_v7  ;;  %3939 = vmatmul.bf16.gmra.mxu3 %v3761_v17  ;;  %v4983_v6 = vmax.f32 %v4942_v63, 0.0 }
 0x4e7   : > { %v4636_v41 = vadd.f32 %v8702_v39, %v4591_v4  ;;  %v8980_v8 = vpop.f32.mrf.mxu0  ;;  %v8982_v34 = vpop.f32.mrf.mxu1 }
 0x4e8   : > { %v3900_v29 = vpop.f32.mrf.mxu3  ;;  %v4805_v61 = vpop.f32.mrf.mxu2 }
 0x4e9   : > { %v3968_v33 = vadd.f32 %v3900_v29, %v3417_v13  ;;  %v4806_v49 = vadd.f32 %v8882_v25, %v4805_v61  ;;  %v4677_v38 = vmax.f32 %v4636_v41, 0.0 }
 0x4eb   : > { %v4943_v0 = vadd.f32 %v4902_v36, %v4806_v49  ;;  %v4706_v43 = vpack.c.bf16 %v4677_v38, %v4676_v58  ;;  %v4254_v44 = vadd.f32 %v8856_v20, %v3968_v33  ;;  %v313_v20 = vld [vmem:[%s6651_s12 + $0x18] sm:$0xff]   ;;  %v9663_v58 = vld [vmem:[#allocation148_spill] sm:$0xff] }
 0x4ec   : > { %v4903_v7 = vunpack.c.l.bf16 %v313_v20  ;;  %v4904_v53 = vunpack.c.h.bf16 %v313_v20  ;;  %v3008_v63 = vadd.f32 %v9663_v58, %v2747_v23 }
 0x4ed   : > { %v4984_v48 = vmax.f32 %v4943_v0, 0.0  ;;  %4847 = vmatmul.bf16.gmra.mxu2 %v4706_v43  ;;  %v4592_v26 = vadd.f32 %v8858_v56, %v4254_v44  ;;  %v9662_v56 = vld [vmem:[#allocation149_spill] sm:$0xff]  ;;  %v9664_v0 = vld [vmem:[#allocation110_spill] sm:$0xff] }
 0x4ee   : > { %v3419_v4 = vadd.f32 %v9662_v56, %v3007_v19  ;;  %v2748_v43 = vadd.f32 %v9664_v0, %v8593_v24  ;;  %v3420_v44 = vadd.f32 %v9665_v27, %v3008_v63  ;;  %v4906_v19 = vunpack.c.h.bf16 %v315_v60 }
 0x4ef   : > { %v6208_v10 = vpack.c.bf16 %v4984_v48, %v4983_v6  ;;  %v4637_v14 = vadd.f32 %v8702_v39, %v4592_v26  ;;  %v8995_v15 = vpop.f32.mrf.mxu1 }
 0x4f0   : > { %v3902_v57 = vpop.f32.mrf.mxu3  ;;  %v4808_v50 = vpop.f32.mrf.mxu2 }
 0x4f1   : > { %6424 = vst [vmem:[%s8908_s25 + $0x10] sm:$0xff] %v6208_v10   ;;  %v3969_v9 = vadd.f32 %v3902_v57, %v3418_v16  ;;  %v4809_v28 = vadd.f32 %v8882_v25, %v4808_v50  ;;  %v8993_v10 = vpop.f32.mrf.mxu0  ;;  %v9666_v16 = vld [vmem:[#allocation36_spill] sm:$0xff] }
 0x4f2   : > { %v3009_v26 = vadd.f32 %v9666_v16, %v2748_v43 }
 0x4f3   : > { %v4255_v1 = vadd.f32 %v8871_v55, %v3969_v9  ;;  %v4678_v55 = vmax.f32 %v4637_v14, 0.0  ;;  %v4944_v13 = vadd.f32 %v4903_v7, %v4809_v28  ;;  %v9667_v9 = vld [vmem:[#allocation113_spill] sm:$0xff] }
 0x4f4   : > { %v2749_v20 = vadd.f32 %v9667_v9, %v8601_v37 }
 0x4f5   : > { %v4593_v17 = vadd.f32 %v8873_v47, %v4255_v1  ;;  %v4985_v49 = vmax.f32 %v4944_v13, 0.0  ;;  %v9668_v1 = vld [vmem:[#allocation151_spill] sm:$0xff]  ;;  %v9670_v13 = vld [vmem:[#allocation116_spill] sm:$0xff] }
 0x4f6   : > { %v3421_v21 = vadd.f32 %v9668_v1, %v3009_v26  ;;  %v9676_v1 = vld [vmem:[#allocation152_spill] sm:$0xff] }
 0x4f7   : > { %v4638_v30 = vadd.f32 %v8702_v39, %v4593_v17 }
 0x4f8   : > { %v3905_v11 = vpop.f32.mrf.mxu3  ;;  %v4810_v42 = vpop.f32.mrf.mxu2 }
 0x4f9   : > { %v3970_v47 = vadd.f32 %v3905_v11, %v3419_v4  ;;  %v4811_v36 = vadd.f32 %v8882_v25, %v4810_v42  ;;  %v4679_v41 = vmax.f32 %v4638_v30, 0.0  ;;  %v9669_v4 = vld [vmem:[#allocation40_spill] sm:$0xff]  ;;  %v9009_v30 = vpop.f32.mrf.mxu0  ;;  %v9011_v11 = vpop.f32.mrf.mxu1 }
 0x4fb   : > { %v4945_v29 = vadd.f32 %v4904_v53, %v4811_v36  ;;  %v4707_v61 = vpack.c.bf16 %v4679_v41, %v4678_v55  ;;  %v4256_v33 = vadd.f32 %v8893_v18, %v3970_v47  ;;  %v3010_v53 = vadd.f32 %v9669_v4, %v2749_v20  ;;  %v9671_v41 = vld [vmem:[#allocation44_spill] sm:$0xff] }
 0x4fc   : > { %v2750_v47 = vadd.f32 %v9670_v13, %v8605_v40 }
 0x4fd   : > { %v4986_v38 = vmax.f32 %v4945_v29, 0.0  ;;  %4852 = vmatmul.bf16.gmra.mxu2 %v4707_v61  ;;  %v4594_v6 = vadd.f32 %v8895_v35, %v4256_v33  ;;  %v4905_v35 = vunpack.c.l.bf16 %v315_v60  ;;  %v3422_v29 = vadd.f32 %v9671_v41, %v3010_v53  ;;  %v9680_v41 = vld [vmem:[#allocation55_spill] sm:$0xff] }
 0x4ff   : > { %v6213_v3 = vpack.c.bf16 %v4986_v38, %v4985_v49  ;;  %v4639_v24 = vadd.f32 %v8702_v39, %v4594_v6  ;;  %v9672_v38 = vld [vmem:[#allocation42_spill] sm:$0xff]  ;;  %v9674_v6 = vld [vmem:[#allocation119_spill] sm:$0xff] }
 0x500   : > { %v3907_v48 = vpop.f32.mrf.mxu3  ;;  %v4813_v2 = vpop.f32.mrf.mxu2  ;;  %v3011_v0 = vadd.f32 %v9672_v38, %v2750_v47 }
 0x501   : > { %6425 = vst [vmem:[%s8908_s25 + $0x18] sm:$0xff] %v6213_v3   ;;  %v3971_v45 = vadd.f32 %v3907_v48, %v3420_v44  ;;  %v4814_v50 = vadd.f32 %v8882_v25, %v4813_v2  ;;  %v9673_v44 = vld [vmem:[#allocation6_spill] sm:$0xff]  ;;  %v9028_v2 = vpop.f32.mrf.mxu1 }
 0x502   : > { %v2751_v48 = vadd.f32 %v9674_v6, %v9673_v44 }
 0x503   : > { %v4257_v18 = vadd.f32 %v8914_v62, %v3971_v45  ;;  %v4680_v62 = vmax.f32 %v4639_v24, 0.0  ;;  %v4946_v7 = vadd.f32 %v4905_v35, %v4814_v50  ;;  %v9675_v45 = vld [vmem:[#allocation153_spill] sm:$0xff] }
 0x504   : > { %v3423_v60 = vadd.f32 %v9675_v45, %v3011_v0 }
 0x505   : > { %v4595_v57 = vadd.f32 %v8916_v46, %v4257_v18  ;;  %v4987_v42 = vmax.f32 %v4946_v7, 0.0 }
 0x507   : > { %v4640_v14 = vadd.f32 %v8702_v39, %v4595_v57 }
 0x508   : > { %v3910_v17 = vpop.f32.mrf.mxu3  ;;  %v4815_v28 = vpop.f32.mrf.mxu2 }
 0x509   : > { %v3972_v22 = vadd.f32 %v3910_v17, %v3421_v21  ;;  %v4816_v51 = vadd.f32 %v8882_v25, %v4815_v28  ;;  %v4681_v23 = vmax.f32 %v4640_v14, 0.0  ;;  %v3012_v21 = vadd.f32 %v9676_v1, %v2751_v48  ;;  %v9677_v28 = vld [vmem:[#allocation122_spill] sm:$0xff]  ;;  %v9041_v53 = vpop.f32.mrf.mxu1  ;;  %v9683_v48 = vld [vmem:[#allocation156_spill] sm:$0xff] }
 0x50b   : > { %v4947_v46 = vadd.f32 %v4906_v19, %v4816_v51  ;;  %v4708_v56 = vpack.c.bf16 %v4681_v23, %v4680_v62  ;;  %v4258_v37 = vadd.f32 %v8932_v32, %v3972_v22  ;;  %v317_v32 = vld [vmem:[%s6651_s12 + $0x28] sm:$0xff]   ;;  %v2752_v62 = vadd.f32 %v9677_v28, %v8621_v59  ;;  %v9678_v22 = vld [vmem:[#allocation155_spill] sm:$0xff] }
 0x50c   : > { %v4907_v27 = vunpack.c.l.bf16 %v317_v32  ;;  %v4908_v18 = vunpack.c.h.bf16 %v317_v32  ;;  %v3424_v51 = vadd.f32 %v9678_v22, %v3012_v21  ;;  %v321_v21 = vld [vmem:[%s6651_s12 + $0x38] sm:$0xff]  }
 0x50d   : > { %v4988_v55 = vmax.f32 %v4947_v46, 0.0  ;;  %4857 = vmatmul.bf16.gmra.mxu2 %v4708_v56  ;;  %v4596_v61 = vadd.f32 %v8934_v12, %v4258_v37  ;;  %v9026_v12 = vpop.f32.mrf.mxu0 }
 0x50f   : > { %v6218_v36 = vpack.c.bf16 %v4988_v55, %v4987_v42  ;;  %v4641_v43 = vadd.f32 %v8702_v39, %v4596_v61  ;;  %v9679_v55 = vld [vmem:[#allocation154_spill] sm:$0xff] }
 0x510   : > { %v3912_v58 = vpop.f32.mrf.mxu3  ;;  %v4818_v63 = vpop.f32.mrf.mxu2  ;;  %v3013_v13 = vadd.f32 %v9679_v55, %v2752_v62 }
 0x511   : > { %6426 = vst [vmem:[%s8908_s25 + $0x20] sm:$0xff] %v6218_v36   ;;  %v3973_v33 = vadd.f32 %v3912_v58, %v3422_v29  ;;  %v4819_v40 = vadd.f32 %v8882_v25, %v4818_v63  ;;  %v4682_v24 = vmax.f32 %v4641_v43, 0.0  ;;  %v9681_v29 = vld [vmem:[#allocation125_spill] sm:$0xff] }
 0x512   : > { %v2753_v61 = vadd.f32 %v9681_v29, %v9680_v41  ;;  %v9682_v58 = vld [vmem:[#allocation157_spill] sm:$0xff] }
 0x513   : > { %v4259_v49 = vadd.f32 %v8948_v5, %v3973_v33  ;;  %v4948_v57 = vadd.f32 %v4907_v27, %v4819_v40  ;;  %v3425_v63 = vadd.f32 %v9682_v58, %v3013_v13  ;;  %v9057_v27 = vpop.f32.mrf.mxu1  ;;  %v9691_v29 = vld [vmem:[#allocation13_spill] sm:$0xff] }
 0x514   : > { %v3014_v45 = vadd.f32 %v9683_v48, %v2753_v61 }
 0x515   : > { %v4597_v3 = vadd.f32 %v8950_v54, %v4259_v49  ;;  %v4989_v14 = vmax.f32 %v4948_v57, 0.0  ;;  %v9039_v4 = vpop.f32.mrf.mxu0 }
 0x517   : > { %v4642_v5 = vadd.f32 %v8702_v39, %v4597_v3 }
 0x518   : > { %v3915_v16 = vpop.f32.mrf.mxu3  ;;  %v4820_v26 = vpop.f32.mrf.mxu2 }
 0x519   : > { %v3974_v54 = vadd.f32 %v3915_v16, %v3423_v60  ;;  %v4821_v50 = vadd.f32 %v8882_v25, %v4820_v26  ;;  %v4683_v35 = vmax.f32 %v4642_v5, 0.0  ;;  %v9684_v16 = vld [vmem:[#allocation8_spill] sm:$0xff]  ;;  %v9685_v26 = vld [vmem:[#allocation9_spill] sm:$0xff] }
 0x51b   : > { %v4949_v9 = vadd.f32 %v4908_v18, %v4821_v50  ;;  %v4709_v20 = vpack.c.bf16 %v4683_v35, %v4682_v24  ;;  %v4260_v19 = vadd.f32 %v8963_v31, %v3974_v54  ;;  %v319_v31 = vld [vmem:[%s6651_s12 + $0x30] sm:$0xff]   ;;  %v2754_v24 = vadd.f32 %v9685_v26, %v9684_v16  ;;  %v9686_v54 = vld [vmem:[#allocation159_spill] sm:$0xff]  ;;  %v9072_v62 = vpop.f32.mrf.mxu1 }
 0x51c   : > { %v4910_v33 = vunpack.c.h.bf16 %v319_v31  ;;  %v3426_v50 = vadd.f32 %v9686_v54, %v3014_v45  ;;  %v9697_v54 = vld [vmem:[#allocation136_spill] sm:$0xff] }
 0x51d   : > { %v4990_v17 = vmax.f32 %v4949_v9, 0.0  ;;  %4862 = vmatmul.bf16.gmra.mxu2 %v4709_v20  ;;  %v4598_v23 = vadd.f32 %v8965_v52, %v4260_v19  ;;  %v4909_v52 = vunpack.c.l.bf16 %v319_v31  ;;  %v4912_v31 = vunpack.c.h.bf16 %v321_v21 }
 0x51f   : > { %v6223_v7 = vpack.c.bf16 %v4990_v17, %v4989_v14  ;;  %v4643_v59 = vadd.f32 %v8702_v39, %v4598_v23  ;;  %v9687_v14 = vld [vmem:[#allocation158_spill] sm:$0xff] }
 0x520   : > { %v3917_v46 = vpop.f32.mrf.mxu3  ;;  %v4823_v56 = vpop.f32.mrf.mxu2  ;;  %v9689_v23 = vld [vmem:[#allocation130_spill] sm:$0xff] }
 0x521   : > { %6427 = vst [vmem:[%s8908_s25 + $0x28] sm:$0xff] %v6223_v7   ;;  %v3975_v37 = vadd.f32 %v3917_v46, %v3424_v51  ;;  %v4824_v36 = vadd.f32 %v8882_v25, %v4823_v56  ;;  %v9688_v51 = vld [vmem:[#allocation11_spill] sm:$0xff]  ;;  %v9690_v56 = vld [vmem:[#allocation160_spill] sm:$0xff] }
 0x522   : > { %v2755_v46 = vadd.f32 %v9689_v23, %v9688_v51  ;;  %v9699_v23 = vld [vmem:[#allocation163_spill] sm:$0xff] }
 0x523   : > { %v4261_v42 = vadd.f32 %v8980_v8, %v3975_v37  ;;  %v4684_v8 = vmax.f32 %v4643_v59, 0.0  ;;  %v4950_v0 = vadd.f32 %v4909_v52, %v4824_v36 }
 0x524   : > { %v3016_v61 = vadd.f32 %v9691_v29, %v2755_v46 }
 0x525   : > { %v4599_v47 = vadd.f32 %v8982_v34, %v4261_v42  ;;  %v9055_v34 = vpop.f32.mrf.mxu0  ;;  %v4991_v18 = vmax.f32 %v4950_v0, 0.0 }
 0x527   : > { %v4644_v32 = vadd.f32 %v8702_v39, %v4599_v47 }
 0x528   : > { %v3920_v49 = vpop.f32.mrf.mxu3  ;;  %v4825_v38 = vpop.f32.mrf.mxu2 }
 0x529   : > { %v3976_v43 = vadd.f32 %v3920_v49, %v3425_v63  ;;  %v4826_v3 = vadd.f32 %v8882_v25, %v4825_v38  ;;  %v4685_v40 = vmax.f32 %v4644_v32, 0.0  ;;  %v9693_v32 = vld [vmem:[#allocation12_spill] sm:$0xff] }
 0x52b   : > { %v4951_v44 = vadd.f32 %v4910_v33, %v4826_v3  ;;  %v4710_v6 = vpack.c.bf16 %v4685_v40, %v4684_v8  ;;  %v4262_v60 = vadd.f32 %v8993_v10, %v3976_v43  ;;  %v3015_v10 = vadd.f32 %v9687_v14, %v2754_v24  ;;  %v9087_v8 = vpop.f32.mrf.mxu1  ;;  %v9694_v43 = vld [vmem:[#allocation162_spill] sm:$0xff] }
 0x52c   : > { %v3428_v3 = vadd.f32 %v9694_v43, %v3016_v61  ;;  %v9704_v43 = vld [vmem:[#allocation41_spill] sm:$0xff] }
 0x52d   : > { %v4992_v5 = vmax.f32 %v4951_v44, 0.0  ;;  %4867 = vmatmul.bf16.gmra.mxu2 %v4710_v6  ;;  %v4600_v35 = vadd.f32 %v8995_v15, %v4262_v60  ;;  %v9070_v28 = vpop.f32.mrf.mxu0  ;;  %v4911_v15 = vunpack.c.l.bf16 %v321_v21  ;;  %v3427_v37 = vadd.f32 %v9690_v56, %v3015_v10  ;;  %v9695_v60 = vld [vmem:[#allocation161_spill] sm:$0xff] }
 0x52f   : > { %v6228_v57 = vpack.c.bf16 %v4992_v5, %v4991_v18  ;;  %v4645_v17 = vadd.f32 %v8702_v39, %v4600_v35  ;;  %v9098_v5 = vld [vmem:[%s9189_s4] ss:$0 sm:$0xff] }
 0x530   : > { %v3922_v9 = vpop.f32.mrf.mxu3  ;;  %v4828_v20 = vpop.f32.mrf.mxu2  ;;  %v9698_v35 = vld [vmem:[#allocation164_spill] sm:$0xff] }
 0x531   : > { %6428 = vst [vmem:[%s8908_s25 + $0x30] sm:$0xff] %v6228_v57   ;;  %v3977_v1 = vadd.f32 %v3922_v9, %v3426_v50  ;;  %v4829_v22 = vadd.f32 %v8882_v25, %v4828_v20  ;;  %v4686_v13 = vmax.f32 %v4645_v17, 0.0  ;;  %v9696_v57 = vld [vmem:[#allocation34_spill] sm:$0xff] }
 0x532   : > { %v2757_v50 = vadd.f32 %v9697_v54, %v9696_v57  ;;  %v9707_v54 = vld [vmem:[#allocation168_spill] sm:$0xff] }
 0x533   : > { %v4263_v19 = vadd.f32 %v9009_v30, %v3977_v1  ;;  %v4952_v59 = vadd.f32 %v4911_v15, %v4829_v22  ;;  %v4561_v10 = vpop.f32.mrf.mxu1 }
 0x534   : > { %v3018_v46 = vadd.f32 %v9699_v23, %v2757_v50  ;;  %v327_v23 = vld [vmem:[%s6651_s12 + $0x50] sm:$0xff]  }
 0x535   : > { %v4601_v7 = vadd.f32 %v9011_v11, %v4263_v19  ;;  %v4993_v63 = vmax.f32 %v4952_v59, 0.0  ;;  %v9085_v38 = vpop.f32.mrf.mxu0  ;;  %v9702_v59 = vld [vmem:[#allocation167_spill] sm:$0xff] }
 0x537   : > { %v4646_v30 = vadd.f32 %v8702_v39, %v4601_v7  ;;  %v9692_v39 = vld [vmem:[#allocation14_spill] sm:$0xff] }
 0x538   : > { %v3925_v42 = vpop.f32.mrf.mxu3  ;;  %v4830_v55 = vpop.f32.mrf.mxu2  ;;  %v2756_v49 = vadd.f32 %v9693_v32, %v9692_v39 }
 0x539   : > { %v3978_v47 = vadd.f32 %v3925_v42, %v3427_v37  ;;  %v4831_v36 = vadd.f32 %v8882_v25, %v4830_v55  ;;  %v4687_v52 = vmax.f32 %v4646_v30, 0.0  ;;  %v9700_v30 = vld [vmem:[#allocation37_spill] sm:$0xff]  ;;  %v9701_v42 = vld [vmem:[#allocation18_spill] sm:$0xff] }
 0x53a   : > { %v3017_v18 = vadd.f32 %v9695_v60, %v2756_v49  ;;  %v2758_v55 = vadd.f32 %v9701_v42, %v9700_v30  ;;  %v4917_v42 = vunpack.c.l.bf16 %v327_v23 }
 0x53b   : > { %v4953_v11 = vadd.f32 %v4912_v31, %v4831_v36  ;;  %v4711_v41 = vpack.c.bf16 %v4687_v52, %v4686_v13  ;;  %v4264_v58 = vadd.f32 %v9026_v12, %v3978_v47  ;;  %v323_v12 = vld [vmem:[%s6651_s12 + $0x40] sm:$0xff]   ;;  %v3430_v47 = vadd.f32 %v9702_v59, %v3018_v46  ;;  %v4564_v61 = vpop.f32.mrf.mxu1 }
 0x53c   : > { %v4913_v24 = vunpack.c.l.bf16 %v323_v12  ;;  %v3429_v9 = vadd.f32 %v9698_v35, %v3017_v18  ;;  %v4918_v59 = vunpack.c.h.bf16 %v327_v23 }
 0x53d   : > { %v4994_v33 = vmax.f32 %v4953_v11, 0.0  ;;  %4872 = vmatmul.bf16.gmra.mxu2 %v4711_v41  ;;  %v4602_v40 = vadd.f32 %v9028_v2, %v4264_v58  ;;  %v4223_v14 = vpop.f32.mrf.mxu0  ;;  %v325_v58 = vld [vmem:[%s6651_s12 + $0x48] sm:$0xff]  }
 0x53f   : > { %v6233_v0 = vpack.c.bf16 %v4994_v33, %v4993_v63  ;;  %v4647_v16 = vadd.f32 %v9098_v5, %v4602_v40  ;;  %v9703_v63 = vld [vmem:[#allocation166_spill] sm:$0xff]  ;;  %v9706_v40 = vld [vmem:[#allocation169_spill] sm:$0xff] }
 0x540   : > { %v3927_v44 = vpop.f32.mrf.mxu3  ;;  %v4833_v6 = vpop.f32.mrf.mxu2  ;;  %v3019_v33 = vadd.f32 %v9703_v63, %v2758_v55  ;;  %v9712_v55 = vld [vmem:[#allocation172_spill] sm:$0xff] }
 0x541   : > { %6429 = vst [vmem:[%s8908_s25 + $0x38] sm:$0xff] %v6233_v0   ;;  %v3979_v48 = vadd.f32 %v3927_v44, %v3428_v3  ;;  %v4834_v2 = vadd.f32 %v8882_v25, %v4833_v6  ;;  %v4688_v19 = vmax.f32 %v4647_v16, 0.0  ;;  %v4915_v0 = vunpack.c.l.bf16 %v325_v58 }
 0x542   : > { %v3431_v44 = vadd.f32 %v9706_v40, %v3019_v33  ;;  %v4916_v6 = vunpack.c.h.bf16 %v325_v58 }
 0x543   : > { %v4265_v45 = vadd.f32 %v9039_v4, %v3979_v48  ;;  %v4914_v4 = vunpack.c.h.bf16 %v323_v12  ;;  %v4954_v17 = vadd.f32 %v4913_v24, %v4834_v2  ;;  %v4566_v2 = vpop.f32.mrf.mxu1 }
 0x545   : > { %v4603_v26 = vadd.f32 %v9041_v53, %v4265_v45  ;;  %v4995_v37 = vmax.f32 %v4954_v17, 0.0  ;;  %v4226_v29 = vpop.f32.mrf.mxu0  ;;  %v9710_v17 = vld [vmem:[#allocation171_spill] sm:$0xff] }
 0x547   : > { %v4648_v20 = vadd.f32 %v9098_v5, %v4603_v26 }
 0x548   : > { %v3930_v1 = vpop.f32.mrf.mxu3  ;;  %v4835_v21 = vpop.f32.mrf.mxu2 }
 0x549   : > { %v3980_v7 = vadd.f32 %v3930_v1, %v3429_v9  ;;  %v4836_v53 = vadd.f32 %v8882_v25, %v4835_v21  ;;  %v4689_v22 = vmax.f32 %v4648_v20, 0.0  ;;  %v9708_v20 = vld [vmem:[#allocation39_spill] sm:$0xff]  ;;  %v9709_v1 = vld [vmem:[#allocation21_spill] sm:$0xff] }
 0x54a   : > { %v2760_v21 = vadd.f32 %v9709_v1, %v9708_v20 }
 0x54b   : > { %v4955_v15 = vadd.f32 %v4914_v4, %v4836_v53  ;;  %v4712_v51 = vpack.c.bf16 %v4689_v22, %v4688_v19  ;;  %v4266_v56 = vadd.f32 %v9055_v34, %v3980_v7 }
 0x54d   : > { %v4996_v31 = vmax.f32 %v4955_v15, 0.0  ;;  %4877 = vmatmul.bf16.gmra.mxu2 %v4712_v51  ;;  %v4604_v36 = vadd.f32 %v9057_v27, %v4266_v56  ;;  %v9705_v27 = vld [vmem:[#allocation140_spill] sm:$0xff]  ;;  %v9711_v56 = vld [vmem:[#allocation170_spill] sm:$0xff] }
 0x54e   : > { %v2759_v3 = vadd.f32 %v9705_v27, %v9704_v43  ;;  %v329_v27 = vld [vmem:[%s6651_s12 + $0x58] sm:$0xff]  }
 0x54f   : > { %v6238_v13 = vpack.c.bf16 %v4996_v31, %v4995_v37  ;;  %v4649_v39 = vadd.f32 %v9098_v5, %v4604_v36  ;;  %v3021_v37 = vadd.f32 %v9711_v56, %v2760_v21  ;;  %v333_v21 = vld [vmem:[%s6651_s12 + $0x68] sm:$0xff]  }
 0x550   : > { %v3932_v52 = vpop.f32.mrf.mxu3  ;;  %v4838_v11 = vpop.f32.mrf.mxu2  ;;  %v3020_v50 = vadd.f32 %v9707_v54, %v2759_v3 }
 0x551   : > { %6430 = vst [vmem:[%s8908_s25 + $0x40] sm:$0xff] %v6238_v13   ;;  %v3981_v41 = vadd.f32 %v3932_v52, %v3430_v47  ;;  %v4839_v49 = vadd.f32 %v8882_v25, %v4838_v11  ;;  %v3433_v13 = vadd.f32 %v9712_v55, %v3021_v37 }
 0x552   : > { %v3432_v7 = vadd.f32 %v9710_v17, %v3020_v50  ;;  %v4923_v17 = vunpack.c.l.bf16 %v333_v21 }
 0x553   : > { %v4267_v34 = vadd.f32 %v9070_v28, %v3981_v41  ;;  %v4690_v28 = vmax.f32 %v4649_v39, 0.0  ;;  %v4956_v60 = vadd.f32 %v4915_v0, %v4839_v49 }
 0x555   : > { %v4605_v32 = vadd.f32 %v9072_v62, %v4267_v34  ;;  %v4228_v62 = vpop.f32.mrf.mxu0  ;;  %v4997_v9 = vmax.f32 %v4956_v60, 0.0 }
 0x557   : > { %v4650_v48 = vadd.f32 %v9098_v5, %v4605_v32 }
 0x558   : > { %v3935_v12 = vpop.f32.mrf.mxu3  ;;  %v4840_v45 = vpop.f32.mrf.mxu2 }
 0x559   : > { %v3982_v18 = vadd.f32 %v3935_v12, %v3431_v44  ;;  %v4841_v16 = vadd.f32 %v8882_v25, %v4840_v45  ;;  %v4691_v26 = vmax.f32 %v4650_v48, 0.0  ;;  %v4919_v44 = vunpack.c.l.bf16 %v329_v27 }
 0x55a   : > { %v4920_v48 = vunpack.c.h.bf16 %v329_v27  ;;  %v339_v27 = vld [vmem:[%s6651_s12 + $0x80] sm:$0xff]  }
 0x55b   : > { %v4957_v24 = vadd.f32 %v4916_v6, %v4841_v16  ;;  %v4713_v57 = vpack.c.bf16 %v4691_v26, %v4690_v28  ;;  %v4268_v35 = vadd.f32 %v9085_v38, %v3982_v18 }
 0x55d   : > { %v4998_v4 = vmax.f32 %v4957_v24, 0.0  ;;  %4882 = vmatmul.bf16.gmra.mxu2 %v4713_v57  ;;  %v4606_v53 = vadd.f32 %v9087_v8, %v4268_v35 }
 0x55f   : > { %v6243_v19 = vpack.c.bf16 %v4998_v4, %v4997_v9  ;;  %v4651_v38 = vadd.f32 %v9098_v5, %v4606_v53 }
 0x560   : > { %v3937_v22 = vpop.f32.mrf.mxu3  ;;  %v4843_v15 = vpop.f32.mrf.mxu2 }
 0x561   : > { %6431 = vst [vmem:[%s8908_s25 + $0x48] sm:$0xff] %v6243_v19   ;;  %v3983_v51 = vadd.f32 %v3937_v22, %v3432_v7  ;;  %v4844_v30 = vadd.f32 %v8882_v25, %v4843_v15  ;;  %v4692_v52 = vmax.f32 %v4651_v38, 0.0  ;;  %v4924_v7 = vunpack.c.h.bf16 %v333_v21  ;;  %v335_v38 = vld [vmem:[%s6651_s12 + $0x70] sm:$0xff]  }
 0x563   : > { %v4269_v46 = vadd.f32 %v4223_v14, %v3983_v51  ;;  %v4958_v11 = vadd.f32 %v4917_v42, %v4844_v30  ;;  %v4925_v30 = vunpack.c.l.bf16 %v335_v38  ;;  %v4926_v42 = vunpack.c.h.bf16 %v335_v38 }
 0x565   : > { %v4607_v31 = vadd.f32 %v4561_v10, %v4269_v46  ;;  %v4999_v33 = vmax.f32 %v4958_v11, 0.0 }
 0x567   : > { %v4652_v47 = vadd.f32 %v9098_v5, %v4607_v31 }
 0x568   : > { %v3940_v8 = vpop.f32.mrf.mxu3  ;;  %v4845_v36 = vpop.f32.mrf.mxu2 }
 0x569   : > { %v3984_v14 = vadd.f32 %v3940_v8, %v3433_v13  ;;  %v4846_v41 = vadd.f32 %v8882_v25, %v4845_v36  ;;  %v4693_v58 = vmax.f32 %v4652_v47, 0.0 }
 0x56b   : > { %v4959_v34 = vadd.f32 %v4918_v59, %v4846_v41  ;;  %v4270_v10 = vadd.f32 %v4226_v29, %v3984_v14  ;;  %v4714_v63 = vpack.c.bf16 %v4693_v58, %v4692_v52  ;;  %v337_v14 = vld [vmem:[%s6651_s12 + $0x78] sm:$0xff]  }
 0x56c   : > { %v4927_v58 = vunpack.c.l.bf16 %v337_v14 }
 0x56d   : > { %v5000_v39 = vmax.f32 %v4959_v34, 0.0  ;;  %4887 = vmatmul.bf16.gmra.mxu2 %v4714_v63  ;;  %v4608_v49 = vadd.f32 %v4564_v61, %v4270_v10  ;;  %v4928_v34 = vunpack.c.h.bf16 %v337_v14 }
 0x56f   : > { %v6248_v32 = vpack.c.bf16 %v5000_v39, %v4999_v33  ;;  %v4653_v3 = vadd.f32 %v9098_v5, %v4608_v49  ;;  %v331_v5 = vld [vmem:[%s6651_s12 + $0x60] sm:$0xff]  }
 0x570   : > { %v3942_v0 = vpop.f32.mrf.mxu3  ;;  %v4848_v43 = vpop.f32.mrf.mxu2  ;;  %v4921_v2 = vunpack.c.l.bf16 %v331_v5  ;;  %v4922_v24 = vunpack.c.h.bf16 %v331_v5 }
 0x571   : > { %6432 = vst [vmem:[%s8908_s25 + $0x50] sm:$0xff] %v6248_v32   ;;  %v4849_v40 = vadd.f32 %v8882_v25, %v4848_v43  ;;  %v4694_v6 = vmax.f32 %v4653_v3, 0.0 }
 0x573   : > { %v4960_v12 = vadd.f32 %v4919_v44, %v4849_v40  ;;  %v4715_v28 = vpack.c.bf16 %v4694_v6, %v4694_v6  ;;  %v4929_v40 = vunpack.c.l.bf16 %v339_v27  ;;  %v4930_v44 = vunpack.c.h.bf16 %v339_v27 }
 0x575   : > { %v5001_v61 = vmax.f32 %v4960_v12, 0.0 }
 0x578   : > { %v4850_v29 = vpop.f32.mrf.mxu2 }
 0x579   : > { %v4851_v45 = vadd.f32 %v8882_v25, %v4850_v29 }
 0x57b   : > { %v4961_v60 = vadd.f32 %v4920_v48, %v4851_v45 }
 0x57d   : > { %v5002_v18 = vmax.f32 %v4961_v60, 0.0  ;;  %4892 = vmatmul.bf16.gmra.mxu2 %v4715_v28 }
 0x57f   : > { %v6253_v16 = vpack.c.bf16 %v5002_v18, %v5001_v61  ;;  %v341_v18 = vld [vmem:[%s6651_s12 + $0x88] sm:$0xff]  }
 0x580   : > { %v4853_v26 = vpop.f32.mrf.mxu2  ;;  %v4932_v5 = vunpack.c.h.bf16 %v341_v18 }
 0x581   : > { %6433 = vst [vmem:[%s8908_s25 + $0x58] sm:$0xff] %v6253_v16   ;;  %v4854_v62 = vadd.f32 %v8882_v25, %v4853_v26  ;;  %v4931_v26 = vunpack.c.l.bf16 %v341_v18 }
 0x583   : > { %v4962_v54 = vadd.f32 %v4921_v2, %v4854_v62 }
 0x585   : > { %v5003_v9 = vmax.f32 %v4962_v54, 0.0 }
 0x588   : > { %v4855_v57 = vpop.f32.mrf.mxu2 }
 0x589   : > { %v4856_v50 = vadd.f32 %v8882_v25, %v4855_v57 }
 0x58b   : > { %v4963_v35 = vadd.f32 %v4922_v24, %v4856_v50 }
 0x58d   : > { %v5004_v4 = vmax.f32 %v4963_v35, 0.0 }
 0x58f   : > { %v6258_v20 = vpack.c.bf16 %v5004_v4, %v5003_v9  ;;  %v343_v4 = vld [vmem:[%s6651_s12 + $0x90] sm:$0xff]  }
 0x590   : > { %v4858_v1 = vpop.f32.mrf.mxu2  ;;  %v4934_v21 = vunpack.c.h.bf16 %v343_v4 }
 0x591   : > { %6434 = vst [vmem:[%s8908_s25 + $0x60] sm:$0xff] %v6258_v20   ;;  %v4859_v19 = vadd.f32 %v8882_v25, %v4858_v1  ;;  %v4933_v1 = vunpack.c.l.bf16 %v343_v4 }
 0x593   : > { %v4964_v22 = vadd.f32 %v4923_v17, %v4859_v19 }
 0x595   : > { %v5005_v23 = vmax.f32 %v4964_v22, 0.0 }
 0x598   : > { %v4860_v53 = vpop.f32.mrf.mxu2 }
 0x599   : > { %v4861_v15 = vadd.f32 %v8882_v25, %v4860_v53 }
 0x59b   : > { %v4965_v51 = vadd.f32 %v4924_v7, %v4861_v15 }
 0x59d   : > { %v5006_v46 = vmax.f32 %v4965_v51, 0.0 }
 0x59f   : > { %v6263_v56 = vpack.c.bf16 %v5006_v46, %v5005_v23  ;;  %v345_v46 = vld [vmem:[%s6651_s12 + $0x98] sm:$0xff]  }
 0x5a0   : > { %v4863_v37 = vpop.f32.mrf.mxu2  ;;  %v4936_v38 = vunpack.c.h.bf16 %v345_v46 }
 0x5a1   : > { %6435 = vst [vmem:[%s8908_s25 + $0x68] sm:$0xff] %v6263_v56   ;;  %v4864_v31 = vadd.f32 %v8882_v25, %v4863_v37  ;;  %v4935_v37 = vunpack.c.l.bf16 %v345_v46 }
 0x5a3   : > { %v4966_v13 = vadd.f32 %v4925_v30, %v4864_v31 }
 0x5a5   : > { %v5007_v8 = vmax.f32 %v4966_v13, 0.0 }
 0x5a8   : > { %v4865_v55 = vpop.f32.mrf.mxu2 }
 0x5a9   : > { %v4866_v59 = vadd.f32 %v8882_v25, %v4865_v55 }
 0x5ab   : > { %v4967_v47 = vadd.f32 %v4926_v42, %v4866_v59  ;;  %v6542_v42 = vld [vmem:[%s9191_s6] ss:$0 sm:$0xff] }
 0x5ad   : > { %v5008_v36 = vmax.f32 %v4967_v47, 0.0 }
 0x5af   : > { %v6268_v52 = vpack.c.bf16 %v5008_v36, %v5007_v8  ;;  %v6543_v8 = vld [vmem:[%s6651_s12 + $0xa0] sm:$0x3] }
 0x5b0   : > { %v4868_v11 = vpop.f32.mrf.mxu2  ;;  %v4937_v36 = vunpack.c.l.bf16 %v6543_v8 }
 0x5b1   : > { %6436 = vst [vmem:[%s8908_s25 + $0x70] sm:$0xff] %v6268_v52   ;;  %v4869_v41 = vadd.f32 %v8882_v25, %v4868_v11 }
 0x5b3   : > { %v4968_v63 = vadd.f32 %v4927_v58, %v4869_v41 }
 0x5b5   : > { %v5009_v32 = vmax.f32 %v4968_v63, 0.0 }
 0x5b8   : > { %v4870_v10 = vpop.f32.mrf.mxu2 }
 0x5b9   : > { %v4871_v33 = vadd.f32 %v8882_v25, %v4870_v10 }
 0x5bb   : > { %v4969_v39 = vadd.f32 %v4928_v34, %v4871_v33 }
 0x5bd   : > { %v5010_v49 = vmax.f32 %v4969_v39, 0.0 }
 0x5bf   : > { %v6273_v0 = vpack.c.bf16 %v5010_v49, %v5009_v32 }
 0x5c0   : > { %v4873_v43 = vpop.f32.mrf.mxu2 }
 0x5c1   : > { %6437 = vst [vmem:[%s8908_s25 + $0x78] sm:$0xff] %v6273_v0   ;;  %v4874_v3 = vadd.f32 %v8882_v25, %v4873_v43 }
 0x5c3   : > { %v4970_v48 = vadd.f32 %v4929_v40, %v4874_v3 }
 0x5c5   : > { %v5011_v45 = vmax.f32 %v4970_v48, 0.0 }
 0x5c8   : > { %v4875_v6 = vpop.f32.mrf.mxu2 }
 0x5c9   : > { %v4876_v29 = vadd.f32 %v8882_v25, %v4875_v6 }
 0x5cb   : > { %v4971_v12 = vadd.f32 %v4930_v44, %v4876_v29 }
 0x5cd   : > { %v5012_v28 = vmax.f32 %v4971_v12, 0.0 }
 0x5cf   : > { %v6278_v60 = vpack.c.bf16 %v5012_v28, %v5011_v45 }
 0x5d0   : > { %v4878_v61 = vpop.f32.mrf.mxu2 }
 0x5d1   : > { %6438 = vst [vmem:[%s8908_s25 + $0x80] sm:$0xff] %v6278_v60   ;;  %v4879_v16 = vadd.f32 %v8882_v25, %v4878_v61 }
 0x5d3   : > { %v4972_v2 = vadd.f32 %v4931_v26, %v4879_v16 }
 0x5d5   : > { %v5013_v54 = vmax.f32 %v4972_v2, 0.0 }
 0x5d8   : > { %v4880_v62 = vpop.f32.mrf.mxu2 }
 0x5d9   : > { %v4881_v24 = vadd.f32 %v8882_v25, %v4880_v62 }
 0x5db   : > { %v4973_v57 = vadd.f32 %v4932_v5, %v4881_v24 }
 0x5dd   : > { %v5014_v50 = vmax.f32 %v4973_v57, 0.0 }
 0x5df   : > { %v6283_v35 = vpack.c.bf16 %v5014_v50, %v5013_v54 }
 0x5e0   : > { %v4883_v9 = vpop.f32.mrf.mxu2 }
 0x5e1   : > { %6439 = vst [vmem:[%s8908_s25 + $0x88] sm:$0xff] %v6283_v35   ;;  %v4884_v20 = vadd.f32 %v8882_v25, %v4883_v9 }
 0x5e3   : > { %v4974_v17 = vadd.f32 %v4933_v1, %v4884_v20 }
 0x5e5   : > { %v5015_v22 = vmax.f32 %v4974_v17, 0.0 }
 0x5e8   : > { %v4885_v19 = vpop.f32.mrf.mxu2 }
 0x5e9   : > { %v4886_v7 = vadd.f32 %v8882_v25, %v4885_v19 }
 0x5eb   : > { %v4975_v53 = vadd.f32 %v4934_v21, %v4886_v7 }
 0x5ed   : > { %v5016_v15 = vmax.f32 %v4975_v53, 0.0 }
 0x5ef   : > { %v6288_v51 = vpack.c.bf16 %v5016_v15, %v5015_v22 }
 0x5f0   : > { %v4888_v23 = vpop.f32.mrf.mxu2 }
 0x5f1   : > { %6440 = vst [vmem:[%s8908_s25 + $0x90] sm:$0xff] %v6288_v51   ;;  %v4889_v56 = vadd.f32 %v8882_v25, %v4888_v23 }
 0x5f3   : > { %v4976_v30 = vadd.f32 %v4935_v37, %v4889_v56 }
 0x5f5   : > { %v5017_v59 = vmax.f32 %v4976_v30, 0.0 }
 0x5f8   : > { %v4890_v31 = vpop.f32.mrf.mxu2 }
 0x5f9   : > { %v4891_v55 = vadd.f32 %v6542_v42, %v4890_v31 }
 0x5fb   : > { %v4977_v13 = vadd.f32 %v4936_v38, %v4891_v55 }
 0x5fd   : > { %v5018_v47 = vmax.f32 %v4977_v13, 0.0 }
 0x5ff   : > { %v6293_v52 = vpack.c.bf16 %v5018_v47, %v5017_v59 }
 0x600   : > { %v4893_v11 = vpop.f32.mrf.mxu2 }
 0x601   : > { %6441 = vst [vmem:[%s8908_s25 + $0x98] sm:$0xff] %v6293_v52   ;;  %v4894_v14 = vadd.f32 %v6542_v42, %v4893_v11 }
 0x603   : > { %v4978_v25 = vadd.f32 %v4937_v36, %v4894_v14 }
 0x605   : > { %v5019_v41 = vmax.f32 %v4978_v25, 0.0 }
 0x607   : > { %v5060_v58 = vpack.c.bf16 %v5019_v41, %v5019_v41 }
 0x608   : > { %v4895_v34 = vpop.f32.mrf.mxu2 }
 0x609   : > { %5101 = vst [vmem:[%s8908_s25 + $0xa0] sm:$0x3] %v5060_v58 }
 0x60a PF: > { %s18_s27 = sadd.s32 1, %s6550_s27  }
 0x60b   : > { %p15_p4 = scmp.ge.s32.totalorder %s18_s27, 4  }
 0x60d   :  { %17 = sbr.rel (!%p15_p4) target bundleno = 1 (0x1), region = 90 }

</bundles_post_ra>
